<compile_context>
chip_gen: v5e
topology: v5e:2x2
jax: 0.10.0
libtpu: 0.0.40
codegen_flags: <defaults>
</compile_context>

<pallas_src>
import functools

import jax
import jax.numpy as jnp
from jax import lax
from jax.experimental import pallas as pl
from jax.experimental.pallas import tpu as pltpu

LANE = 128  # channel padding granularity (TPU lane width)


def _round_up(x, m):
    return (x + m - 1) // m * m


# --------------------------------------------------------------------------
# VMEM-aware sizing helpers
# --------------------------------------------------------------------------
def _vmem_budget_bytes():
    """~80% of physical VMEM per core: ~102 MiB on v5e/v6e, ~51 MiB on v7x."""
    phys = 64 * 1024 * 1024  # conservative fallback = v7x per-core VMEM
    try:
        info = pltpu.get_tpu_info()
        for name in ("vmem_capacity_bytes", "vmem_size_bytes", "vmem_bytes"):
            v = getattr(info, name, None)
            if v:
                phys = int(v)
                break
    except Exception:
        pass
    return int(phys * 0.80)


def _chunk_rows(TH, W, target_m=512):
    """Row-chunk sizes so each fused dot has ~target_m M-rows (bounds the
    implicit f32 accumulator/BN temporaries to ~1 MiB at Cp=128)."""
    Wm = W + 2
    c1 = max(1, min(TH + 2, target_m // Wm if Wm > 0 else 1))
    c2 = max(1, min(TH, target_m // W if W > 0 else 1))
    return c1, c2


def _estimate_vmem_bytes(TH, W, Cin, Cp, c1_rows, c2_rows):
    """Explicit + implicit per-step VMEM footprint (bytes)."""
    Wm, K1, bf, f4 = W + 2, 9 * Cin, 2, 4
    blocks = (TH * Wm * K1            # x1 main band block
              + 2 * Wm * K1           # x1 halo block
              + K1 * Cp + 9 * Cp * Cp  # w1, w2
              + TH * W * Cp) * bf + 4 * Cp * f4  # out block; s1,b1,s2,b2
    dbl = 2 * blocks                   # pipeline double-buffers everything
    mid = (TH + 2) * Wm * Cp * bf      # conv1 intermediate scratch
    pbuf = c2_rows * W * 9 * Cp * bf   # conv2 per-chunk im2col scratch
    m = max(c1_rows * Wm, c2_rows * W)
    tmps = 4 * m * Cp * f4 + max(c1_rows * Wm * K1, c2_rows * W * 9 * Cp) * bf
    return int((dbl + mid + pbuf + tmps) * 1.15) + (2 << 20)  # margin + internal


def _auto_band_rows(N, H, W, Cin, Cp, budget):
    """Largest even divisor of H whose footprint fits `budget`; prefer >= 2
    total grid steps so both v7x TensorCores get work."""
    cands = sorted((t for t in range(2, H + 1, 2) if H % t == 0), reverse=True)
    if not cands:
        # TODO(synk): odd H needs padded / uneven bands.
        raise ValueError(f"H={H} needs an even divisor for row-band tiling")
    fits = []
    for th in cands:
        c1, c2 = _chunk_rows(th, W)
        if _estimate_vmem_bytes(th, W, Cin, Cp, c1, c2) <= budget:
            fits.append(th)
    if not fits:
        raise ValueError(f"no band size for H={H}, W={W}, Cp={Cp} fits "
                         f"the VMEM budget of {budget} bytes")
    if N * (H // fits[0]) < 2:
        for th in fits:                 # descending: largest TH with >=2 steps
            if N * (H // th) >= 2:
                return th
    return fits[0]


# --------------------------------------------------------------------------
# Kernel
# --------------------------------------------------------------------------
def double_conv_kernel(x1m_ref, x1h_ref, w1_ref, s1_ref, b1_ref,
                       w2_ref, s2_ref, b2_ref, o_ref,
                       mid_ref, p_ref, *, c1_rows, c2_rows):
    """One (batch, row-band) tile per grid step.

    x1m_ref : (1, TH, W+2, 9*Cin)  host-side conv1 im2col, main band rows (bf16)
    x1h_ref : (1, 2,  W+2, 9*Cin)  2-row bottom halo of the band (bf16)
    w1_ref  : (9*Cin, Cp)          conv1 weight, K order (ky, kx, cin), bf16
    s1/b1   : (1, Cp)              folded BN1 scale / bias (conv1 bias in), f32
    w2_ref  : (9*Cp, Cp)           conv2 weight, same K order, bf16 (pad rows 0)
    s2/b2   : (1, Cp)              folded BN2 scale / bias, f32
    o_ref   : (1, TH, W, Cp)       output band, NHWC, channels padded, bf16
    mid_ref : (TH+2, W+2, Cp)      VMEM scratch: halo'd conv1 output, bf16
    p_ref   : (c2_rows*W, 9*Cp)    VMEM scratch: conv2 per-chunk im2col LHS
    """
    TH = o_ref.shape[1]
    W = o_ref.shape[2]
    Cp = o_ref.shape[3]
    Wm = mid_ref.shape[1]          # W + 2
    K1 = x1m_ref.shape[3]          # 9 * Cin
    f32 = jnp.float32

    b = pl.program_id(1)
    nb = pl.num_programs(1)

    # ---------------- Conv1: host-side im2col -> fused MXU dot per chunk ----
    # The band needs TH+2 conv1 rows (1-row halo for conv2 on each side).
    # Chunk boundaries always include TH so no chunk straddles main/halo.
    bounds = sorted(set(list(range(0, TH + 2, c1_rows)) + [TH, TH + 2]))
    for r0, r_end in zip(bounds[:-1], bounds[1:]):
        rr = r_end - r0
        if r0 < TH:                                    # entirely in main block
            lhs = x1m_ref[0, r0:r_end]
        else:                                          # entirely in halo block
            lhs = x1h_ref[0, r0 - TH:r_end - TH]
        acc = jnp.dot(lhs.reshape(rr * Wm, K1), w1_ref[...],
                      preferred_element_type=f32)      # (rr*Wm, Cp) f32
        h = jnp.maximum(acc * s1_ref[...] + b1_ref[...], 0.0)   # BN1 + ReLU
        mid_ref[r0:r_end] = h.reshape(rr, Wm, Cp).astype(mid_ref.dtype)

    # Zero the 1-pixel halo ring required by conv2's SAME padding.  Column
    # halos always; row halos only at the true image border (interior band
    # edges carry real conv1 rows computed in this band).
    zcol = jnp.zeros((TH + 2, 1, Cp), mid_ref.dtype)
    mid_ref[:, 0:1, :] = zcol
    mid_ref[:, Wm - 1:Wm, :] = zcol

    @pl.when(b == 0)
    def _zero_top_halo_row():
        mid_ref[0:1] = jnp.zeros((1, Wm, Cp), mid_ref.dtype)

    @pl.when(b == nb - 1)
    def _zero_bottom_halo_row():
        mid_ref[TH + 1:TH + 2] = jnp.zeros((1, Wm, Cp), mid_ref.dtype)

    # ---------------- Conv2: per-chunk im2col -> fused K=9*Cp MXU dot -------
    for r0 in range(0, TH, c2_rows):
        rr = min(c2_rows, TH - r0)
        m = rr * W
        for dy in range(3):
            for dx in range(3):
                k = dy * 3 + dx
                p_ref[0:m, k * Cp:(k + 1) * Cp] = (
                    mid_ref[r0 + dy:r0 + dy + rr, dx:dx + W, :].reshape(m, Cp))
        acc = jnp.dot(p_ref[0:m, :], w2_ref[...],
                      preferred_element_type=f32)      # (m, Cp) f32
        # BN2 (eval mode, folded).  The reference nn.Sequential ends with
        # BatchNorm2d, so no trailing ReLU is applied.
        out = acc * s2_ref[...] + b2_ref[...]
        o_ref[0, r0:r0 + rr] = out.reshape(rr, W, Cp).astype(o_ref.dtype)


# --------------------------------------------------------------------------
# Wrapper
# --------------------------------------------------------------------------
@functools.partial(jax.jit, static_argnames=("out_channels", "band_rows",
                                              "c1_rows", "c2_rows", "vmem_limit"))
def _double_conv_impl(x_nchw, w1, s1, b1, w2, s2, b2, *,
                      out_channels, band_rows, c1_rows, c2_rows, vmem_limit):
    N, Cin, H, W = x_nchw.shape
    Cp = w1.shape[1]
    TH = band_rows
    Wm = W + 2
    n_bands = H // TH
    K1 = 9 * Cin

    # NCHW -> NHWC, zero-pad H/W by 2, host-side conv1 im2col (cheap at small
    # Cin), cast bf16 -- one fused host-side producer.  X1[:, r, c] is the
    # flattened 3x3xCin patch of conv1-with-halo output position (r, c).
    xz = jnp.pad(jnp.transpose(x_nchw, (0, 2, 3, 1)),
                 ((0, 0), (2, 2), (2, 2), (0, 0)))
    x1 = jnp.concatenate(
        [xz[:, dy:dy + H + 2, dx:dx + Wm, :] for dy in range(3) for dx in range(3)],
        axis=-1).astype(jnp.bfloat16)                       # (N, H+2, Wm, 9*Cin)

    kernel = functools.partial(double_conv_kernel, c1_rows=c1_rows, c2_rows=c2_rows)

    out_padded = pl.pallas_call(
        kernel,
        out_shape=jax.ShapeDtypeStruct((N, H, W, Cp), jnp.bfloat16),
        grid_spec=pltpu.PrefetchScalarGridSpec(
            num_scalar_prefetch=0,
            grid=(N, n_bands),
            in_specs=[
                # conv1 im2col, main band rows [b*TH, b*TH + TH)
                pl.BlockSpec((1, TH, Wm, K1), lambda n, b: (n, b, 0, 0)),
                # 2-row bottom halo: rows [(b+1)*TH, (b+1)*TH + 2)
                pl.BlockSpec((1, 2, Wm, K1),
                             lambda n, b: (n, (b + 1) * (TH // 2), 0, 0)),
                pl.BlockSpec((K1, Cp), lambda n, b: (0, 0)),
                pl.BlockSpec((1, Cp), lambda n, b: (0, 0)),
                pl.BlockSpec((1, Cp), lambda n, b: (0, 0)),
                pl.BlockSpec((9 * Cp, Cp), lambda n, b: (0, 0)),
                pl.BlockSpec((1, Cp), lambda n, b: (0, 0)),
                pl.BlockSpec((1, Cp), lambda n, b: (0, 0)),
            ],
            out_specs=pl.BlockSpec((1, TH, W, Cp), lambda n, b: (n, b, 0, 0)),
            scratch_shapes=[
                pltpu.VMEM((TH + 2, Wm, Cp), jnp.bfloat16),      # conv1 output
                pltpu.VMEM((c2_rows * W, 9 * Cp), jnp.bfloat16),  # conv2 im2col
            ],
        ),
        compiler_params=pltpu.CompilerParams(
            dimension_semantics=("parallel", "parallel"),
            vmem_limit_bytes=int(vmem_limit),
        ),
    )(x1, x1, w1, s1, b1, w2, s2, b2)

    # PyTorch boundary: drop the channel padding, back to NCHW f32.
    return jnp.transpose(out_padded[..., :out_channels].astype(jnp.float32),
                         (0, 3, 1, 2))


def double_conv_forward(x_nchw, w1, s1, b1, w2, s2, b2, *,
                        out_channels, band_rows=None):
    """x_nchw: (N, Cin, H, W) f32; params from prepare_kernel_params.
    Returns (N, out_channels, H, W) f32."""
    N, Cin, H, W = x_nchw.shape
    Cp = w1.shape[1]
    assert w1.shape[0] == 9 * Cin

    budget = _vmem_budget_bytes()
    TH = band_rows if band_rows is not None else _auto_band_rows(
        N, H, W, Cin, Cp, budget)
    assert H % TH == 0 and TH % 2 == 0, "band_rows must be an even divisor of H"
    c1_rows, c2_rows = _chunk_rows(TH, W)
    return _double_conv_impl(x_nchw, w1, s1, b1, w2, s2, b2,
                             out_channels=out_channels, band_rows=TH,
                             c1_rows=c1_rows, c2_rows=c2_rows,
                             vmem_limit=budget)


# --------------------------------------------------------------------------
# Parameters / reference
# --------------------------------------------------------------------------
def make_raw_params(key, in_channels, out_channels):
    """Deterministic synthetic parameters with the PyTorch module's shapes."""
    ks = jax.random.split(key, 12)
    p = {}
    p["w1"] = jax.random.normal(ks[0], (out_channels, in_channels, 3, 3), jnp.float32) * 0.1
    p["cb1"] = jax.random.normal(ks[1], (out_channels,), jnp.float32) * 0.1
    p["g1"] = 1.0 + 0.1 * jax.random.normal(ks[2], (out_channels,), jnp.float32)
    p["beta1"] = 0.1 * jax.random.normal(ks[3], (out_channels,), jnp.float32)
    p["rm1"] = 0.1 * jax.random.normal(ks[4], (out_channels,), jnp.float32)
    p["rv1"] = jnp.abs(jax.random.normal(ks[5], (out_channels,), jnp.float32)) + 0.5
    p["w2"] = jax.random.normal(ks[6], (out_channels, out_channels, 3, 3), jnp.float32) * 0.1
    p["cb2"] = jax.random.normal(ks[7], (out_channels,), jnp.float32) * 0.1
    p["g2"] = 1.0 + 0.1 * jax.random.normal(ks[8], (out_channels,), jnp.float32)
    p["beta2"] = 0.1 * jax.random.normal(ks[9], (out_channels,), jnp.float32)
    p["rm2"] = 0.1 * jax.random.normal(ks[10], (out_channels,), jnp.float32)
    p["rv2"] = jnp.abs(jax.random.normal(ks[11], (out_channels,), jnp.float32)) + 0.5
    return p


def prepare_kernel_params(raw, eps=1e-5):
    """Fold eval-mode BN + conv bias, pad channels to a lane-dense multiple of
    128, and pre-reshape weights into the kernel's im2col (K, Cout_p) layout
    with K ordered (ky, kx, cin)."""
    Cout, Cin = raw["w1"].shape[0], raw["w1"].shape[1]
    Cp = _round_up(Cout, LANE)

    def fold(gamma, var, beta, mean, conv_b):
        s = gamma / jnp.sqrt(var + eps)
        return s, beta + s * (conv_b - mean)

    s1, b1 = fold(raw["g1"], raw["rv1"], raw["beta1"], raw["rm1"], raw["cb1"])
    s2, b2 = fold(raw["g2"], raw["rv2"], raw["beta2"], raw["rm2"], raw["cb2"])

    def pad_c(v):  # (Cout,) -> (1, Cp); padded channels get scale/bias 0
        return jnp.pad(v, (0, Cp - Cout)).reshape(1, Cp).astype(jnp.float32)

    # Conv1 weight: OIHW -> HWIO -> (9*Cin, Cout) -> pad Cout -> bf16.
    w1 = jnp.transpose(raw["w1"], (2, 3, 1, 0)).reshape(9 * Cin, Cout)
    w1 = jnp.pad(w1, ((0, 0), (0, Cp - Cout))).astype(jnp.bfloat16)
    # Conv2 weight: OIHW -> HWIO -> pad both channel axes -> (9*Cp, Cp) -> bf16.
    w2 = jnp.transpose(raw["w2"], (2, 3, 1, 0))
    w2 = jnp.pad(w2, ((0, 0), (0, 0), (0, Cp - Cout), (0, Cp - Cout)))
    w2 = w2.reshape(9 * Cp, Cp).astype(jnp.bfloat16)

    return w1, pad_c(s1), pad_c(b1), w2, pad_c(s2), pad_c(b2)


def reference_forward(x_nchw, raw, eps=1e-5):
    """Pure-JAX reference (lax conv, eval-mode BN).  Inputs / weights / the
    intermediate / the output are rounded to bf16 at the same points as the
    kernel so the comparison is tight; accumulation stays f32."""
    def r(v):
        return v.astype(jnp.bfloat16).astype(jnp.float32)

    x = jnp.transpose(x_nchw, (0, 2, 3, 1))
    dn = ("NHWC", "HWIO", "NHWC")
    w1 = jnp.transpose(raw["w1"], (2, 3, 1, 0))
    w2 = jnp.transpose(raw["w2"], (2, 3, 1, 0))

    y = lax.conv_general_dilated(r(x), r(w1), (1, 1), "SAME",
                                 dimension_numbers=dn,
                                 precision=lax.Precision.HIGHEST) + raw["cb1"]
    y = (y - raw["rm1"]) * raw["g1"] / jnp.sqrt(raw["rv1"] + eps) + raw["beta1"]
    y = jnp.maximum(y, 0.0)
    y = lax.conv_general_dilated(r(y), r(w2), (1, 1), "SAME",
                                 dimension_numbers=dn,
                                 precision=lax.Precision.HIGHEST) + raw["cb2"]
    y = (y - raw["rm2"]) * raw["g2"] / jnp.sqrt(raw["rv2"] + eps) + raw["beta2"]
    return jnp.transpose(r(y), (0, 3, 1, 2))


if __name__ == "__main__":
    key = jax.random.PRNGKey(0)
    k_x, k_p = jax.random.split(key)

    N, Cin, Cout, H, W = 2, 4, 8, 16, 16
    x = jax.random.normal(k_x, (N, Cin, H, W), jnp.float32)
    raw = make_raw_params(k_p, Cin, Cout)
    kparams = prepare_kernel_params(raw)

    ref = jax.block_until_ready(reference_forward(x, raw))

    # Explicit band_rows=8 -> two row bands per image, exercising the halo path.
    out = double_conv_forward(x, *kparams, out_channels=Cout, band_rows=8)
    out = jax.block_until_ready(out)
    assert out.shape == (N, Cout, H, W), out.shape
    err = float(jnp.max(jnp.abs(out - ref)))
    assert jnp.allclose(out, ref, atol=2e-2, rtol=2e-2), err

    # VMEM-aware auto band sizing path.
    out2 = double_conv_forward(x, *kparams, out_channels=Cout)
    out2 = jax.block_until_ready(out2)
    err2 = float(jnp.max(jnp.abs(out2 - ref)))
    assert jnp.allclose(out2, ref, atol=2e-2, rtol=2e-2), err2

    print("KERNEL_OK")
</pallas_src>

<mosaic_0001>
module attributes {stable_mosaic.version = 11 : i64} {
  func.func @double_conv_kernel(%arg0: i32, %arg1: i32, %arg2: memref<1x8x18x36xbf16, #tpu.memory_space<vmem>>, %arg3: memref<1x2x18x36xbf16, #tpu.memory_space<vmem>>, %arg4: memref<36x128xbf16, #tpu.memory_space<vmem>>, %arg5: memref<1x128xf32, #tpu.memory_space<vmem>>, %arg6: memref<1x128xf32, #tpu.memory_space<vmem>>, %arg7: memref<1152x128xbf16, #tpu.memory_space<vmem>>, %arg8: memref<1x128xf32, #tpu.memory_space<vmem>>, %arg9: memref<1x128xf32, #tpu.memory_space<vmem>>, %arg10: memref<1x8x16x128xbf16, #tpu.memory_space<vmem>>, %arg11: memref<10x18x128xbf16, #tpu.memory_space<vmem>>, %arg12: memref<128x1152xbf16, #tpu.memory_space<vmem>>) attributes {dimension_semantics = [#tpu.dimension_semantics<parallel>, #tpu.dimension_semantics<parallel>], iteration_bounds = array<i64: 2, 2>, scalar_prefetch = 0 : i64, scratch_operands = 2 : i64, tpu.core_type = #tpu.core_type<tc>, window_params = [{transform_indices = @transform_0, window_bounds = array<i64: 1, 8, 18, 36>}, {transform_indices = @transform_1, window_bounds = array<i64: 1, 2, 18, 36>}, {pipeline_mode = #tpu.pipeline_mode<synchronous>, transform_indices = @transform_2, window_bounds = array<i64: 36, 128>}, {pipeline_mode = #tpu.pipeline_mode<synchronous>, transform_indices = @transform_3, window_bounds = array<i64: 1, 128>}, {pipeline_mode = #tpu.pipeline_mode<synchronous>, transform_indices = @transform_4, window_bounds = array<i64: 1, 128>}, {pipeline_mode = #tpu.pipeline_mode<synchronous>, transform_indices = @transform_5, window_bounds = array<i64: 1152, 128>}, {pipeline_mode = #tpu.pipeline_mode<synchronous>, transform_indices = @transform_6, window_bounds = array<i64: 1, 128>}, {pipeline_mode = #tpu.pipeline_mode<synchronous>, transform_indices = @transform_7, window_bounds = array<i64: 1, 128>}, {transform_indices = @transform_8, window_bounds = array<i64: 1, 8, 16, 128>}]} {
    %c0 = arith.constant 0 : index
    %c0_0 = arith.constant 0 : index
    %c0_1 = arith.constant 0 : index
    %c0_2 = arith.constant 0 : index
    %0 = vector.load %arg2[%c0, %c0_0, %c0_1, %c0_2] : memref<1x8x18x36xbf16, #tpu.memory_space<vmem>>, vector<1x8x18x36xbf16>
    %1 = vector.shape_cast %0 : vector<1x8x18x36xbf16> to vector<8x18x36xbf16>
    %2 = vector.shape_cast %1 : vector<8x18x36xbf16> to vector<144x36xbf16>
    %c0_3 = arith.constant 0 : index
    %c0_4 = arith.constant 0 : index
    %3 = vector.load %arg4[%c0_3, %c0_4] : memref<36x128xbf16, #tpu.memory_space<vmem>>, vector<36x128xbf16>
    %cst = arith.constant dense<0.000000e+00> : vector<144x128xf32>
    %4 = tpu.matmul %2, %3, %cst {dimension_numbers = #tpu.dot_dimension_numbers<[1], [0], [0], [1], [0, 0, 1, 1], [], []>} : vector<144x36xbf16>, vector<36x128xbf16>, vector<144x128xf32> -> vector<144x128xf32>
    %c0_5 = arith.constant 0 : index
    %c0_6 = arith.constant 0 : index
    %5 = vector.load %arg5[%c0_5, %c0_6] : memref<1x128xf32, #tpu.memory_space<vmem>>, vector<1x128xf32>
    %6 = vector.broadcast %5 : vector<1x128xf32> to vector<144x128xf32>
    %7 = arith.mulf %4, %6 : vector<144x128xf32>
    %c0_7 = arith.constant 0 : index
    %c0_8 = arith.constant 0 : index
    %8 = vector.load %arg6[%c0_7, %c0_8] : memref<1x128xf32, #tpu.memory_space<vmem>>, vector<1x128xf32>
    %9 = vector.broadcast %8 : vector<1x128xf32> to vector<144x128xf32>
    %10 = arith.addf %7, %9 : vector<144x128xf32>
    %cst_9 = arith.constant 0.000000e+00 : f32
    %11 = vector.broadcast %cst_9 : f32 to vector<144x128xf32>
    %12 = arith.maximumf %10, %11 : vector<144x128xf32>
    %13 = vector.shape_cast %12 : vector<144x128xf32> to vector<8x18x128xf32>
    %14 = arith.truncf %13 : vector<8x18x128xf32> to vector<8x18x128xbf16>
    %c0_10 = arith.constant 0 : index
    %c0_11 = arith.constant 0 : index
    %c0_12 = arith.constant 0 : index
    %15 = vector.load %arg11[%c0_10, %c0_11, %c0_12] : memref<10x18x128xbf16, #tpu.memory_space<vmem>>, vector<8x18x128xbf16>
    tpu.vector_store %arg11[%c0_10, %c0_11, %c0_12], %14 {strides = array<i32>} : memref<10x18x128xbf16, #tpu.memory_space<vmem>>, vector<8x18x128xbf16>,
    %c0_13 = arith.constant 0 : index
    %c0_14 = arith.constant 0 : index
    %c0_15 = arith.constant 0 : index
    %c0_16 = arith.constant 0 : index
    %16 = vector.load %arg3[%c0_13, %c0_14, %c0_15, %c0_16] : memref<1x2x18x36xbf16, #tpu.memory_space<vmem>>, vector<1x2x18x36xbf16>
    %17 = vector.shape_cast %16 : vector<1x2x18x36xbf16> to vector<2x18x36xbf16>
    %18 = vector.shape_cast %17 : vector<2x18x36xbf16> to vector<36x36xbf16>
    %c0_17 = arith.constant 0 : index
    %c0_18 = arith.constant 0 : index
    %19 = vector.load %arg4[%c0_17, %c0_18] : memref<36x128xbf16, #tpu.memory_space<vmem>>, vector<36x128xbf16>
    %cst_19 = arith.constant dense<0.000000e+00> : vector<36x128xf32>
    %20 = tpu.matmul %18, %19, %cst_19 {dimension_numbers = #tpu.dot_dimension_numbers<[1], [0], [0], [1], [0, 0, 1, 1], [], []>} : vector<36x36xbf16>, vector<36x128xbf16>, vector<36x128xf32> -> vector<36x128xf32>
    %c0_20 = arith.constant 0 : index
    %c0_21 = arith.constant 0 : index
    %21 = vector.load %arg5[%c0_20, %c0_21] : memref<1x128xf32, #tpu.memory_space<vmem>>, vector<1x128xf32>
    %22 = vector.broadcast %21 : vector<1x128xf32> to vector<36x128xf32>
    %23 = arith.mulf %20, %22 : vector<36x128xf32>
    %c0_22 = arith.constant 0 : index
    %c0_23 = arith.constant 0 : index
    %24 = vector.load %arg6[%c0_22, %c0_23] : memref<1x128xf32, #tpu.memory_space<vmem>>, vector<1x128xf32>
    %25 = vector.broadcast %24 : vector<1x128xf32> to vector<36x128xf32>
    %26 = arith.addf %23, %25 : vector<36x128xf32>
    %cst_24 = arith.constant 0.000000e+00 : f32
    %27 = vector.broadcast %cst_24 : f32 to vector<36x128xf32>
    %28 = arith.maximumf %26, %27 : vector<36x128xf32>
    %29 = vector.shape_cast %28 : vector<36x128xf32> to vector<2x18x128xf32>
    %30 = arith.truncf %29 : vector<2x18x128xf32> to vector<2x18x128xbf16>
    %c8 = arith.constant 8 : index
    %c0_25 = arith.constant 0 : index
    %c0_26 = arith.constant 0 : index
    %31 = vector.load %arg11[%c8, %c0_25, %c0_26] : memref<10x18x128xbf16, #tpu.memory_space<vmem>>, vector<2x18x128xbf16>
    tpu.vector_store %arg11[%c8, %c0_25, %c0_26], %30 {strides = array<i32>} : memref<10x18x128xbf16, #tpu.memory_space<vmem>>, vector<2x18x128xbf16>,
    %cst_27 = arith.constant 0.000000e+00 : bf16
    %32 = vector.broadcast %cst_27 : bf16 to vector<10x1x128xbf16>
    %c0_28 = arith.constant 0 : index
    %c0_29 = arith.constant 0 : index
    %c0_30 = arith.constant 0 : index
    %33 = vector.load %arg11[%c0_28, %c0_29, %c0_30] : memref<10x18x128xbf16, #tpu.memory_space<vmem>>, vector<10x1x128xbf16>
    tpu.vector_store %arg11[%c0_28, %c0_29, %c0_30], %32 {strides = array<i32>} : memref<10x18x128xbf16, #tpu.memory_space<vmem>>, vector<10x1x128xbf16>,
    %c0_31 = arith.constant 0 : index
    %c17 = arith.constant 17 : index
    %c0_32 = arith.constant 0 : index
    %34 = vector.load %arg11[%c0_31, %c17, %c0_32] : memref<10x18x128xbf16, #tpu.memory_space<vmem>>, vector<10x1x128xbf16>
    tpu.vector_store %arg11[%c0_31, %c17, %c0_32], %32 {strides = array<i32>} : memref<10x18x128xbf16, #tpu.memory_space<vmem>>, vector<10x1x128xbf16>,
    %c0_i32 = arith.constant 0 : i32
    %35 = arith.cmpi eq, %arg1, %c0_i32 : i32
    %36 = arith.extui %35 : i1 to i32
    %c0_i32_33 = arith.constant 0 : i32
    %37 = arith.cmpi ne, %36, %c0_i32_33 : i32
    scf.if %37 {
      %cst_83 = arith.constant 0.000000e+00 : bf16
      %82 = vector.broadcast %cst_83 : bf16 to vector<1x18x128xbf16>
      %c0_84 = arith.constant 0 : index
      %c0_85 = arith.constant 0 : index
      %c0_86 = arith.constant 0 : index
      %83 = vector.load %arg11[%c0_84, %c0_85, %c0_86] : memref<10x18x128xbf16, #tpu.memory_space<vmem>>, vector<1x18x128xbf16>
      tpu.vector_store %arg11[%c0_84, %c0_85, %c0_86], %82 {strides = array<i32>} : memref<10x18x128xbf16, #tpu.memory_space<vmem>>, vector<1x18x128xbf16>,
    } else {
    }
    %c1_i32 = arith.constant 1 : i32
    %38 = arith.cmpi eq, %arg1, %c1_i32 : i32
    %39 = arith.extui %38 : i1 to i32
    %c0_i32_34 = arith.constant 0 : i32
    %40 = arith.cmpi ne, %39, %c0_i32_34 : i32
    scf.if %40 {
      %cst_83 = arith.constant 0.000000e+00 : bf16
      %82 = vector.broadcast %cst_83 : bf16 to vector<1x18x128xbf16>
      %c9 = arith.constant 9 : index
      %c0_84 = arith.constant 0 : index
      %c0_85 = arith.constant 0 : index
      %83 = vector.load %arg11[%c9, %c0_84, %c0_85] : memref<10x18x128xbf16, #tpu.memory_space<vmem>>, vector<1x18x128xbf16>
      tpu.vector_store %arg11[%c9, %c0_84, %c0_85], %82 {strides = array<i32>} : memref<10x18x128xbf16, #tpu.memory_space<vmem>>, vector<1x18x128xbf16>,
    } else {
    }
    %c0_35 = arith.constant 0 : index
    %c0_36 = arith.constant 0 : index
    %c0_37 = arith.constant 0 : index
    %41 = vector.load %arg11[%c0_35, %c0_36, %c0_37] : memref<10x18x128xbf16, #tpu.memory_space<vmem>>, vector<8x16x128xbf16>
    %42 = vector.shape_cast %41 : vector<8x16x128xbf16> to vector<128x128xbf16>
    %c0_38 = arith.constant 0 : index
    %c0_39 = arith.constant 0 : index
    %43 = vector.load %arg12[%c0_38, %c0_39] : memref<128x1152xbf16, #tpu.memory_space<vmem>>, vector<128x128xbf16>
    tpu.vector_store %arg12[%c0_38, %c0_39], %42 {strides = array<i32>} : memref<128x1152xbf16, #tpu.memory_space<vmem>>, vector<128x128xbf16>,
    %c0_40 = arith.constant 0 : index
    %c1 = arith.constant 1 : index
    %c0_41 = arith.constant 0 : index
    %44 = vector.load %arg11[%c0_40, %c1, %c0_41] : memref<10x18x128xbf16, #tpu.memory_space<vmem>>, vector<8x16x128xbf16>
    %45 = vector.shape_cast %44 : vector<8x16x128xbf16> to vector<128x128xbf16>
    %c0_42 = arith.constant 0 : index
    %c128 = arith.constant 128 : index
    %46 = vector.load %arg12[%c0_42, %c128] : memref<128x1152xbf16, #tpu.memory_space<vmem>>, vector<128x128xbf16>
    tpu.vector_store %arg12[%c0_42, %c128], %45 {strides = array<i32>} : memref<128x1152xbf16, #tpu.memory_space<vmem>>, vector<128x128xbf16>,
    %c0_43 = arith.constant 0 : index
    %c2 = arith.constant 2 : index
    %c0_44 = arith.constant 0 : index
    %47 = vector.load %arg11[%c0_43, %c2, %c0_44] : memref<10x18x128xbf16, #tpu.memory_space<vmem>>, vector<8x16x128xbf16>
    %48 = vector.shape_cast %47 : vector<8x16x128xbf16> to vector<128x128xbf16>
    %c0_45 = arith.constant 0 : index
    %c256 = arith.constant 256 : index
    %49 = vector.load %arg12[%c0_45, %c256] : memref<128x1152xbf16, #tpu.memory_space<vmem>>, vector<128x128xbf16>
    tpu.vector_store %arg12[%c0_45, %c256], %48 {strides = array<i32>} : memref<128x1152xbf16, #tpu.memory_space<vmem>>, vector<128x128xbf16>,
    %c1_46 = arith.constant 1 : index
    %c0_47 = arith.constant 0 : index
    %c0_48 = arith.constant 0 : index
    %50 = vector.load %arg11[%c1_46, %c0_47, %c0_48] : memref<10x18x128xbf16, #tpu.memory_space<vmem>>, vector<8x16x128xbf16>
    %51 = vector.shape_cast %50 : vector<8x16x128xbf16> to vector<128x128xbf16>
    %c0_49 = arith.constant 0 : index
    %c384 = arith.constant 384 : index
    %52 = vector.load %arg12[%c0_49, %c384] : memref<128x1152xbf16, #tpu.memory_space<vmem>>, vector<128x128xbf16>
    tpu.vector_store %arg12[%c0_49, %c384], %51 {strides = array<i32>} : memref<128x1152xbf16, #tpu.memory_space<vmem>>, vector<128x128xbf16>,
    %c1_50 = arith.constant 1 : index
    %c1_51 = arith.constant 1 : index
    %c0_52 = arith.constant 0 : index
    %53 = vector.load %arg11[%c1_50, %c1_51, %c0_52] : memref<10x18x128xbf16, #tpu.memory_space<vmem>>, vector<8x16x128xbf16>
    %54 = vector.shape_cast %53 : vector<8x16x128xbf16> to vector<128x128xbf16>
    %c0_53 = arith.constant 0 : index
    %c512 = arith.constant 512 : index
    %55 = vector.load %arg12[%c0_53, %c512] : memref<128x1152xbf16, #tpu.memory_space<vmem>>, vector<128x128xbf16>
    tpu.vector_store %arg12[%c0_53, %c512], %54 {strides = array<i32>} : memref<128x1152xbf16, #tpu.memory_space<vmem>>, vector<128x128xbf16>,
    %c1_54 = arith.constant 1 : index
    %c2_55 = arith.constant 2 : index
    %c0_56 = arith.constant 0 : index
    %56 = vector.load %arg11[%c1_54, %c2_55, %c0_56] : memref<10x18x128xbf16, #tpu.memory_space<vmem>>, vector<8x16x128xbf16>
    %57 = vector.shape_cast %56 : vector<8x16x128xbf16> to vector<128x128xbf16>
    %c0_57 = arith.constant 0 : index
    %c640 = arith.constant 640 : index
    %58 = vector.load %arg12[%c0_57, %c640] : memref<128x1152xbf16, #tpu.memory_space<vmem>>, vector<128x128xbf16>
    tpu.vector_store %arg12[%c0_57, %c640], %57 {strides = array<i32>} : memref<128x1152xbf16, #tpu.memory_space<vmem>>, vector<128x128xbf16>,
    %c2_58 = arith.constant 2 : index
    %c0_59 = arith.constant 0 : index
    %c0_60 = arith.constant 0 : index
    %59 = vector.load %arg11[%c2_58, %c0_59, %c0_60] : memref<10x18x128xbf16, #tpu.memory_space<vmem>>, vector<8x16x128xbf16>
    %60 = vector.shape_cast %59 : vector<8x16x128xbf16> to vector<128x128xbf16>
    %c0_61 = arith.constant 0 : index
    %c768 = arith.constant 768 : index
    %61 = vector.load %arg12[%c0_61, %c768] : memref<128x1152xbf16, #tpu.memory_space<vmem>>, vector<128x128xbf16>
    tpu.vector_store %arg12[%c0_61, %c768], %60 {strides = array<i32>} : memref<128x1152xbf16, #tpu.memory_space<vmem>>, vector<128x128xbf16>,
    %c2_62 = arith.constant 2 : index
    %c1_63 = arith.constant 1 : index
    %c0_64 = arith.constant 0 : index
    %62 = vector.load %arg11[%c2_62, %c1_63, %c0_64] : memref<10x18x128xbf16, #tpu.memory_space<vmem>>, vector<8x16x128xbf16>
    %63 = vector.shape_cast %62 : vector<8x16x128xbf16> to vector<128x128xbf16>
    %c0_65 = arith.constant 0 : index
    %c896 = arith.constant 896 : index
    %64 = vector.load %arg12[%c0_65, %c896] : memref<128x1152xbf16, #tpu.memory_space<vmem>>, vector<128x128xbf16>
    tpu.vector_store %arg12[%c0_65, %c896], %63 {strides = array<i32>} : memref<128x1152xbf16, #tpu.memory_space<vmem>>, vector<128x128xbf16>,
    %c2_66 = arith.constant 2 : index
    %c2_67 = arith.constant 2 : index
    %c0_68 = arith.constant 0 : index
    %65 = vector.load %arg11[%c2_66, %c2_67, %c0_68] : memref<10x18x128xbf16, #tpu.memory_space<vmem>>, vector<8x16x128xbf16>
    %66 = vector.shape_cast %65 : vector<8x16x128xbf16> to vector<128x128xbf16>
    %c0_69 = arith.constant 0 : index
    %c1024 = arith.constant 1024 : index
    %67 = vector.load %arg12[%c0_69, %c1024] : memref<128x1152xbf16, #tpu.memory_space<vmem>>, vector<128x128xbf16>
    tpu.vector_store %arg12[%c0_69, %c1024], %66 {strides = array<i32>} : memref<128x1152xbf16, #tpu.memory_space<vmem>>, vector<128x128xbf16>,
    %c0_70 = arith.constant 0 : index
    %c0_71 = arith.constant 0 : index
    %68 = vector.load %arg12[%c0_70, %c0_71] : memref<128x1152xbf16, #tpu.memory_space<vmem>>, vector<128x1152xbf16>
    %c0_72 = arith.constant 0 : index
    %c0_73 = arith.constant 0 : index
    %69 = vector.load %arg7[%c0_72, %c0_73] : memref<1152x128xbf16, #tpu.memory_space<vmem>>, vector<1152x128xbf16>
    %cst_74 = arith.constant dense<0.000000e+00> : vector<128x128xf32>
    %70 = tpu.matmul %68, %69, %cst_74 {dimension_numbers = #tpu.dot_dimension_numbers<[1], [0], [0], [1], [0, 0, 1, 1], [], []>} : vector<128x1152xbf16>, vector<1152x128xbf16>, vector<128x128xf32> -> vector<128x128xf32>
    %c0_75 = arith.constant 0 : index
    %c0_76 = arith.constant 0 : index
    %71 = vector.load %arg8[%c0_75, %c0_76] : memref<1x128xf32, #tpu.memory_space<vmem>>, vector<1x128xf32>
    %72 = vector.broadcast %71 : vector<1x128xf32> to vector<128x128xf32>
    %73 = arith.mulf %70, %72 : vector<128x128xf32>
    %c0_77 = arith.constant 0 : index
    %c0_78 = arith.constant 0 : index
    %74 = vector.load %arg9[%c0_77, %c0_78] : memref<1x128xf32, #tpu.memory_space<vmem>>, vector<1x128xf32>
    %75 = vector.broadcast %74 : vector<1x128xf32> to vector<128x128xf32>
    %76 = arith.addf %73, %75 : vector<128x128xf32>
    %77 = vector.shape_cast %76 : vector<128x128xf32> to vector<8x16x128xf32>
    %78 = arith.truncf %77 : vector<8x16x128xf32> to vector<8x16x128xbf16>
    %c0_79 = arith.constant 0 : index
    %c0_80 = arith.constant 0 : index
    %c0_81 = arith.constant 0 : index
    %c0_82 = arith.constant 0 : index
    %79 = vector.load %arg10[%c0_79, %c0_80, %c0_81, %c0_82] : memref<1x8x16x128xbf16, #tpu.memory_space<vmem>>, vector<1x8x16x128xbf16>
    %80 = vector.shape_cast %79 : vector<1x8x16x128xbf16> to vector<8x16x128xbf16>
    %81 = vector.shape_cast %78 : vector<8x16x128xbf16> to vector<1x8x16x128xbf16>
    tpu.vector_store %arg10[%c0_79, %c0_80, %c0_81, %c0_82], %81 {strides = array<i32>} : memref<1x8x16x128xbf16, #tpu.memory_space<vmem>>, vector<1x8x16x128xbf16>,
    return
  }
  func.func @transform_0(%arg0: i32, %arg1: i32) -> (i32, i32, i32, i32) {
    %c0_i32 = arith.constant 0 : i32
    %c0_i32_0 = arith.constant 0 : i32
    %c0_i32_1 = arith.constant 0 : i32
    return %arg0, %arg1, %c0_i32, %c0_i32_0 : i32, i32, i32, i32
  }
  func.func @transform_1(%arg0: i32, %arg1: i32) -> (i32, i32, i32, i32) {
    %c1_i32 = arith.constant 1 : i32
    %0 = arith.addi %arg1, %c1_i32 : i32
    %c4_i32 = arith.constant 4 : i32
    %1 = arith.muli %0, %c4_i32 : i32
    %c0_i32 = arith.constant 0 : i32
    %c0_i32_0 = arith.constant 0 : i32
    %c0_i32_1 = arith.constant 0 : i32
    return %arg0, %1, %c0_i32, %c0_i32_0 : i32, i32, i32, i32
  }
  func.func @transform_2(%arg0: i32, %arg1: i32) -> (i32, i32) {
    %c0_i32 = arith.constant 0 : i32
    %c0_i32_0 = arith.constant 0 : i32
    %c0_i32_1 = arith.constant 0 : i32
    return %c0_i32, %c0_i32_0 : i32, i32
  }
  func.func @transform_3(%arg0: i32, %arg1: i32) -> (i32, i32) {
    %c0_i32 = arith.constant 0 : i32
    %c0_i32_0 = arith.constant 0 : i32
    %c0_i32_1 = arith.constant 0 : i32
    return %c0_i32, %c0_i32_0 : i32, i32
  }
  func.func @transform_4(%arg0: i32, %arg1: i32) -> (i32, i32) {
    %c0_i32 = arith.constant 0 : i32
    %c0_i32_0 = arith.constant 0 : i32
    %c0_i32_1 = arith.constant 0 : i32
    return %c0_i32, %c0_i32_0 : i32, i32
  }
  func.func @transform_5(%arg0: i32, %arg1: i32) -> (i32, i32) {
    %c0_i32 = arith.constant 0 : i32
    %c0_i32_0 = arith.constant 0 : i32
    %c0_i32_1 = arith.constant 0 : i32
    return %c0_i32, %c0_i32_0 : i32, i32
  }
  func.func @transform_6(%arg0: i32, %arg1: i32) -> (i32, i32) {
    %c0_i32 = arith.constant 0 : i32
    %c0_i32_0 = arith.constant 0 : i32
    %c0_i32_1 = arith.constant 0 : i32
    return %c0_i32, %c0_i32_0 : i32, i32
  }
  func.func @transform_7(%arg0: i32, %arg1: i32) -> (i32, i32) {
    %c0_i32 = arith.constant 0 : i32
    %c0_i32_0 = arith.constant 0 : i32
    %c0_i32_1 = arith.constant 0 : i32
    return %c0_i32, %c0_i32_0 : i32, i32
  }
  func.func @transform_8(%arg0: i32, %arg1: i32) -> (i32, i32, i32, i32) {
    %c0_i32 = arith.constant 0 : i32
    %c0_i32_0 = arith.constant 0 : i32
    %c0_i32_1 = arith.constant 0 : i32
    return %arg0, %arg1, %c0_i32, %c0_i32_0 : i32, i32, i32, i32
  }
}

</mosaic_0001>

<bundles_post_ra>
// kernel: _double_conv_impl.1
= control target key start
LH: loop header
LB: loop body
LE: loop exit
PB: predicated region body
PF: predicated region fallthrough
CT: control target
= control target key end

     0   :  { %s5540_s27 = smov 0   ;;  %s5542_s28 = smov 0   ;;  %s6541_s0 = inlined_call_operand.vmem [shape: bf16[2,18,18,36], index: 0, kind: input, shape index: {}, may-alias: {0,1}]   ;;  %s6542_s1 = inlined_call_operand.vmem [shape: bf16[2,18,18,36], index: 1, kind: input, shape index: {}, may-alias: {0,1}]   ;;  %s6543_s2 = inlined_call_operand.vmem [shape: bf16[36,128], index: 2, kind: input, shape index: {}]   ;;  %s6544_s3 = inlined_call_operand.vmem [shape: f32[1,128], index: 3, kind: input, shape index: {}]   ;;  %s6545_s4 = inlined_call_operand.vmem [shape: f32[1,128], index: 4, kind: input, shape index: {}]   ;;  %s6546_s5 = inlined_call_operand.vmem [shape: bf16[1152,128], index: 5, kind: input, shape index: {}]   ;;  %s6547_s6 = inlined_call_operand.vmem [shape: f32[1,128], index: 6, kind: input, shape index: {}]   ;;  %s6548_s7 = inlined_call_operand.vmem [shape: f32[1,128], index: 7, kind: input, shape index: {}]   ;;  %s6549_s8 = inlined_call_operand.vmem [shape: bf16[2,16,16,128], index: 8, kind: output, shape index: {}]  }
   0x1   :  { %s5544_s29 = smov 0   ;;  %s5546_s30 = smov 0  }
   0x2   :  { %s5548_s9 = smov 0  }
   0x3 LB: > { %s27_s10 = sadd.s32 1, %s5483_s29  ;;  %s30_s11 = sadd.s32 1, %s5487_s30  ;;  %s5491_s9 = sphi %s5548_s9, %s18_s9   ;;  %s5487_s30 = sphi %s5546_s30, %s6564_s30   ;;  %s5483_s29 = sphi %s5544_s29, %s6563_s29   ;;  %s5479_s28 = sphi %s5542_s28, %s6562_s28   ;;  %s5475_s27 = sphi %s5540_s27, %s6561_s27  }
   0x4   : > { %p28_p0 = scmp.ge.s32.totalorder %s27_s10, 2  ;;  %p4517_p1 = scmp.ge.s32.totalorder %s5491_s9, 1 }
   0x5   : > { %p320_p2 = scmp.lt.s32.totalorder %s5491_s9, 5 }
   0x6   : > { %s6566_s10 = smov (%p28_p0, %s27_s10), 0  ;;  %s6568_s11 = smov (!%p28_p0, %s30_s11), %s5487_s30 }
   0x7   : > { %p321_p3 = pnand %p4517_p1, %p320_p2  ;;  %p32_p4 = scmp.ge.s32.totalorder %s6568_s11, 2 }
   0x8   : > { %s5576_s14 = sshll.u32 (!%p321_p3), %s5475_s27, 3  ;;  %p387_p5 = scmp.lt.s32.totalorder (!%p321_p3), %s5479_s28, 1 }
   0x9   : > { %s6570_s11 = smov (%p32_p4, %s6568_s11), 0  ;;  %324 = sbr.rel (%p321_p3) target bundleno = 1034 (0x40a), region = 52 }
   0xa   : > { %6550 = sst [smem:[#allocation4_spill]] %s6570_s11  ;;  %p389_p6 = scmp.lt.s32.totalorder (!%p321_p3), %s5576_s14, 17 }
   0xb   : > { %p420_p7 = scmp.lt.s32.totalorder (!%p321_p3), %s5576_s14, 15  ;;  %s5380_s26 = sadd.s32 (!%p321_p3), 8, %s5576_s14 }
   0xc   : > { %p5782_p8 = scmp.lt.s32.totalorder (!%p321_p3), %s5380_s26, 17  ;;  %p4555_p9 = scmp.ne.s32.totalorder (!%p321_p3), %s5475_s27, 0 }
   0xe   : > { %v725_v0 = vld [vmem:[%s6543_s2 + $0x10] sm:$0x3]  ;;  %vm896_vm0 = vcmask 1041408   ;;  %s6572_s28 = smov (!%p387_p5, %s5479_s28), 1  ;;  %v5167_v4 = vld [vmem:[%s6543_s2 + $0x8] sm:$0xff]  ;;  %v5166_v5 = vld [vmem:[%s6543_s2] sm:$0xff] }
   0xf   : > { %v871_v1 = vunpack.c.l.b16 %v725_v0  ;;  %s390_s15 = scalar_select %p389_p6, %s5576_s14, 17  ;;  %vm501_vm1 = vcmask 1040384   ;;  %vm505_vm2 = vcmask 1041409   ;;  %vm509_vm3 = vcmask 1042434  }
  0x10   : > { %s5403_s16 = smul.u32 54, %s6572_s28  ;;  %s4525_s20 = sshll.u32 %s6572_s28, 5  ;;  %vm513_vm4 = vcmask 1043459   ;;  %vm877_vm5 = vcmask 293888   ;;  %vm1519_vm6 = vsmask.f32 256 }
  0x11   : > { %v874_v2 = vpack.c.b16 %v871_v1, %v871_v1  ;;  %s5402_s19 = smul.u32 3, %s390_s15  ;;  %vm5731_vm7 = vmand %vm501_vm1, %vm1519_vm6  ;;  %vm1551_vm8 = vsmask.f32 7938  ;;  %s6574_s26 = smov (!%p5782_p8, %s5380_s26), 17 }
  0x12   : > { %s421_s21 = scalar_select %p420_p7, %s5576_s14, 15  ;;  %vm5739_vm9 = vmand %vm501_vm1, %vm1551_vm8 }
  0x13   : > { %v898_v3 = vsel %vm896_vm0, %v874_v2, 0  ;;  %s393_s22 = sadd.s32 %s5403_s16, %s5402_s19  ;;  %s5404_s18 = smul.u32 3, %s6574_s26 }
  0x14   : > { %905 = vmatpush.bf16.msra.mxu0 %v898_v3  ;;  %5391 = vmatpush.bf16.msra.mxu1 %v898_v3  ;;  %s4519_s23 = sshll.u32 %s393_s22, 2  ;;  %s4524_s24 = sshll.u32 %s421_s21, 1 }
  0x15   : > { %s5598_s11 = scalar_lea.vmem %s6541_s0, %s4519_s23  ;;  %s424_s15 = sadd.s32 %s4525_s20, %s4524_s24 }
  0x16   : > { %s4526_s17 = sshll.u32 %s424_s15, 2  ;;  %v429_v6 = vld [vmem:[%s5598_s11] sm:$0xf]  ;;  %v430_v7 = vld [vmem:[%s5598_s11 + $0x4] sm:$0xf]  ;;  %s411_s19 = sadd.s32 %s5404_s18, %s5403_s16 }
  0x17   : > { %s5605_s21 = scalar_lea.vmem %s6549_s8, %s4526_s17  ;;  %v477_v8 = vrot.slane %v429_v6, 3  ;;  %v478_v9 = vrot.slane %v430_v7, 3  ;;  %v432_v24 = vld [vmem:[%s5598_s11 + $0xc] sm:$0xf]  ;;  %v431_v25 = vld [vmem:[%s5598_s11 + $0x8] sm:$0x1] }
  0x18   : > { %906 = vmatpush.bf16.msra.mxu0 %v5167_v4  ;;  %5392 = vmatpush.bf16.msra.mxu1 %v5167_v4  ;;  %v480_v26 = vrot.slane %v432_v24, 3  ;;  %v433_v27 = vld [vmem:[%s5598_s11 + $0x10] sm:$0xf]  ;;  %v479_v28 = vrot.slane %v431_v25, 3  ;;  %v435_v44 = vld [vmem:[%s5598_s11 + $0x18] sm:$0xf] }
  0x19   : > { %v504_v10 = vsel %vm501_vm1, %v429_v6, %v477_v8  ;;  %v506_v11 = vsel %vm505_vm2, %v429_v6, %v477_v8  ;;  %v510_v12 = vsel %vm509_vm3, %v429_v6, %v477_v8  ;;  %v514_v13 = vsel %vm513_vm4, %v429_v6, %v477_v8  ;;  %v434_v45 = vld [vmem:[%s5598_s11 + $0x14] sm:$0x1]  ;;  %v436_v47 = vld [vmem:[%s5598_s11 + $0x1c] sm:$0xf]  ;;  %v438_v0 = vld [vmem:[%s5598_s11 + $0x24] sm:$0xf] }
  0x1a   : > { %v508_v14 = vrot.slane %v506_v11, 1  ;;  %v512_v15 = vrot.slane %v510_v12, 2  ;;  %v516_v16 = vrot.slane %v514_v13, 3  ;;  %v519_v17 = vsel %vm501_vm1, %v430_v7, %v478_v9  ;;  %726 = vst [vmem:[#allocation1] ss:$9 sm:$0xff] %v504_v10 }
  0x1b   : > { %v520_v18 = vsel %vm505_vm2, %v430_v7, %v478_v9  ;;  %v523_v19 = vsel %vm509_vm3, %v430_v7, %v478_v9  ;;  %v526_v20 = vsel %vm513_vm4, %v430_v7, %v478_v9  ;;  %737 = vst [vmem:[#allocation1 + $0x4] ss:$9 sm:$0xff] %v519_v17  ;;  %v481_v29 = vrot.slane %v433_v27, 3  ;;  %v437_v1 = vld [vmem:[%s5598_s11 + $0x20] sm:$0x1] }
  0x1c   : > { %907 = vmatpush.bf16.msra.mxu0 %v5166_v5  ;;  %5393 = vmatpush.bf16.msra.mxu1 %v5166_v5  ;;  %v522_v21 = vrot.slane %v520_v18, 1  ;;  %v525_v22 = vrot.slane %v523_v19, 2  ;;  %729 = vst [vmem:[#allocation1 + $0x1] ss:$9 sm:$0xff] %v508_v14  ;;  %v528_v23 = vrot.slane %v526_v20, 3  ;;  %v535_v30 = vsel %vm505_vm2, %v432_v24, %v480_v26 }
  0x1d   : > { %732 = vst [vmem:[#allocation1 + $0x2] ss:$9 sm:$0xff] %v512_v15  ;;  %v538_v31 = vsel %vm509_vm3, %v432_v24, %v480_v26  ;;  %v531_v32 = vsel %vm501_vm1, %v431_v25, %v479_v28  ;;  %v541_v33 = vsel %vm513_vm4, %v432_v24, %v480_v26  ;;  %v534_v34 = vsel %vm501_vm1, %v432_v24, %v480_v26  ;;  %v439_v7 = vld [vmem:[%s5598_s11 + $0x28] sm:$0xf]  ;;  %v441_v20 = vld [vmem:[%s5598_s11 + $0x30] sm:$0xf] }
  0x1e   : > { %735 = vst [vmem:[#allocation1 + $0x3] ss:$9 sm:$0xff] %v516_v16  ;;  %v537_v35 = vrot.slane %v535_v30, 1  ;;  %v540_v37 = vrot.slane %v538_v31, 2  ;;  %v547_v38 = vsel %vm505_vm2, %v433_v27, %v481_v29  ;;  %v543_v39 = vrot.slane %v541_v33, 3 }
  0x1f   : > { %740 = vst [vmem:[#allocation1 + $0x5] ss:$9 sm:$0xff] %v522_v21  ;;  %v550_v40 = vsel %vm509_vm3, %v433_v27, %v481_v29  ;;  %v546_v41 = vsel %vm501_vm1, %v433_v27, %v481_v29  ;;  %v549_v42 = vrot.slane %v547_v38, 1  ;;  %v483_v46 = vrot.slane %v435_v44, 3  ;;  %v440_v21 = vld [vmem:[%s5598_s11 + $0x2c] sm:$0x1] }
  0x20   : > { %743 = vst [vmem:[#allocation1 + $0x6] ss:$9 sm:$0xff] %v525_v22  ;;  %v552_v43 = vrot.slane %v550_v40, 2  ;;  %v553_v48 = vsel %vm513_vm4, %v433_v27, %v481_v29  ;;  %v482_v49 = vrot.slane %v434_v45, 3  ;;  %v484_v50 = vrot.slane %v436_v47, 3 }
  0x21   : > { %746 = vst [vmem:[#allocation1 + $0x7] ss:$9 sm:$0xff] %v528_v23  ;;  %v555_v51 = vrot.slane %v553_v48, 3  ;;  %v562_v52 = vsel %vm505_vm2, %v435_v44, %v483_v46  ;;  %v565_v53 = vsel %vm509_vm3, %v435_v44, %v483_v46  ;;  %v568_v55 = vsel %vm513_vm4, %v435_v44, %v483_v46  ;;  %v442_v38 = vld [vmem:[%s5598_s11 + $0x34] sm:$0xf] }
  0x22   : > { %v558_v54 = vsel %vm501_vm1, %v434_v45, %v482_v49  ;;  %v561_v57 = vsel %vm501_vm1, %v435_v44, %v483_v46  ;;  %v564_v58 = vrot.slane %v562_v52, 1  ;;  %v567_v59 = vrot.slane %v565_v53, 2 }
  0x23   : > { %v574_v60 = vsel %vm505_vm2, %v436_v47, %v484_v50  ;;  %v570_v61 = vrot.slane %v568_v55, 3  ;;  %v573_v62 = vsel %vm501_vm1, %v436_v47, %v484_v50  ;;  %v486_v2 = vrot.slane %v438_v0, 3 }
  0x24   : > { %v576_v63 = vrot.slane %v574_v60, 1  ;;  %v577_v3 = vsel %vm509_vm3, %v436_v47, %v484_v50  ;;  %v580_v4 = vsel %vm513_vm4, %v436_v47, %v484_v50  ;;  %v485_v5 = vrot.slane %v437_v1, 3 }
  0x25   : > { %v579_v6 = vrot.slane %v577_v3, 2  ;;  %v582_v8 = vrot.slane %v580_v4, 3  ;;  %v589_v9 = vsel %vm505_vm2, %v438_v0, %v486_v2  ;;  %v592_v10 = vsel %vm509_vm3, %v438_v0, %v486_v2 }
  0x26   : > { %v585_v12 = vsel %vm501_vm1, %v437_v1, %v485_v5  ;;  %v595_v13 = vsel %vm513_vm4, %v438_v0, %v486_v2  ;;  %v487_v14 = vrot.slane %v439_v7, 3  ;;  %v588_v15 = vsel %vm501_vm1, %v438_v0, %v486_v2 }
  0x27   : > { %v591_v16 = vrot.slane %v589_v9, 1  ;;  %v594_v17 = vrot.slane %v592_v10, 2  ;;  %v597_v18 = vrot.slane %v595_v13, 3  ;;  %v489_v23 = vrot.slane %v441_v20, 3 }
  0x28   : > { %v747_v36 = vld [vmem:[#allocation1] sm:$0xff]  ;;  %v600_v19 = vsel %vm501_vm1, %v439_v7, %v487_v14  ;;  %v601_v22 = vsel %vm505_vm2, %v439_v7, %v487_v14  ;;  %v604_v24 = vsel %vm509_vm3, %v439_v7, %v487_v14  ;;  %v607_v25 = vsel %vm513_vm4, %v439_v7, %v487_v14 }
  0x29   : > { %4535 = vmatmul.msk.bf16.vlgmr.msra.gmra.mxu0 %vm877_vm5, %v747_v36  ;;  %748 = vst [vmem:[#allocation1] ss:$9 sm:$0xff] %v531_v32  ;;  %v488_v26 = vrot.slane %v440_v21, 3  ;;  %v603_v27 = vrot.slane %v601_v22, 1  ;;  %v606_v28 = vrot.slane %v604_v24, 2  ;;  %v609_v29 = vrot.slane %v607_v25, 3 }
  0x2a   : > { %749 = vst [vmem:[#allocation1 + $0x1] ss:$9 sm:$0xff] %v534_v34  ;;  %v616_v30 = vsel %vm505_vm2, %v441_v20, %v489_v23  ;;  %v619_v32 = vsel %vm509_vm3, %v441_v20, %v489_v23  ;;  %v622_v34 = vsel %vm513_vm4, %v441_v20, %v489_v23  ;;  %v490_v40 = vrot.slane %v442_v38, 3  ;;  %v450_v22 = vld [vmem:[%s5598_s11 + $0x54] sm:$0xf] }
  0x2b   : > { %751 = vst [vmem:[#allocation1 + $0x2] ss:$9 sm:$0xff] %v537_v35  ;;  %v612_v33 = vsel %vm501_vm1, %v440_v21, %v488_v26  ;;  %v615_v35 = vsel %vm501_vm1, %v441_v20, %v489_v23  ;;  %v618_v36 = vrot.slane %v616_v30, 1  ;;  %v498_v30 = vrot.slane %v450_v22, 3 }
  0x2c   : > { %753 = vst [vmem:[#allocation1 + $0x3] ss:$9 sm:$0xff] %v540_v37  ;;  %v621_v37 = vrot.slane %v619_v32, 2  ;;  %v631_v45 = vsel %vm509_vm3, %v442_v38, %v490_v40  ;;  %v634_v46 = vsel %vm513_vm4, %v442_v38, %v490_v40  ;;  %v627_v48 = vsel %vm501_vm1, %v442_v38, %v490_v40 }
  0x2d   : > { %755 = vst [vmem:[#allocation1 + $0x4] ss:$9 sm:$0xff] %v543_v39  ;;  %v624_v39 = vrot.slane %v622_v34, 3  ;;  %v633_v50 = vrot.slane %v631_v45, 2  ;;  %v636_v52 = vrot.slane %v634_v46, 3  ;;  %v696_v34 = vsel %vm501_vm1, %v450_v22, %v498_v30 }
  0x2e   : > { %756 = vst [vmem:[#allocation1 + $0x5] ss:$9 sm:$0xff] %v546_v41  ;;  %v444_v41 = vld [vmem:[%s5598_s11 + $0x3c] sm:$0xf] }
  0x2f   : > { %758 = vst [vmem:[#allocation1 + $0x6] ss:$9 sm:$0xff] %v549_v42  ;;  %v443_v42 = vld [vmem:[%s5598_s11 + $0x38] sm:$0x1]  ;;  %v492_v44 = vrot.slane %v444_v41, 3 }
  0x30   : > { %760 = vst [vmem:[#allocation1 + $0x7] ss:$9 sm:$0xff] %v552_v43  ;;  %v628_v43 = vsel %vm505_vm2, %v442_v38, %v490_v40  ;;  %v491_v47 = vrot.slane %v443_v42, 3  ;;  %v700_v38 = vsel %vm509_vm3, %v450_v22, %v498_v30 }
  0x31   : > { %v630_v49 = vrot.slane %v628_v43, 1  ;;  %v643_v53 = vsel %vm505_vm2, %v444_v41, %v492_v44 }
  0x32   : > { %v639_v55 = vsel %vm501_vm1, %v443_v42, %v491_v47  ;;  %v702_v42 = vrot.slane %v700_v38, 2 }
  0x37   : > { %v761_v56 = vld [vmem:[#allocation1] sm:$0xff] }
  0x38   : > { %763 = vst [vmem:[#allocation1] ss:$9 sm:$0xff] %v555_v51 }
  0x39   : > { %4536 = vmatmul.msk.bf16.gmra.mxu0 %vm877_vm5, %v761_v56  ;;  %764 = vst [vmem:[#allocation1 + $0x1] ss:$9 sm:$0xff] %v558_v54  ;;  %v646_v54 = vsel %vm509_vm3, %v444_v41, %v492_v44  ;;  %v642_v56 = vsel %vm501_vm1, %v444_v41, %v492_v44 }
  0x3a   : > { %765 = vst [vmem:[#allocation1 + $0x2] ss:$9 sm:$0xff] %v561_v57  ;;  %v645_v57 = vrot.slane %v643_v53, 1 }
  0x3b   : > { %767 = vst [vmem:[#allocation1 + $0x3] ss:$9 sm:$0xff] %v564_v58  ;;  %v445_v58 = vld [vmem:[%s5598_s11 + $0x40] sm:$0xf] }
  0x3c   : > { %769 = vst [vmem:[#allocation1 + $0x4] ss:$9 sm:$0xff] %v567_v59  ;;  %v648_v59 = vrot.slane %v646_v54, 2  ;;  %v493_v60 = vrot.slane %v445_v58, 3 }
  0x3d   : > { %771 = vst [vmem:[#allocation1 + $0x5] ss:$9 sm:$0xff] %v570_v61  ;;  %v447_v61 = vld [vmem:[%s5598_s11 + $0x48] sm:$0xf] }
  0x3e   : > { %772 = vst [vmem:[#allocation1 + $0x6] ss:$9 sm:$0xff] %v573_v62  ;;  %v649_v62 = vsel %vm513_vm4, %v444_v41, %v492_v44  ;;  %v655_v0 = vsel %vm505_vm2, %v445_v58, %v493_v60  ;;  %v495_v1 = vrot.slane %v447_v61, 3  ;;  %v658_v3 = vsel %vm509_vm3, %v445_v58, %v493_v60  ;;  %v452_v41 = vld [vmem:[%s5598_s11 + $0x5c] sm:$0x1] }
  0x3f   : > { %774 = vst [vmem:[#allocation1 + $0x7] ss:$9 sm:$0xff] %v576_v63  ;;  %v446_v63 = vld [vmem:[%s5598_s11 + $0x44] sm:$0x1]  ;;  %v651_v2 = vrot.slane %v649_v62, 3  ;;  %v661_v4 = vsel %vm513_vm4, %v445_v58, %v493_v60  ;;  %v657_v7 = vrot.slane %v655_v0, 1 }
  0x40   : > { %v494_v5 = vrot.slane %v446_v63, 3  ;;  %v663_v10 = vrot.slane %v661_v4, 3  ;;  %v669_v13 = vsel %vm501_vm1, %v447_v61, %v495_v1 }
  0x46   : > { %v775_v11 = vld [vmem:[#allocation1] sm:$0xff] }
  0x47   : > { %777 = vst [vmem:[#allocation1] ss:$9 sm:$0xff] %v579_v6  ;;  %v654_v6 = vsel %vm501_vm1, %v445_v58, %v493_v60 }
  0x48   : > { %779 = vst [vmem:[#allocation1 + $0x1] ss:$9 sm:$0xff] %v582_v8  ;;  %v660_v8 = vrot.slane %v658_v3, 2 }
  0x49   : > { %4537 = vmatmul.msk.bf16.gmra.mxu0 %vm877_vm5, %v775_v11  ;;  %780 = vst [vmem:[#allocation1 + $0x2] ss:$9 sm:$0xff] %v585_v12  ;;  %v670_v11 = vsel %vm505_vm2, %v447_v61, %v495_v1  ;;  %v666_v12 = vsel %vm501_vm1, %v446_v63, %v494_v5 }
  0x4a   : > { %781 = vst [vmem:[#allocation1 + $0x3] ss:$9 sm:$0xff] %v588_v15  ;;  %v672_v14 = vrot.slane %v670_v11, 1  ;;  %v448_v15 = vld [vmem:[%s5598_s11 + $0x4c] sm:$0xf] }
  0x4b   : > { %783 = vst [vmem:[#allocation1 + $0x4] ss:$9 sm:$0xff] %v591_v16  ;;  %v496_v16 = vrot.slane %v448_v15, 3 }
  0x4c   : > { %785 = vst [vmem:[#allocation1 + $0x5] ss:$9 sm:$0xff] %v594_v17  ;;  %v673_v17 = vsel %vm509_vm3, %v447_v61, %v495_v1 }
  0x4d   : > { %787 = vst [vmem:[#allocation1 + $0x6] ss:$9 sm:$0xff] %v597_v18  ;;  %v676_v18 = vsel %vm513_vm4, %v447_v61, %v495_v1  ;;  %v675_v20 = vrot.slane %v673_v17, 2  ;;  %v682_v21 = vsel %vm505_vm2, %v448_v15, %v496_v16  ;;  %v685_v24 = vsel %vm509_vm3, %v448_v15, %v496_v16 }
  0x4e   : > { %788 = vst [vmem:[#allocation1 + $0x7] ss:$9 sm:$0xff] %v600_v19  ;;  %v449_v19 = vld [vmem:[%s5598_s11 + $0x50] sm:$0x1]  ;;  %v678_v23 = vrot.slane %v676_v18, 3  ;;  %v688_v25 = vsel %vm513_vm4, %v448_v15, %v496_v16 }
  0x4f   : > { %v690_v32 = vrot.slane %v688_v25, 3 }
  0x55   : > { %v789_v31 = vld [vmem:[#allocation1] sm:$0xff] }
  0x56   : > { %791 = vst [vmem:[#allocation1] ss:$9 sm:$0xff] %v603_v27  ;;  %v497_v27 = vrot.slane %v449_v19, 3 }
  0x57   : > { %793 = vst [vmem:[#allocation1 + $0x1] ss:$9 sm:$0xff] %v606_v28  ;;  %v681_v28 = vsel %vm501_vm1, %v448_v15, %v496_v16 }
  0x58   : > { %795 = vst [vmem:[#allocation1 + $0x2] ss:$9 sm:$0xff] %v609_v29  ;;  %v684_v29 = vrot.slane %v682_v21, 1 }
  0x59   : > { %4538 = vmatmul.msk.bf16.gmra.mxu0 %vm877_vm5, %v789_v31  ;;  %796 = vst [vmem:[#allocation1 + $0x3] ss:$9 sm:$0xff] %v612_v33  ;;  %v687_v31 = vrot.slane %v685_v24, 2  ;;  %v693_v33 = vsel %vm501_vm1, %v449_v19, %v497_v27 }
  0x5a   : > { %797 = vst [vmem:[#allocation1 + $0x4] ss:$9 sm:$0xff] %v615_v35  ;;  %v451_v35 = vld [vmem:[%s5598_s11 + $0x58] sm:$0xf]  ;;  %s4522_s11 = sshll.u32 %s411_s19, 2 }
  0x5b   : > { %799 = vst [vmem:[#allocation1 + $0x5] ss:$9 sm:$0xff] %v618_v36  ;;  %v499_v36 = vrot.slane %v451_v35, 3  ;;  %s5808_s20 = scalar_lea.vmem %s6542_s1, %s4522_s11 }
  0x5c   : > { %801 = vst [vmem:[#allocation1 + $0x6] ss:$9 sm:$0xff] %v621_v37  ;;  %v697_v37 = vsel %vm505_vm2, %v450_v22, %v498_v30 }
  0x5d   : > { %803 = vst [vmem:[#allocation1 + $0x7] ss:$9 sm:$0xff] %v624_v39  ;;  %v703_v39 = vsel %vm513_vm4, %v450_v22, %v498_v30  ;;  %v699_v40 = vrot.slane %v697_v37, 1  ;;  %v709_v43 = vsel %vm505_vm2, %v451_v35, %v499_v36  ;;  %v712_v45 = vsel %vm509_vm3, %v451_v35, %v499_v36 }
  0x5e   : > { %v705_v44 = vrot.slane %v703_v39, 3  ;;  %v715_v47 = vsel %vm513_vm4, %v451_v35, %v499_v36 }
  0x64   : > { %v804_v51 = vld [vmem:[#allocation1] sm:$0xff] }
  0x65   : > { %805 = vst [vmem:[#allocation1] ss:$9 sm:$0xff] %v627_v48  ;;  %v500_v48 = vrot.slane %v452_v41, 3 }
  0x66   : > { %807 = vst [vmem:[#allocation1 + $0x1] ss:$9 sm:$0xff] %v630_v49  ;;  %v708_v49 = vsel %vm501_vm1, %v451_v35, %v499_v36 }
  0x67   : > { %809 = vst [vmem:[#allocation1 + $0x2] ss:$9 sm:$0xff] %v633_v50  ;;  %v711_v50 = vrot.slane %v709_v43, 1  ;;  %v720_v53 = vsel %vm501_vm1, %v452_v41, %v500_v48 }
  0x68   : > { %811 = vst [vmem:[#allocation1 + $0x3] ss:$9 sm:$0xff] %v636_v52  ;;  %v717_v52 = vrot.slane %v715_v47, 3 }
  0x69   : > { %4539 = vmatmul.msk.bf16.gmra.mxu0 %vm877_vm5, %v804_v51  ;;  %812 = vst [vmem:[#allocation1 + $0x4] ss:$9 sm:$0xff] %v639_v55  ;;  %v714_v51 = vrot.slane %v712_v45, 2  ;;  %v5713_v55 = vld [vmem:[%s6544_s3] ss:$0 sm:$0xff] }
  0x6a   : > { %813 = vst [vmem:[#allocation1 + $0x5] ss:$9 sm:$0xff] %v642_v56  ;;  %v5718_v56 = vld [vmem:[%s6545_s4] ss:$0 sm:$0xff] }
  0x6b   : > { %815 = vst [vmem:[#allocation1 + $0x6] ss:$9 sm:$0xff] %v645_v57 }
  0x6c   : > { %817 = vst [vmem:[#allocation1 + $0x7] ss:$9 sm:$0xff] %v648_v59 }
  0x73   : > { %v818_v9 = vld [vmem:[#allocation1] sm:$0xff] }
  0x74   : > { %820 = vst [vmem:[#allocation1] ss:$9 sm:$0xff] %v651_v2 }
  0x75   : > { %821 = vst [vmem:[#allocation1 + $0x1] ss:$9 sm:$0xff] %v654_v6 }
  0x76   : > { %823 = vst [vmem:[#allocation1 + $0x2] ss:$9 sm:$0xff] %v657_v7 }
  0x77   : > { %825 = vst [vmem:[#allocation1 + $0x3] ss:$9 sm:$0xff] %v660_v8 }
  0x78   : > { %827 = vst [vmem:[#allocation1 + $0x4] ss:$9 sm:$0xff] %v663_v10 }
  0x79   : > { %828 = vst [vmem:[#allocation1 + $0x5] ss:$9 sm:$0xff] %v666_v12  ;;  %4540 = vmatmul.msk.bf16.gmra.mxu0 %vm877_vm5, %v818_v9 }
  0x7a   : > { %829 = vst [vmem:[#allocation1 + $0x6] ss:$9 sm:$0xff] %v669_v13 }
  0x7b   : > { %831 = vst [vmem:[#allocation1 + $0x7] ss:$9 sm:$0xff] %v672_v14 }
  0x82   : > { %v832_v26 = vld [vmem:[#allocation1] sm:$0xff] }
  0x83   : > { %4541 = vmatmul.msk.bf16.vlgmr.msra.gmra.mxu1 %vm877_vm5, %v832_v26  ;;  %834 = vst [vmem:[#allocation1] ss:$9 sm:$0xff] %v675_v20 }
  0x84   : > { %836 = vst [vmem:[#allocation1 + $0x1] ss:$9 sm:$0xff] %v678_v23 }
  0x85   : > { %837 = vst [vmem:[#allocation1 + $0x2] ss:$9 sm:$0xff] %v681_v28 }
  0x86   : > { %839 = vst [vmem:[#allocation1 + $0x3] ss:$9 sm:$0xff] %v684_v29 }
  0x87   : > { %841 = vst [vmem:[#allocation1 + $0x4] ss:$9 sm:$0xff] %v687_v31 }
  0x88   : > { %843 = vst [vmem:[#allocation1 + $0x5] ss:$9 sm:$0xff] %v690_v32 }
  0x89   : > { %844 = vst [vmem:[#allocation1 + $0x6] ss:$9 sm:$0xff] %v693_v33 }
  0x8a   : > { %845 = vst [vmem:[#allocation1 + $0x7] ss:$9 sm:$0xff] %v696_v34 }
  0x91   : > { %v846_v46 = vld [vmem:[#allocation1] sm:$0xff] }
  0x92   : > { %848 = vst [vmem:[#allocation1] ss:$9 sm:$0xff] %v699_v40 }
  0x93   : > { %4542 = vmatmul.msk.bf16.gmra.mxu1 %vm877_vm5, %v846_v46  ;;  %850 = vst [vmem:[#allocation1 + $0x1] ss:$9 sm:$0xff] %v702_v42 }
  0x94   : > { %852 = vst [vmem:[#allocation1 + $0x2] ss:$9 sm:$0xff] %v705_v44 }
  0x95   : > { %853 = vst [vmem:[#allocation1 + $0x3] ss:$9 sm:$0xff] %v708_v49 }
  0x96   : > { %855 = vst [vmem:[#allocation1 + $0x4] ss:$9 sm:$0xff] %v711_v50 }
  0x97   : > { %857 = vst [vmem:[#allocation1 + $0x5] ss:$9 sm:$0xff] %v714_v51 }
  0x98   : > { %859 = vst [vmem:[#allocation1 + $0x6] ss:$9 sm:$0xff] %v717_v52 }
  0x99   : > { %860 = vst [vmem:[#allocation1 + $0x7] ss:$9 sm:$0xff] %v720_v53 }
  0xa0   : > { %v861_v54 = vld [vmem:[#allocation1] sm:$0xff] }
  0xa3   : > { %4543 = vmatmul.msk.bf16.gmra.mxu1 %vm877_vm5, %v861_v54 }
  0xa6   : > { %v909_v57 = vpop.f32.mrf.mxu0 }
  0xa7   : > { %v958_v58 = vmul.f32 %v5713_v55, %v909_v57 }
  0xa9   : > { %v980_v59 = vadd.f32 %v5718_v56, %v958_v58 }
  0xab   : > { %v998_v60 = vmax.f32 %v980_v59, 0.0 }
  0xad   : > { %v1034_v61 = vrot.slane %v998_v60, 2  ;;  %v1035_v62 = vrot.slane %v998_v60, 4  ;;  %v1036_v63 = vrot.slane %v998_v60, 6  ;;  %1088 = vst [vmem:[#allocation1] ss:$4 sm:$0xff] %v998_v60 }
  0xae   : > { %v911_v0 = vpop.f32.mrf.mxu0 }
  0xaf   : > { %1090 = vst [vmem:[#allocation1 + $0x1] ss:$4 sm:$0xff] %v1034_v61  ;;  %v959_v1 = vmul.f32 %v5713_v55, %v911_v0 }
  0xb0   : > { %1092 = vst [vmem:[#allocation1 + $0x2] ss:$4 sm:$0xff] %v1035_v62 }
  0xb1   : > { %1094 = vst [vmem:[#allocation1 + $0x3] ss:$4 sm:$0xff] %v1036_v63  ;;  %v981_v2 = vadd.f32 %v5718_v56, %v959_v1 }
  0xb3   : > { %v999_v3 = vmax.f32 %v981_v2, 0.0 }
  0xb5   : > { %v1037_v4 = vrot.slane %v999_v3, 2  ;;  %v1038_v5 = vrot.slane %v999_v3, 4  ;;  %v1039_v6 = vrot.slane %v999_v3, 6  ;;  %1096 = vst [vmem:[#allocation1 + $0x20] ss:$4 sm:$0xff] %v999_v3 }
  0xb6   : > { %v914_v7 = vpop.f32.mrf.mxu0 }
  0xb7   : > { %1098 = vst [vmem:[#allocation1 + $0x21] ss:$4 sm:$0xff] %v1037_v4  ;;  %v960_v8 = vmul.f32 %v5713_v55, %v914_v7 }
  0xb8   : > { %1100 = vst [vmem:[#allocation1 + $0x22] ss:$4 sm:$0xff] %v1038_v5  ;;  %v1103_v11 = vld.sshfl [vmem:[#allocation1] sm:$0xff pattern:$0x73625140] }
  0xb9   : > { %1102 = vst [vmem:[#allocation1 + $0x23] ss:$4 sm:$0xff] %v1039_v6  ;;  %v982_v9 = vadd.f32 %v5718_v56, %v960_v8 }
  0xbb   : > { %v1000_v10 = vmax.f32 %v982_v9, 0.0 }
  0xbd   : > { %v1040_v12 = vrot.slane %v1000_v10, 2  ;;  %1105 = vst [vmem:[#allocation1] ss:$4 sm:$0xff] %v1000_v10  ;;  %v1041_v13 = vrot.slane %v1000_v10, 4  ;;  %v1042_v15 = vrot.slane %v1000_v10, 6 }
  0xbe   : > { %v916_v14 = vpop.f32.mrf.mxu0 }
  0xbf   : > { %v961_v16 = vmul.f32 %v5713_v55, %v916_v14 }
  0xc0   : > { %v1104_v17 = vld.sshfl [vmem:[#allocation1 + $0x20] sm:$0xff pattern:$0x73625140] }
  0xc1   : > { %1107 = vst [vmem:[#allocation1 + $0x20] ss:$4 sm:$0xff] %v1040_v12  ;;  %v983_v18 = vadd.f32 %v5718_v56, %v961_v16  ;;  %v5317_v19 = vpack.c.bf16 %v1104_v17, %v1103_v11 }
  0xc2   : > { %1108 = vst [vmem:[#allocation1 + $0x21] ss:$4 sm:$0xff] %v1041_v13 }
  0xc3   : > { %1109 = vst [vmem:[#allocation1 + $0x22] ss:$4 sm:$0xff] %v1042_v15  ;;  %v1001_v20 = vmax.f32 %v983_v18, 0.0 }
  0xc4   : > { %v1106_v21 = vld.sshfl [vmem:[#allocation1] sm:$0xff pattern:$0x73625140]  ;;  %5318 = vst [vmem:[#allocation2] sm:$0xff] %v5317_v19  }
  0xc5   : > { %v1043_v22 = vrot.slane %v1001_v20, 2  ;;  %v1044_v23 = vrot.slane %v1001_v20, 4  ;;  %v1045_v24 = vrot.slane %v1001_v20, 6  ;;  %1110 = vst [vmem:[#allocation1 + $0x23] ss:$4 sm:$0xff] %v1001_v20  ;;  %v1217_v26 = vpack.c.bf16 %v1106_v21, %v1106_v21 }
  0xc6   : > { %v919_v25 = vpop.f32.mrf.mxu0 }
  0xc7   : > { %1112 = vst [vmem:[#allocation1] ss:$4 sm:$0xff] %v1043_v22  ;;  %v962_v27 = vmul.f32 %v5713_v55, %v919_v25 }
  0xc8   : > { %1113 = vst [vmem:[#allocation1 + $0x1] ss:$4 sm:$0xff] %v1044_v23 }
  0xc9   : > { %1114 = vst [vmem:[#allocation1 + $0x2] ss:$4 sm:$0xff] %v1045_v24  ;;  %v984_v28 = vadd.f32 %v5718_v56, %v962_v27 }
  0xca   : > { %1241 = vst [vmem:[#allocation2 + $0x8] sm:$0x1] %v1217_v26 }
  0xcb   : > { %v1002_v30 = vmax.f32 %v984_v28, 0.0  ;;  %v1521_v31 = vld [vmem:[#allocation2] sm:$0x1] }
  0xcc   : > { %v1111_v32 = vld.sshfl [vmem:[#allocation1 + $0x20] sm:$0xff pattern:$0x73625140]  ;;  %v1522_v33 = vsel %vm5731_vm7, 0, %v1521_v31 }
  0xcd   : > { %v1046_v34 = vrot.slane %v1002_v30, 2  ;;  %1115 = vst [vmem:[#allocation1 + $0x3] ss:$4 sm:$0xff] %v1002_v30  ;;  %v1218_v35 = vpack.c.bf16 %v1111_v32, %v1111_v32  ;;  %v1047_v42 = vrot.slane %v1002_v30, 4  ;;  %v1048_v44 = vrot.slane %v1002_v30, 6 }
  0xce   : > { %v921_v36 = vpop.f32.mrf.mxu0  ;;  %1523 = vst [vmem:[#allocation2] sm:$0x1] %v1522_v33 }
  0xcf   : > { %1116 = vst [vmem:[#allocation1 + $0x20] ss:$4 sm:$0xff] %v1046_v34  ;;  %v963_v37 = vmul.f32 %v5713_v55, %v921_v36 }
  0xd0   : > { %1242 = vst [vmem:[#allocation2 + $0xc] sm:$0xf] %v1218_v35 }
  0xd1   : > { %v985_v39 = vadd.f32 %v5718_v56, %v963_v37  ;;  %v1553_v40 = vld [vmem:[#allocation2 + $0x8] sm:$0x1] }
  0xd2   : > { %v1554_v41 = vsel %vm5739_vm9, 0, %v1553_v40 }
  0xd3   : > { %v1003_v43 = vmax.f32 %v985_v39, 0.0  ;;  %1555 = vst [vmem:[#allocation2 + $0x8] sm:$0x1] %v1554_v41 }
  0xd4   : > { %v1117_v45 = vld.sshfl [vmem:[#allocation1] sm:$0xff pattern:$0x73625140] }
  0xd5   : > { %1119 = vst [vmem:[#allocation1] ss:$4 sm:$0xff] %v1047_v42  ;;  %v1049_v46 = vrot.slane %v1003_v43, 2  ;;  %v1050_v47 = vrot.slane %v1003_v43, 4  ;;  %v1051_v49 = vrot.slane %v1003_v43, 6  ;;  %v1219_v52 = vpack.c.bf16 %v1117_v45, %v1117_v45 }
  0xd6   : > { %v1118_v48 = vld.sshfl [vmem:[#allocation1 + $0x20] sm:$0xff pattern:$0x73625140]  ;;  %1120 = vst [vmem:[#allocation1 + $0x1] ss:$4 sm:$0xff] %v1048_v44  ;;  %v924_v50 = vpop.f32.mrf.mxu0 }
  0xd7   : > { %1121 = vst [vmem:[#allocation1 + $0x2] ss:$4 sm:$0xff] %v1003_v43  ;;  %v964_v51 = vmul.f32 %v5713_v55, %v924_v50  ;;  %v1524_v53 = vld [vmem:[#allocation2 + $0xc] sm:$0x1]  ;;  %v1220_v58 = vpack.c.bf16 %v1118_v48, %v1118_v48 }
  0xd8   : > { %1122 = vst [vmem:[#allocation1 + $0x3] ss:$4 sm:$0xff] %v1049_v46  ;;  %v1525_v57 = vsel %vm5731_vm7, 0, %v1524_v53 }
  0xd9   : > { %1123 = vst [vmem:[#allocation1 + $0x20] ss:$4 sm:$0xff] %v1050_v47  ;;  %v986_v54 = vadd.f32 %v5718_v56, %v964_v51 }
  0xda   : > { %1124 = vst [vmem:[#allocation1 + $0x21] ss:$4 sm:$0xff] %v1051_v49 }
  0xdb   : > { %v1004_v59 = vmax.f32 %v986_v54, 0.0  ;;  %1243 = vst [vmem:[#allocation2 + $0x10] sm:$0xf] %v1219_v52 }
  0xdc   : > { %1526 = vst [vmem:[#allocation2 + $0xc] sm:$0x1] %v1525_v57 }
  0xdd   : > { %v1052_v60 = vrot.slane %v1004_v59, 2  ;;  %v1053_v61 = vrot.slane %v1004_v59, 4  ;;  %1125 = vst [vmem:[#allocation1 + $0x22] ss:$4 sm:$0xff] %v1004_v59  ;;  %v1054_v3 = vrot.slane %v1004_v59, 6 }
  0xde   : > { %v926_v62 = vpop.f32.mrf.mxu0  ;;  %1244 = vst [vmem:[#allocation2 + $0x14] sm:$0x1] %v1220_v58 }
  0xdf   : > { %v1127_v63 = vld.sshfl [vmem:[#allocation1] sm:$0xff pattern:$0x73625140]  ;;  %1126 = vst [vmem:[#allocation1 + $0x23] ss:$4 sm:$0xff] %v1052_v60  ;;  %v965_v0 = vmul.f32 %v5713_v55, %v926_v62 }
  0xe0   : > { %1129 = vst [vmem:[#allocation1] ss:$4 sm:$0xff] %v1053_v61 }
  0xe1   : > { %v987_v1 = vadd.f32 %v5718_v56, %v965_v0 }
  0xe3   : > { %v1005_v2 = vmax.f32 %v987_v1, 0.0 }
  0xe5   : > { %v1055_v4 = vrot.slane %v1005_v2, 2  ;;  %v1056_v6 = vrot.slane %v1005_v2, 4  ;;  %v1057_v9 = vrot.slane %v1005_v2, 6  ;;  %v1556_v15 = vld [vmem:[#allocation2 + $0x14] sm:$0x1] }
  0xe6   : > { %v1128_v5 = vld.sshfl [vmem:[#allocation1 + $0x20] sm:$0xff pattern:$0x73625140]  ;;  %v929_v7 = vpop.f32.mrf.mxu0  ;;  %v1557_v20 = vsel %vm5739_vm9, 0, %v1556_v15 }
  0xe7   : > { %v1130_v8 = vld.sshfl [vmem:[#allocation1] sm:$0xff pattern:$0x73625140]  ;;  %1131 = vst [vmem:[#allocation1 + $0x20] ss:$4 sm:$0xff] %v1054_v3  ;;  %v966_v10 = vmul.f32 %v5713_v55, %v929_v7  ;;  %v5322_v11 = vpack.c.bf16 %v1128_v5, %v1127_v63 }
  0xe8   : > { %1132 = vst [vmem:[#allocation1 + $0x21] ss:$4 sm:$0xff] %v1005_v2  ;;  %v1223_v13 = vpack.c.bf16 %v1130_v8, %v1130_v8  ;;  %v1339_v3 = vld [vmem:[%s6543_s2 + $0x10] sm:$0x3] }
  0xe9   : > { %1133 = vst [vmem:[#allocation1 + $0x22] ss:$4 sm:$0xff] %v1055_v4  ;;  %v988_v12 = vadd.f32 %v5718_v56, %v966_v10 }
  0xea   : > { %1134 = vst [vmem:[#allocation1 + $0x23] ss:$4 sm:$0xff] %v1056_v6  ;;  %v1389_v6 = vunpack.c.l.b16 %v1339_v3 }
  0xeb   : > { %1136 = vst [vmem:[#allocation1] ss:$4 sm:$0xff] %v1057_v9  ;;  %v1006_v14 = vmax.f32 %v988_v12, 0.0 }
  0xec   : > { %5381 = vst [vmem:[#allocation2 + $0x18] sm:$0xff] %v5322_v11   ;;  %v1392_v11 = vpack.c.b16 %v1389_v6, %v1389_v6 }
  0xed   : > { %v1058_v16 = vrot.slane %v1006_v14, 2  ;;  %v1059_v17 = vrot.slane %v1006_v14, 4  ;;  %1137 = vst [vmem:[#allocation1 + $0x1] ss:$4 sm:$0xff] %v1006_v14  ;;  %v1060_v18 = vrot.slane %v1006_v14, 6 }
  0xee   : > { %v931_v19 = vpop.f32.mrf.mxu0  ;;  %1247 = vst [vmem:[#allocation2 + $0x20] sm:$0x1] %v1223_v13  ;;  %v1402_v14 = vsel %vm896_vm0, %v1392_v11, 0 }
  0xef   : > { %1138 = vst [vmem:[#allocation1 + $0x2] ss:$4 sm:$0xff] %v1058_v16  ;;  %v967_v21 = vmul.f32 %v5713_v55, %v931_v19  ;;  %1409 = vmatpush.bf16.msrb.mxu1 %v1402_v14 }
  0xf0   : > { %1139 = vst [vmem:[#allocation1 + $0x3] ss:$4 sm:$0xff] %v1059_v17 }
  0xf1   : > { %v1135_v22 = vld.sshfl [vmem:[#allocation1 + $0x20] sm:$0xff pattern:$0x73625140]  ;;  %v989_v23 = vadd.f32 %v5718_v56, %v967_v21  ;;  %1558 = vst [vmem:[#allocation2 + $0x14] sm:$0x1] %v1557_v20 }
  0xf2   : > { %1140 = vst [vmem:[#allocation1 + $0x20] ss:$4 sm:$0xff] %v1060_v18  ;;  %v1224_v24 = vpack.c.bf16 %v1135_v22, %v1135_v22 }
  0xf3   : > { %v1007_v25 = vmax.f32 %v989_v23, 0.0  ;;  %v1527_v26 = vld [vmem:[#allocation2 + $0x18] sm:$0x1] }
  0xf4   : > { %1248 = vst [vmem:[#allocation2 + $0x24] sm:$0xf] %v1224_v24  ;;  %v1528_v27 = vsel %vm5731_vm7, 0, %v1527_v26 }
  0xf5   : > { %v1061_v28 = vrot.slane %v1007_v25, 2  ;;  %1529 = vst [vmem:[#allocation2 + $0x18] sm:$0x1] %v1528_v27  ;;  %v1062_v30 = vrot.slane %v1007_v25, 4  ;;  %v1063_v33 = vrot.slane %v1007_v25, 6 }
  0xf6   : > { %v934_v31 = vpop.f32.mrf.mxu0  ;;  %v1559_v42 = vld [vmem:[#allocation2 + $0x20] sm:$0x1] }
  0xf7   : > { %v1141_v32 = vld.sshfl [vmem:[#allocation1] sm:$0xff pattern:$0x73625140]  ;;  %v968_v34 = vmul.f32 %v5713_v55, %v934_v31  ;;  %v1560_v50 = vsel %vm5739_vm9, 0, %v1559_v42 }
  0xf8   : > { %1143 = vst [vmem:[#allocation1] ss:$4 sm:$0xff] %v1007_v25  ;;  %v1225_v35 = vpack.c.bf16 %v1141_v32, %v1141_v32 }
  0xf9   : > { %1144 = vst [vmem:[#allocation1 + $0x1] ss:$4 sm:$0xff] %v1061_v28  ;;  %v990_v36 = vadd.f32 %v5718_v56, %v968_v34  ;;  %v1142_v37 = vld.sshfl [vmem:[#allocation1 + $0x20] sm:$0xff pattern:$0x73625140] }
  0xfa   : > { %1145 = vst [vmem:[#allocation1 + $0x2] ss:$4 sm:$0xff] %v1062_v30  ;;  %v1226_v47 = vpack.c.bf16 %v1142_v37, %v1142_v37 }
  0xfb   : > { %1146 = vst [vmem:[#allocation1 + $0x3] ss:$4 sm:$0xff] %v1063_v33  ;;  %v1008_v39 = vmax.f32 %v990_v36, 0.0  ;;  %v1530_v40 = vld [vmem:[#allocation2 + $0x24] sm:$0x1] }
  0xfc   : > { %1249 = vst [vmem:[#allocation2 + $0x28] sm:$0xf] %v1225_v35  ;;  %v1531_v41 = vsel %vm5731_vm7, 0, %v1530_v40  ;;  %v5169_v35 = vld [vmem:[%s6543_s2 + $0x8] sm:$0xff] }
  0xfd   : > { %v1064_v43 = vrot.slane %v1008_v39, 2  ;;  %v1065_v44 = vrot.slane %v1008_v39, 4  ;;  %v1066_v45 = vrot.slane %v1008_v39, 6  ;;  %1147 = vst [vmem:[#allocation1 + $0x20] ss:$4 sm:$0xff] %v1008_v39  ;;  %1410 = vmatpush.bf16.msrb.mxu1 %v5169_v35  ;;  %v5168_v39 = vld [vmem:[%s6543_s2] sm:$0xff] }
  0xfe   : > { %v936_v46 = vpop.f32.mrf.mxu0  ;;  %1532 = vst [vmem:[#allocation2 + $0x24] sm:$0x1] %v1531_v41 }
  0xff   : > { %1148 = vst [vmem:[#allocation1 + $0x21] ss:$4 sm:$0xff] %v1064_v43  ;;  %v969_v48 = vmul.f32 %v5713_v55, %v936_v46 }
 0x100   : > { %v939_v49 = vpop.f32.mrf.mxu1  ;;  %1149 = vst [vmem:[#allocation1 + $0x22] ss:$4 sm:$0xff] %v1065_v44 }
 0x101   : > { %v970_v51 = vmul.f32 %v5713_v55, %v939_v49  ;;  %1150 = vst [vmem:[#allocation1 + $0x23] ss:$4 sm:$0xff] %v1066_v45  ;;  %v991_v52 = vadd.f32 %v5718_v56, %v969_v48  ;;  %1411 = vmatpush.bf16.msrb.mxu1 %v5168_v39  ;;  %v1266_v39 = vld [vmem:[%s5808_s20 + $0xc] sm:$0xf] }
 0x102   : > { %1250 = vst [vmem:[#allocation2 + $0x2c] sm:$0x1] %v1226_v47  ;;  %v1151_v57 = vld.sshfl [vmem:[#allocation1] sm:$0xff pattern:$0x73625140] }
 0x103   : > { %v992_v53 = vadd.f32 %v5718_v56, %v970_v51  ;;  %v1009_v54 = vmax.f32 %v991_v52, 0.0  ;;  %1561 = vst [vmem:[#allocation2 + $0x20] sm:$0x1] %v1560_v50 }
 0x105   : > { %1153 = vst [vmem:[#allocation1] ss:$4 sm:$0xff] %v1009_v54  ;;  %v1067_v58 = vrot.slane %v1009_v54, 2  ;;  %v1010_v59 = vmax.f32 %v992_v53, 0.0  ;;  %v1068_v60 = vrot.slane %v1009_v54, 4  ;;  %v1069_v63 = vrot.slane %v1009_v54, 6 }
 0x107   : > { %v1070_v1 = vrot.slane %v1010_v59, 2  ;;  %v1071_v4 = vrot.slane %v1010_v59, 4  ;;  %v1072_v7 = vrot.slane %v1010_v59, 6 }
 0x108   : > { %v1152_v61 = vld.sshfl [vmem:[#allocation1 + $0x20] sm:$0xff pattern:$0x73625140]  ;;  %v941_v62 = vpop.f32.mrf.mxu1 }
 0x109   : > { %1158 = vst [vmem:[#allocation1 + $0x23] ss:$4 sm:$0xff] %v1010_v59  ;;  %v971_v0 = vmul.f32 %v5713_v55, %v941_v62  ;;  %v5327_v8 = vpack.c.bf16 %v1152_v61, %v1151_v57  ;;  %v1562_v9 = vld [vmem:[#allocation2 + $0x2c] sm:$0x1] }
 0x10a   : > { %1155 = vst [vmem:[#allocation1 + $0x20] ss:$4 sm:$0xff] %v1067_v58  ;;  %v1563_v15 = vsel %vm5739_vm9, 0, %v1562_v9 }
 0x10b   : > { %v993_v2 = vadd.f32 %v5718_v56, %v971_v0  ;;  %1156 = vst [vmem:[#allocation1 + $0x21] ss:$4 sm:$0xff] %v1068_v60 }
 0x10c   : > { %v1154_v5 = vld.sshfl [vmem:[#allocation1] sm:$0xff pattern:$0x73625140]  ;;  %1157 = vst [vmem:[#allocation1 + $0x22] ss:$4 sm:$0xff] %v1069_v63 }
 0x10d   : > { %1160 = vst [vmem:[#allocation1] ss:$4 sm:$0xff] %v1070_v1  ;;  %v1011_v10 = vmax.f32 %v993_v2, 0.0  ;;  %v1229_v12 = vpack.c.bf16 %v1154_v5, %v1154_v5  ;;  %v1264_v5 = vld [vmem:[%s5808_s20 + $0x4] sm:$0xf] }
 0x10e   : > { %1161 = vst [vmem:[#allocation1 + $0x1] ss:$4 sm:$0xff] %v1071_v4 }
 0x10f   : > { %1162 = vst [vmem:[#allocation1 + $0x2] ss:$4 sm:$0xff] %v1072_v7  ;;  %v1073_v17 = vrot.slane %v1011_v10, 2  ;;  %v1074_v21 = vrot.slane %v1011_v10, 4  ;;  %v1075_v23 = vrot.slane %v1011_v10, 6 }
 0x110   : > { %1163 = vst [vmem:[#allocation1 + $0x3] ss:$4 sm:$0xff] %v1011_v10  ;;  %v944_v13 = vpop.f32.mrf.mxu1  ;;  %v1276_v10 = vrot.slane %v1264_v5, 3 }
 0x111   : > { %v972_v16 = vmul.f32 %v5713_v55, %v944_v13  ;;  %5382 = vst [vmem:[#allocation2 + $0x30] sm:$0xff] %v5327_v8  }
 0x112   : > { %1253 = vst [vmem:[#allocation2 + $0x38] sm:$0x1] %v1229_v12  ;;  %v1295_v14 = vsel %vm501_vm1, %v1264_v5, %v1276_v10 }
 0x113   : > { %v1159_v18 = vld.sshfl [vmem:[#allocation1 + $0x20] sm:$0xff pattern:$0x73625140]  ;;  %v994_v19 = vadd.f32 %v5718_v56, %v972_v16  ;;  %1564 = vst [vmem:[#allocation2 + $0x2c] sm:$0x1] %v1563_v15 }
 0x114   : > { %1164 = vst [vmem:[#allocation1 + $0x20] ss:$4 sm:$0xff] %v1073_v17  ;;  %v1230_v20 = vpack.c.bf16 %v1159_v18, %v1159_v18 }
 0x115   : > { %v1012_v22 = vmax.f32 %v994_v19, 0.0 }
 0x116   : > { %1254 = vst [vmem:[#allocation2 + $0x3c] sm:$0xf] %v1230_v20 }
 0x117   : > { %v1165_v24 = vld.sshfl [vmem:[#allocation1] sm:$0xff pattern:$0x73625140]  ;;  %v1076_v28 = vrot.slane %v1012_v22, 2  ;;  %v1077_v32 = vrot.slane %v1012_v22, 4  ;;  %v1078_v34 = vrot.slane %v1012_v22, 6 }
 0x118   : > { %v1231_v25 = vpack.c.bf16 %v1165_v24, %v1165_v24  ;;  %1167 = vst [vmem:[#allocation1] ss:$4 sm:$0xff] %v1074_v21  ;;  %v946_v26 = vpop.f32.mrf.mxu1  ;;  %v1533_v30 = vld [vmem:[#allocation2 + $0x30] sm:$0x1]  ;;  %v1296_v21 = vsel %vm505_vm2, %v1264_v5, %v1276_v10  ;;  %v1299_v24 = vsel %vm509_vm3, %v1264_v5, %v1276_v10 }
 0x119   : > { %1168 = vst [vmem:[#allocation1 + $0x1] ss:$4 sm:$0xff] %v1075_v23  ;;  %v973_v27 = vmul.f32 %v5713_v55, %v946_v26  ;;  %v1534_v37 = vsel %vm5731_vm7, 0, %v1533_v30  ;;  %v1565_v42 = vld [vmem:[#allocation2 + $0x38] sm:$0x1]  ;;  %v1302_v26 = vsel %vm513_vm4, %v1264_v5, %v1276_v10 }
 0x11a   : > { %1255 = vst [vmem:[#allocation2 + $0x40] sm:$0xf] %v1231_v25  ;;  %v1566_v46 = vsel %vm5739_vm9, 0, %v1565_v42  ;;  %v1278_v42 = vrot.slane %v1266_v39, 3 }
 0x11b   : > { %v1166_v31 = vld.sshfl [vmem:[#allocation1 + $0x20] sm:$0xff pattern:$0x73625140]  ;;  %1169 = vst [vmem:[#allocation1 + $0x2] ss:$4 sm:$0xff] %v1012_v22  ;;  %v995_v33 = vadd.f32 %v5718_v56, %v973_v27  ;;  %v1298_v27 = vrot.slane %v1296_v21, 1 }
 0x11c   : > { %1170 = vst [vmem:[#allocation1 + $0x3] ss:$4 sm:$0xff] %v1076_v28  ;;  %v1232_v40 = vpack.c.bf16 %v1166_v31, %v1166_v31  ;;  %v1301_v28 = vrot.slane %v1299_v24, 2  ;;  %v1267_v31 = vld [vmem:[%s5808_s20 + $0x10] sm:$0xf] }
 0x11d   : > { %1171 = vst [vmem:[#allocation1 + $0x20] ss:$4 sm:$0xff] %v1077_v32  ;;  %v1013_v36 = vmax.f32 %v995_v33, 0.0  ;;  %v1536_v59 = vld [vmem:[#allocation2 + $0x3c] sm:$0x1]  ;;  %v1304_v32 = vrot.slane %v1302_v26, 3 }
 0x11e   : > { %1172 = vst [vmem:[#allocation1 + $0x21] ss:$4 sm:$0xff] %v1078_v34  ;;  %v1265_v34 = vld [vmem:[%s5808_s20 + $0x8] sm:$0x1] }
 0x11f   : > { %v1079_v41 = vrot.slane %v1013_v36, 2  ;;  %1173 = vst [vmem:[#allocation1 + $0x22] ss:$4 sm:$0xff] %v1013_v36  ;;  %v1080_v45 = vrot.slane %v1013_v36, 4  ;;  %v1081_v50 = vrot.slane %v1013_v36, 6 }
 0x120   : > { %v949_v43 = vpop.f32.mrf.mxu1  ;;  %1535 = vst [vmem:[#allocation2 + $0x30] sm:$0x1] %v1534_v37  ;;  %v1279_v37 = vrot.slane %v1267_v31, 3 }
 0x121   : > { %1174 = vst [vmem:[#allocation1 + $0x23] ss:$4 sm:$0xff] %v1079_v41  ;;  %v974_v44 = vmul.f32 %v5713_v55, %v949_v43  ;;  %v1277_v41 = vrot.slane %v1265_v34, 3 }
 0x122   : > { %1256 = vst [vmem:[#allocation2 + $0x44] sm:$0x1] %v1232_v40  ;;  %v1323_v43 = vsel %vm505_vm2, %v1267_v31, %v1279_v37 }
 0x123   : > { %v1175_v47 = vld.sshfl [vmem:[#allocation1] sm:$0xff pattern:$0x73625140]  ;;  %v996_v48 = vadd.f32 %v5718_v56, %v974_v44  ;;  %1567 = vst [vmem:[#allocation2 + $0x38] sm:$0x1] %v1566_v46  ;;  %v1326_v44 = vsel %vm509_vm3, %v1267_v31, %v1279_v37  ;;  %v1322_v46 = vsel %vm501_vm1, %v1267_v31, %v1279_v37 }
 0x124   : > { %1177 = vst [vmem:[#allocation1] ss:$4 sm:$0xff] %v1080_v45  ;;  %v1307_v45 = vsel %vm501_vm1, %v1265_v34, %v1277_v41 }
 0x125   : > { %v1014_v49 = vmax.f32 %v996_v48, 0.0  ;;  %v1311_v48 = vsel %vm505_vm2, %v1266_v39, %v1278_v42 }
 0x127   : > { %v1082_v51 = vrot.slane %v1014_v49, 2  ;;  %v1083_v53 = vrot.slane %v1014_v49, 4  ;;  %v1084_v61 = vrot.slane %v1014_v49, 6 }
 0x128   : > { %v1176_v52 = vld.sshfl [vmem:[#allocation1 + $0x20] sm:$0xff pattern:$0x73625140]  ;;  %v951_v54 = vpop.f32.mrf.mxu1 }
 0x129   : > { %1179 = vst [vmem:[#allocation1 + $0x20] ss:$4 sm:$0xff] %v1081_v50  ;;  %v975_v57 = vmul.f32 %v5713_v55, %v951_v54  ;;  %v5332_v58 = vpack.c.bf16 %v1176_v52, %v1175_v47  ;;  %v1537_v55 = vsel %vm5731_vm7, 0, %v1536_v59  ;;  %v1568_v2 = vld [vmem:[#allocation2 + $0x44] sm:$0x1]  ;;  %v1325_v47 = vrot.slane %v1323_v43, 1 }
 0x12a   : > { %1180 = vst [vmem:[#allocation1 + $0x21] ss:$4 sm:$0xff] %v1014_v49  ;;  %v1569_v6 = vsel %vm5739_vm9, 0, %v1568_v2  ;;  %v1328_v49 = vrot.slane %v1326_v44, 2  ;;  %v1317_v52 = vsel %vm513_vm4, %v1266_v39, %v1278_v42  ;;  %v1313_v54 = vrot.slane %v1311_v48, 1 }
 0x12b   : > { %v1178_v60 = vld.sshfl [vmem:[#allocation1] sm:$0xff pattern:$0x73625140]  ;;  %1181 = vst [vmem:[#allocation1 + $0x22] ss:$4 sm:$0xff] %v1082_v51  ;;  %v997_v62 = vadd.f32 %v5718_v56, %v975_v57  ;;  %v1314_v51 = vsel %vm509_vm3, %v1266_v39, %v1278_v42  ;;  %v1319_v59 = vrot.slane %v1317_v52, 3 }
 0x12c   : > { %1182 = vst [vmem:[#allocation1 + $0x23] ss:$4 sm:$0xff] %v1083_v53  ;;  %v1235_v1 = vpack.c.bf16 %v1178_v60, %v1178_v60  ;;  %v1263_v56 = vld [vmem:[%s5808_s20] sm:$0xf]  ;;  %v1310_v53 = vsel %vm501_vm1, %v1266_v39, %v1278_v42  ;;  %v1316_v57 = vrot.slane %v1314_v51, 2 }
 0x12d   : > { %1184 = vst [vmem:[#allocation1] ss:$4 sm:$0xff] %v1084_v61  ;;  %v1015_v63 = vmax.f32 %v997_v62, 0.0  ;;  %v1275_v8 = vrot.slane %v1263_v56, 3  ;;  %v1268_v61 = vld [vmem:[%s5808_s20 + $0x14] sm:$0x1]  ;;  %v1329_v62 = vsel %vm513_vm4, %v1267_v31, %v1279_v37 }
 0x12e   : > { %5383 = vst [vmem:[#allocation2 + $0x48] sm:$0xff] %v5332_v58  }
 0x12f   : > { %v1085_v0 = vrot.slane %v1015_v63, 2  ;;  %1185 = vst [vmem:[#allocation1 + $0x1] ss:$4 sm:$0xff] %v1015_v63  ;;  %v1086_v3 = vrot.slane %v1015_v63, 4  ;;  %v1087_v4 = vrot.slane %v1015_v63, 6  ;;  %v1284_v13 = vsel %vm505_vm2, %v1263_v56, %v1275_v8 }
 0x130   : > { %1538 = vst [vmem:[#allocation2 + $0x3c] sm:$0x1] %v1537_v55  ;;  %v1287_v15 = vsel %vm509_vm3, %v1263_v56, %v1275_v8  ;;  %v1290_v17 = vsel %vm513_vm4, %v1263_v56, %v1275_v8  ;;  %v1283_v19 = vsel %vm501_vm1, %v1263_v56, %v1275_v8  ;;  %v1286_v20 = vrot.slane %v1284_v13, 1  ;;  %v5450_v56 = vld [vmem:[%s6545_s4] ss:$0 sm:$0xff] }
 0x131   : > { %1186 = vst [vmem:[#allocation1 + $0x2] ss:$4 sm:$0xff] %v1085_v0  ;;  %v1289_v23 = vrot.slane %v1287_v15, 2  ;;  %v1292_v25 = vrot.slane %v1290_v17, 3  ;;  %v1280_v63 = vrot.slane %v1268_v61, 3  ;;  %v1331_v55 = vrot.slane %v1329_v62, 3 }
 0x132   : > { %1187 = vst [vmem:[#allocation1 + $0x3] ss:$4 sm:$0xff] %v1086_v3  ;;  %v5449_v3 = vld [vmem:[%s6544_s3] ss:$0 sm:$0xff] }
 0x133   : > { %v1183_v7 = vld.sshfl [vmem:[#allocation1 + $0x20] sm:$0xff pattern:$0x73625140]  ;;  %1259 = vst [vmem:[#allocation2 + $0x50] sm:$0x1] %v1235_v1  ;;  %v1334_v0 = vsel %vm501_vm1, %v1268_v61, %v1280_v63 }
 0x134   : > { %1188 = vst [vmem:[#allocation1 + $0x20] ss:$4 sm:$0xff] %v1087_v4  ;;  %v1236_v9 = vpack.c.bf16 %v1183_v7, %v1183_v7 }
 0x135   : > { %v1539_v11 = vld [vmem:[#allocation2 + $0x48] sm:$0x1]  ;;  %1570 = vst [vmem:[#allocation2 + $0x44] sm:$0x1] %v1569_v6 }
 0x136   : > { %1260 = vst [vmem:[#allocation2 + $0x54] sm:$0xf] %v1236_v9  ;;  %v1540_v12 = vsel %vm5731_vm7, 0, %v1539_v11 }
 0x137   : > { %1541 = vst [vmem:[#allocation2 + $0x48] sm:$0x1] %v1540_v12 }
 0x139   : > { %v1189_v16 = vld.sshfl [vmem:[#allocation1] sm:$0xff pattern:$0x73625140] }
 0x13a   : > { %v1237_v18 = vpack.c.bf16 %v1189_v16, %v1189_v16  ;;  %1351 = vst [vmem:[#allocation1 + $0x4] ss:$9 sm:$0xff] %v1295_v14  ;;  %v1571_v33 = vld [vmem:[#allocation2 + $0x50] sm:$0x1] }
 0x13b   : > { %v1190_v22 = vld.sshfl [vmem:[#allocation1 + $0x20] sm:$0xff pattern:$0x73625140]  ;;  %v1572_v40 = vsel %vm5739_vm9, 0, %v1571_v33 }
 0x13c   : > { %1261 = vst [vmem:[#allocation2 + $0x58] sm:$0xf] %v1237_v18  ;;  %v1238_v36 = vpack.c.bf16 %v1190_v22, %v1190_v22 }
 0x13d   : > { %1340 = vst [vmem:[#allocation1] ss:$9 sm:$0xff] %v1283_v19  ;;  %v1542_v30 = vld [vmem:[#allocation2 + $0x54] sm:$0x1] }
 0x13e   : > { %1343 = vst [vmem:[#allocation1 + $0x1] ss:$9 sm:$0xff] %v1286_v20  ;;  %v1543_v35 = vsel %vm5731_vm7, 0, %v1542_v30 }
 0x13f   : > { %1346 = vst [vmem:[#allocation1 + $0x2] ss:$9 sm:$0xff] %v1289_v23 }
 0x140   : > { %1349 = vst [vmem:[#allocation1 + $0x3] ss:$9 sm:$0xff] %v1292_v25 }
 0x141   : > { %1354 = vst [vmem:[#allocation1 + $0x5] ss:$9 sm:$0xff] %v1298_v27 }
 0x142   : > { %1357 = vst [vmem:[#allocation1 + $0x6] ss:$9 sm:$0xff] %v1301_v28 }
 0x143   : > { %1360 = vst [vmem:[#allocation1 + $0x7] ss:$9 sm:$0xff] %v1304_v32 }
 0x144   : > { %1544 = vst [vmem:[#allocation2 + $0x54] sm:$0x1] %v1543_v35 }
 0x145   : > { %1262 = vst [vmem:[#allocation2 + $0x5c] sm:$0x1] %v1238_v36 }
 0x146   : > { %1573 = vst [vmem:[#allocation2 + $0x50] sm:$0x1] %v1572_v40 }
 0x14a   : > { %v1361_v50 = vld [vmem:[#allocation1] sm:$0xff] }
 0x14b   : > { %4552 = vmatmul.msk.bf16.vlgmr.msrb.gmra.mxu1 %vm877_vm5, %v1361_v50  ;;  %1362 = vst [vmem:[#allocation1] ss:$9 sm:$0xff] %v1307_v45 }
 0x14c   : > { %1370 = vst [vmem:[#allocation1 + $0x5] ss:$9 sm:$0xff] %v1322_v46  ;;  %v1574_v58 = vld [vmem:[#allocation2 + $0x5c] sm:$0x1] }
 0x14d   : > { %1372 = vst [vmem:[#allocation1 + $0x6] ss:$9 sm:$0xff] %v1325_v47  ;;  %v1575_v60 = vsel %vm5739_vm9, 0, %v1574_v58 }
 0x14e   : > { %1374 = vst [vmem:[#allocation1 + $0x7] ss:$9 sm:$0xff] %v1328_v49 }
 0x14f   : > { %1363 = vst [vmem:[#allocation1 + $0x1] ss:$9 sm:$0xff] %v1310_v53 }
 0x150   : > { %1365 = vst [vmem:[#allocation1 + $0x2] ss:$9 sm:$0xff] %v1313_v54 }
 0x151   : > { %1367 = vst [vmem:[#allocation1 + $0x3] ss:$9 sm:$0xff] %v1316_v57 }
 0x152   : > { %1369 = vst [vmem:[#allocation1 + $0x4] ss:$9 sm:$0xff] %v1319_v59 }
 0x153   : > { %1576 = vst [vmem:[#allocation2 + $0x5c] sm:$0x1] %v1575_v60 }
 0x159   : > { %v1375_v1 = vld [vmem:[#allocation1] sm:$0xff] }
 0x15a   : > { %1377 = vst [vmem:[#allocation1] ss:$9 sm:$0xff] %v1331_v55 }
 0x15b   : > { %4553 = vmatmul.msk.bf16.gmra.mxu1 %vm877_vm5, %v1375_v1  ;;  %1378 = vst [vmem:[#allocation1 + $0x1] ss:$9 sm:$0xff] %v1334_v0 }
 0x162   : > { %v1379_v2 = vld [vmem:[#allocation1] sm:$0xff] }
 0x16b   : > { %4554 = vmatmul.msk.bf16.gmra.mxu1 %vm877_vm5, %v1379_v2 }
 0x1c8   : > { %v1413_v4 = vpop.f32.mrf.mxu1 }
 0x1c9   : > { %v1431_v5 = vmul.f32 %v5449_v3, %v1413_v4 }
 0x1cb   : > { %v1440_v6 = vadd.f32 %v5450_v56, %v1431_v5 }
 0x1cd   : > { %v1445_v7 = vmax.f32 %v1440_v6, 0.0 }
 0x1cf   : > { %v1455_v8 = vrot.slane %v1445_v7, 2  ;;  %v1456_v9 = vrot.slane %v1445_v7, 4  ;;  %v1457_v10 = vrot.slane %v1445_v7, 6  ;;  %1468 = vst [vmem:[#allocation1] ss:$4 sm:$0xff] %v1445_v7 }
 0x1d0   : > { %v1415_v11 = vpop.f32.mrf.mxu1 }
 0x1d1   : > { %1470 = vst [vmem:[#allocation1 + $0x1] ss:$4 sm:$0xff] %v1455_v8  ;;  %v1432_v12 = vmul.f32 %v5449_v3, %v1415_v11 }
 0x1d2   : > { %1472 = vst [vmem:[#allocation1 + $0x2] ss:$4 sm:$0xff] %v1456_v9 }
 0x1d3   : > { %1474 = vst [vmem:[#allocation1 + $0x3] ss:$4 sm:$0xff] %v1457_v10  ;;  %v1441_v13 = vadd.f32 %v5450_v56, %v1432_v12 }
 0x1d5   : > { %v1446_v14 = vmax.f32 %v1441_v13, 0.0 }
 0x1d7   : > { %v1458_v15 = vrot.slane %v1446_v14, 2  ;;  %v1459_v16 = vrot.slane %v1446_v14, 4  ;;  %v1460_v17 = vrot.slane %v1446_v14, 6  ;;  %1476 = vst [vmem:[#allocation1 + $0x20] ss:$4 sm:$0xff] %v1446_v14 }
 0x1d8   : > { %v1418_v18 = vpop.f32.mrf.mxu1 }
 0x1d9   : > { %1478 = vst [vmem:[#allocation1 + $0x21] ss:$4 sm:$0xff] %v1458_v15  ;;  %v1433_v19 = vmul.f32 %v5449_v3, %v1418_v18 }
 0x1da   : > { %1480 = vst [vmem:[#allocation1 + $0x22] ss:$4 sm:$0xff] %v1459_v16  ;;  %v1483_v22 = vld.sshfl [vmem:[#allocation1] sm:$0xff pattern:$0x73625140] }
 0x1db   : > { %1482 = vst [vmem:[#allocation1 + $0x23] ss:$4 sm:$0xff] %v1460_v17  ;;  %v1442_v20 = vadd.f32 %v5450_v56, %v1433_v19 }
 0x1dd   : > { %v1447_v21 = vmax.f32 %v1442_v20, 0.0 }
 0x1df   : > { %v1461_v23 = vrot.slane %v1447_v21, 2  ;;  %1485 = vst [vmem:[#allocation1] ss:$4 sm:$0xff] %v1447_v21  ;;  %v1462_v24 = vrot.slane %v1447_v21, 4  ;;  %v1463_v26 = vrot.slane %v1447_v21, 6 }
 0x1e0   : > { %v1420_v25 = vpop.f32.mrf.mxu1 }
 0x1e1   : > { %v1434_v27 = vmul.f32 %v5449_v3, %v1420_v25 }
 0x1e2   : > { %v1484_v28 = vld.sshfl [vmem:[#allocation1 + $0x20] sm:$0xff pattern:$0x73625140] }
 0x1e3   : > { %1487 = vst [vmem:[#allocation1 + $0x20] ss:$4 sm:$0xff] %v1461_v23  ;;  %v5337_v30 = vpack.c.bf16 %v1484_v28, %v1483_v22  ;;  %v1443_v31 = vadd.f32 %v5450_v56, %v1434_v27 }
 0x1e4   : > { %1488 = vst [vmem:[#allocation1 + $0x21] ss:$4 sm:$0xff] %v1462_v24 }
 0x1e5   : > { %1489 = vst [vmem:[#allocation1 + $0x22] ss:$4 sm:$0xff] %v1463_v26  ;;  %v1448_v32 = vmax.f32 %v1443_v31, 0.0 }
 0x1e6   : > { %5338 = vst [vmem:[#allocation2 + $0x60] sm:$0xff] %v5337_v30   ;;  %v1486_v33 = vld.sshfl [vmem:[#allocation1] sm:$0xff pattern:$0x73625140] }
 0x1e7   : > { %v1464_v34 = vrot.slane %v1448_v32, 2  ;;  %v1465_v35 = vrot.slane %v1448_v32, 4  ;;  %v1466_v36 = vrot.slane %v1448_v32, 6  ;;  %1490 = vst [vmem:[#allocation1 + $0x23] ss:$4 sm:$0xff] %v1448_v32  ;;  %v1507_v39 = vpack.c.bf16 %v1486_v33, %v1486_v33 }
 0x1e8   : > { %v1423_v37 = vpop.f32.mrf.mxu1 }
 0x1e9   : > { %v1435_v40 = vmul.f32 %v5449_v3, %v1423_v37  ;;  %1492 = vst [vmem:[#allocation1] ss:$4 sm:$0xff] %v1464_v34 }
 0x1ea   : > { %1493 = vst [vmem:[#allocation1 + $0x1] ss:$4 sm:$0xff] %v1465_v35 }
 0x1eb   : > { %v1444_v41 = vadd.f32 %v5450_v56, %v1435_v40  ;;  %1494 = vst [vmem:[#allocation1 + $0x2] ss:$4 sm:$0xff] %v1466_v36 }
 0x1ec   : > { %1514 = vst [vmem:[#allocation2 + $0x68] sm:$0x1] %v1507_v39 }
 0x1ed   : > { %v1545_v42 = vld [vmem:[#allocation2 + $0x60] sm:$0x1]  ;;  %v1449_v43 = vmax.f32 %v1444_v41, 0.0 }
 0x1ee   : > { %v1491_v44 = vld.sshfl [vmem:[#allocation1 + $0x20] sm:$0xff pattern:$0x73625140]  ;;  %v1546_v45 = vsel %vm5731_vm7, 0, %v1545_v42 }
 0x1ef   : > { %v1508_v46 = vpack.c.bf16 %v1491_v44, %v1491_v44  ;;  %1547 = vst [vmem:[#allocation2 + $0x60] sm:$0x1] %v1546_v45  ;;  %v1467_v47 = vrot.slane %v1449_v43, 2 }
 0x1f0   : > { %1495 = vst [vmem:[#allocation1 + $0x3] ss:$4 sm:$0xff] %v1449_v43  ;;  %v1425_v48 = vpop.f32.mrf.mxu1 }
 0x1f1   : > { %1515 = vst [vmem:[#allocation2 + $0x6c] sm:$0xf] %v1508_v46 }
 0x1f2   : > { %1496 = vst [vmem:[#allocation1 + $0x20] ss:$4 sm:$0xff] %v1467_v47 }
 0x1f3   : > { %v1577_v49 = vld [vmem:[#allocation2 + $0x68] sm:$0x1] }
 0x1f4   : > { %v1578_v50 = vsel %vm5739_vm9, 0, %v1577_v49 }
 0x1f5   : > { %1579 = vst [vmem:[#allocation2 + $0x68] sm:$0x1] %v1578_v50 }
 0x1f7   : > { %v1497_v51 = vld.sshfl [vmem:[#allocation1] sm:$0xff pattern:$0x73625140] }
 0x1f8   : > { %v1548_v52 = vld [vmem:[#allocation2 + $0x6c] sm:$0x1]  ;;  %v1509_v53 = vpack.c.bf16 %v1497_v51, %v1497_v51 }
 0x1f9   : > { %v1549_v54 = vsel %vm5731_vm7, 0, %v1548_v52  ;;  %v1498_v57 = vld.sshfl [vmem:[#allocation1 + $0x20] sm:$0xff pattern:$0x73625140] }
 0x1fa   : > { %1550 = vst [vmem:[#allocation2 + $0x6c] sm:$0x1] %v1549_v54  ;;  %v1510_v58 = vpack.c.bf16 %v1498_v57, %v1498_v57 }
 0x1fb   : > { %1516 = vst [vmem:[#allocation2 + $0x70] sm:$0xf] %v1509_v53 }
 0x1fc   : > { %1517 = vst [vmem:[#allocation2 + $0x74] sm:$0x1] %v1510_v58 }
 0x201   : > { %1586 = sbr.rel (%p4555_p9) target bundleno = 522 (0x20a), region = 56 }
 0x203   : > { %v1580_v59 = vld [vmem:[#allocation2 + $0x74] sm:$0x1] }
 0x204   : > { %v1581_v60 = vsel %vm5739_vm9, 0, %v1580_v59 }
 0x205   : > { %1582 = vst [vmem:[#allocation2 + $0x74] sm:$0x1] %v1581_v60 }
 0x206   : > { %v5493_v61 = vmov 0  }
 0x207   : > { %1587 = vst [vmem:[#allocation2] sm:$0xf] %v5493_v61 }
 0x208   : > { %1588 = vst [vmem:[#allocation2 + $0x4] sm:$0xf] %v5493_v61 }
 0x209   : > { %1589 = vst [vmem:[#allocation2 + $0x8] sm:$0x1] %v5493_v61 }
 0x20a PF: > { %p4556_p10 = scmp.ne.s32.totalorder %s5475_s27, 1 }
 0x20c   : > { %1593 = sbr.rel (%p4556_p10) target bundleno = 533 (0x215), region = 60 }
 0x211   : > { %v5494_v29 = vmov 0  }
 0x212   : > { %1595 = vst [vmem:[#allocation2 + $0x6c] sm:$0xf] %v5494_v29 }
 0x213   : > { %1596 = vst [vmem:[#allocation2 + $0x70] sm:$0xf] %v5494_v29 }
 0x214   : > { %1597 = vst [vmem:[#allocation2 + $0x74] sm:$0x1] %v5494_v29 }
 0x215 PF: > { %v5249_v38 = vld [vmem:[%s6546_s5 + $0x38] sm:$0xff]  ;;  %v5248_v62 = vld [vmem:[%s6546_s5 + $0x30] sm:$0xff]  ;;  %v1598_v63 = vld [vmem:[#allocation2] sm:$0xf]  ;;  %vm1654_vm10 = vsmask.f32 3328 }
 0x216   : > { %3878 = vmatpush.bf16.msra.mxu2 %v5249_v38  ;;  %5394 = vmatpush.bf16.msra.mxu3 %v5249_v38  ;;  %v1599_v55 = vld [vmem:[#allocation2 + $0x4] sm:$0xf]  ;;  %1614 = vst [vmem:[#allocation3] sm:$0xf] %v1598_v63  ;;  %v1608_v0 = vld [vmem:[#allocation2 + $0x3c] sm:$0xf] }
 0x217   : > { %v5247_v1 = vld [vmem:[%s6546_s5 + $0x28] sm:$0xff]  ;;  %1615 = vst [vmem:[#allocation3 + $0x24] sm:$0xf] %v1599_v55  ;;  %v1600_v3 = vld [vmem:[#allocation2 + $0xc] sm:$0xf]  ;;  %v5246_v6 = vld [vmem:[%s6546_s5 + $0x20] sm:$0xff] }
 0x218   : > { %v1609_v2 = vld [vmem:[#allocation2 + $0x40] sm:$0xf]  ;;  %1624 = vst [vmem:[#allocation3 + $0x168] sm:$0xf] %v1608_v0  ;;  %v1601_v56 = vld [vmem:[#allocation2 + $0x10] sm:$0xf] }
 0x219   : > { %1625 = vst [vmem:[#allocation3 + $0x18c] sm:$0xf] %v1609_v2  ;;  %v1610_v4 = vld [vmem:[#allocation2 + $0x48] sm:$0xf]  ;;  %v1611_v5 = vld [vmem:[#allocation2 + $0x4c] sm:$0xf] }
 0x21a   : > { %3879 = vmatpush.bf16.msra.mxu2 %v5248_v62  ;;  %5395 = vmatpush.bf16.msra.mxu3 %v5248_v62  ;;  %1616 = vst [vmem:[#allocation3 + $0x48] sm:$0xf] %v1600_v3  ;;  %v5245_v7 = vld [vmem:[%s6546_s5 + $0x18] sm:$0xff]  ;;  %v5244_v8 = vld [vmem:[%s6546_s5 + $0x10] sm:$0xff]  ;;  %v1602_v13 = vld [vmem:[#allocation2 + $0x18] sm:$0xf] }
 0x21b   : > { %1617 = vst [vmem:[#allocation3 + $0x6c] sm:$0xf] %v1601_v56  ;;  %v5265_v9 = vld [vmem:[%s6546_s5 + $0xb8] sm:$0xff]  ;;  %v5264_v11 = vld [vmem:[%s6546_s5 + $0xb0] sm:$0xff]  ;;  %v1603_v14 = vld [vmem:[#allocation2 + $0x1c] sm:$0xf] }
 0x21c   : > { %1626 = vst [vmem:[#allocation3 + $0x1b0] sm:$0xf] %v1610_v4  ;;  %v5273_v10 = vld [vmem:[%s6546_s5 + $0xf8] sm:$0xff]  ;;  %3976 = vmatpush.bf16.msra.mxu1 %v5265_v9  ;;  %v5272_v12 = vld [vmem:[%s6546_s5 + $0xf0] sm:$0xff]  ;;  %v5243_v15 = vld [vmem:[%s6546_s5 + $0x8] sm:$0xff]  ;;  %vm1929_vm13 = vcmask 1042432  }
 0x21d   : > { %1627 = vst [vmem:[#allocation3 + $0x1d4] sm:$0xf] %v1611_v5  ;;  %4025 = vmatpush.bf16.msrb.mxu0 %v5273_v10  ;;  %v1612_v16 = vld [vmem:[#allocation2 + $0x54] sm:$0xf]  ;;  %v1613_v17 = vld [vmem:[#allocation2 + $0x58] sm:$0xf] }
 0x21e   : > { %3880 = vmatpush.bf16.msra.mxu2 %v5247_v1  ;;  %5396 = vmatpush.bf16.msra.mxu3 %v5247_v1  ;;  %1618 = vst [vmem:[#allocation3 + $0x90] sm:$0xf] %v1602_v13  ;;  %v5242_v18 = vld [vmem:[%s6546_s5] sm:$0xff]  ;;  %v5281_v23 = vld [vmem:[%s6546_s5 + $0x138] sm:$0xff]  ;;  %v1630_v27 = vld [vmem:[#allocation2] sm:$0xf] }
 0x21f   : > { %1619 = vst [vmem:[#allocation3 + $0xb4] sm:$0xf] %v1603_v14  ;;  %v4583_v19 = vld [vmem:[#allocation3] sm:$0xf]  ;;  %v5174_v20 = vld [vmem:[#allocation3 + $0x20] sm:$0xf0] }
 0x220   : > { %1628 = vst [vmem:[#allocation3 + $0x1f8] sm:$0xf] %v1612_v16  ;;  %3977 = vmatpush.bf16.msra.mxu1 %v5264_v11  ;;  %v4763_v21 = vld [vmem:[#allocation3 + $0x168] sm:$0xf]  ;;  %v5219_v22 = vld [vmem:[#allocation3 + $0x188] sm:$0xf0]  ;;  %v4584_v25 = vor.u32 %v5174_v20, %v4583_v19 }
 0x221   : > { %4026 = vmatpush.bf16.msrb.mxu0 %v5272_v12  ;;  %1629 = vst [vmem:[#allocation3 + $0x21c] sm:$0xf] %v1613_v17  ;;  %v5257_v24 = vld [vmem:[%s6546_s5 + $0x78] sm:$0xff]  ;;  %v4764_v26 = vor.u32 %v5219_v22, %v4763_v21  ;;  %v1631_v28 = vld [vmem:[#allocation2 + $0x4] sm:$0xf]  ;;  %v1658_v30 = vshrl.u32 %v1630_v27, 16 }
 0x222   : > { %3881 = vmatpush.bf16.msra.mxu2 %v5246_v6  ;;  %5397 = vmatpush.bf16.msra.mxu3 %v5246_v6  ;;  %v1661_v31 = vshll.u32 %v1630_v27, 16  ;;  %v1667_v32 = vshll.u32 %v1631_v28, 16  ;;  %v5280_v33 = vld [vmem:[%s6546_s5 + $0x130] sm:$0xff]  ;;  %v1671_v35 = vshrl.u32 %v1631_v28, 16  ;;  %v5263_v36 = vld [vmem:[%s6546_s5 + $0xa8] sm:$0xff]  ;;  %v5262_v43 = vld [vmem:[%s6546_s5 + $0xa0] sm:$0xff] }
 0x223   : > { %v5256_v34 = vld [vmem:[%s6546_s5 + $0x70] sm:$0xff]  ;;  %v1660_v37 = vrot.slane %v1658_v30, 4  ;;  %v5271_v41 = vld [vmem:[%s6546_s5 + $0xe8] sm:$0xff]  ;;  %v5270_v48 = vld [vmem:[%s6546_s5 + $0xe0] sm:$0xff]  ;;  %vm1655_vm11 = vsmask.f32 7440 }
 0x224   : > { %v1663_v39 = vrot.slane %v1661_v31, 5  ;;  %v1669_v40 = vrot.slane %v1667_v32, 5  ;;  %v1673_v42 = vrot.slane %v1671_v35, 4  ;;  %3978 = vmatpush.bf16.msra.mxu1 %v5263_v36  ;;  %v5279_v45 = vld [vmem:[%s6546_s5 + $0x128] sm:$0xff]  ;;  %v1605_v50 = vld [vmem:[#allocation2 + $0x28] sm:$0xf]  ;;  %vm5940_vm12 = vmor %vm1654_vm10, %vm1655_vm11 }
 0x225   : > { %v5255_v46 = vld [vmem:[%s6546_s5 + $0x68] sm:$0xff]  ;;  %4027 = vmatpush.bf16.msrb.mxu0 %v5271_v41  ;;  %v1632_v51 = vld [vmem:[#allocation2 + $0x8] sm:$0x1]  ;;  %v5261_v52 = vld [vmem:[%s6546_s5 + $0x98] sm:$0xff]  ;;  %1621 = vst [vmem:[#allocation3 + $0xfc] sm:$0xf] %v1605_v50 }
 0x226   : > { %3882 = vmatpush.bf16.msra.mxu2 %v5245_v7  ;;  %5398 = vmatpush.bf16.msra.mxu3 %v5245_v7  ;;  %v1664_v44 = vor.u32 %v1663_v39, %v1660_v37  ;;  %v1674_v47 = vor.u32 %v1673_v42, %v1669_v40  ;;  %v1604_v49 = vld [vmem:[#allocation2 + $0x24] sm:$0xf]  ;;  %v4619_v54 = vld [vmem:[#allocation3 + $0x48] sm:$0xf]  ;;  %v5254_v57 = vld [vmem:[%s6546_s5 + $0x60] sm:$0xff]  ;;  %v1677_v61 = vshll.u32 %v1632_v51, 16 }
 0x227   : > { %1620 = vst [vmem:[#allocation3 + $0xd8] sm:$0xf] %v1604_v49  ;;  %v5278_v58 = vld [vmem:[%s6546_s5 + $0x120] sm:$0xff]  ;;  %v5183_v29 = vld [vmem:[#allocation3 + $0x68] sm:$0xf0]  ;;  %v5269_v62 = vld [vmem:[%s6546_s5 + $0xd8] sm:$0xff] }
 0x228   : > { %3979 = vmatpush.bf16.msra.mxu1 %v5262_v43  ;;  %v1665_v53 = vrot.slane %v1664_v44, 4  ;;  %v1675_v60 = vrot.slane %v1674_v47, 4  ;;  %v4799_v38 = vld [vmem:[#allocation3 + $0x1b0] sm:$0xf]  ;;  %v1679_v55 = vrot.slane %v1677_v61, 5  ;;  %v5253_v2 = vld [vmem:[%s6546_s5 + $0x58] sm:$0xff] }
 0x229   : > { %4028 = vmatpush.bf16.msrb.mxu0 %v5270_v48  ;;  %v1882_v0 = vld [vmem:[#allocation2 + $0x4] sm:$0xf]  ;;  %v5228_v1 = vld [vmem:[#allocation3 + $0x1d0] sm:$0xf0]  ;;  %v5277_v4 = vld [vmem:[%s6546_s5 + $0x118] sm:$0xff]  ;;  %vm1930_vm14 = vcmask 1046532  }
 0x22a   : > { %3883 = vmatpush.bf16.msra.mxu2 %v5244_v8  ;;  %5399 = vmatpush.bf16.msra.mxu3 %v5244_v8  ;;  %v1670_v63 = vsel %vm5940_vm12, %v1665_v53, %v1669_v40  ;;  %v5260_v3 = vld [vmem:[%s6546_s5 + $0x90] sm:$0xff]  ;;  %v1934_v56 = vrot.slane %v1882_v0, 5  ;;  %v1680_v5 = vsel %vm5940_vm12, %v1675_v60, %v1679_v55  ;;  %v1881_v6 = vld [vmem:[#allocation2] sm:$0xe]  ;;  %v4620_v8 = vor.u32 %v5183_v29, %v4619_v54  ;;  %vm5963_vm15 = vmor %vm1929_vm13, %vm1930_vm14 }
 0x22b   : > { %1865 = vst [vmem:[#allocation3 + $0x4] sm:$0xf] %v1670_v63  ;;  %v1883_v7 = vld [vmem:[#allocation2 + $0x8] sm:$0x1]  ;;  %v4800_v10 = vor.u32 %v5228_v1, %v4799_v38  ;;  %v4557_v12 = vrot.slane %v1881_v6, 9  ;;  %v5259_v22 = vld [vmem:[%s6546_s5 + $0x88] sm:$0xff] }
 0x22c   : > { %3980 = vmatpush.bf16.msra.mxu1 %v5261_v52  ;;  %v5268_v9 = vld [vmem:[%s6546_s5 + $0xd0] sm:$0xff]  ;;  %1866 = vst [vmem:[#allocation3 + $0x28] sm:$0xf] %v1680_v5  ;;  %v1936_v13 = vrot.slane %v1934_v56, 4  ;;  %v1937_v14 = vrot.slane %v1883_v7, 5  ;;  %v5258_v27 = vld [vmem:[%s6546_s5 + $0x80] sm:$0xff] }
 0x22d   : > { %4029 = vmatpush.bf16.msrb.mxu0 %v5269_v62  ;;  %v1634_v16 = vld [vmem:[#allocation2 + $0x10] sm:$0xf]  ;;  %v5252_v17 = vld [vmem:[%s6546_s5 + $0x50] sm:$0xff]  ;;  %v5251_v32 = vld [vmem:[%s6546_s5 + $0x48] sm:$0xff] }
 0x22e   : > { %3884 = vmatpush.bf16.msra.mxu2 %v5243_v15  ;;  %5400 = vmatpush.bf16.msra.mxu3 %v5243_v15  ;;  %v1633_v15 = vld [vmem:[#allocation2 + $0xc] sm:$0xf]  ;;  %v1938_v19 = vsel %vm5963_vm15, %v1936_v13, %v1937_v14  ;;  %v2022_v30 = vld [vmem:[#allocation2 + $0x10] sm:$0xf]  ;;  %v1607_v36 = vld [vmem:[#allocation2 + $0x34] sm:$0xf] }
 0x22f   : > { %v1682_v20 = vshrl.u32 %v1633_v15, 16  ;;  %v1685_v21 = vshll.u32 %v1633_v15, 16  ;;  %2005 = vst [vmem:[#allocation3 + $0x2c] sm:$0xf] %v1938_v19  ;;  %v2021_v28 = vld [vmem:[#allocation2 + $0xc] sm:$0xf] }
 0x230   : > { %3981 = vmatpush.bf16.msra.mxu1 %v5260_v3  ;;  %2037 = vst [vmem:[#allocation3 + $0xc] sm:$0xf] %v2021_v28  ;;  %v1606_v35 = vld [vmem:[#allocation2 + $0x30] sm:$0xf]  ;;  %v1635_v39 = vld [vmem:[#allocation2 + $0x14] sm:$0x1] }
 0x231   : > { %4030 = vmatpush.bf16.msrb.mxu0 %v5268_v9  ;;  %v1687_v31 = vrot.slane %v1685_v21, 5  ;;  %2038 = vst [vmem:[#allocation3 + $0x30] sm:$0xf] %v2022_v30  ;;  %v1695_v41 = vshrl.u32 %v1634_v16, 16  ;;  %v1701_v43 = vshll.u32 %v1635_v39, 16  ;;  %v5250_v44 = vld [vmem:[%s6546_s5 + $0x40] sm:$0xff] }
 0x232   : > { %3885 = vmatpush.bf16.msra.mxu2 %v5242_v18  ;;  %5401 = vmatpush.bf16.msra.mxu3 %v5242_v18  ;;  %v1935_v18 = vsel %vm5963_vm15, %v4557_v12, %v1934_v56  ;;  %1622 = vst [vmem:[#allocation3 + $0x120] sm:$0xf] %v1606_v35  ;;  %v4655_v47 = vld [vmem:[#allocation3 + $0x90] sm:$0xf]  ;;  %v5192_v48 = vld [vmem:[#allocation3 + $0xb0] sm:$0xf0] }
 0x233   : > { %2004 = vst [vmem:[#allocation3 + $0x8] sm:$0xf] %v1935_v18  ;;  %v4835_v49 = vld [vmem:[#allocation3 + $0x1f8] sm:$0xf]  ;;  %v1703_v54 = vrot.slane %v1701_v43, 5 }
 0x234   : > { %3982 = vmatpush.bf16.msra.mxu1 %v5259_v22  ;;  %1623 = vst [vmem:[#allocation3 + $0x144] sm:$0xf] %v1607_v36  ;;  %v1884_v62 = vld [vmem:[#allocation2 + $0xc] sm:$0xe]  ;;  %v1886_v55 = vld [vmem:[#allocation2 + $0x14] sm:$0x1] }
 0x235   : > { %3886 = vmatmul.bf16.vlgmr.msra.gmra.mxu2 %v4584_v25  ;;  %3911 = vmatmul.bf16.vlgmr.msra.gmra.mxu3 %v4764_v26  ;;  %v1684_v25 = vrot.slane %v1682_v20, 4  ;;  %v1691_v26 = vshll.u32 %v1634_v16, 16  ;;  %v4558_v0 = vrot.slane %v1884_v62, 9  ;;  %v1636_v5 = vld [vmem:[#allocation2 + $0x18] sm:$0xf]  ;;  %v5289_v18 = vld [vmem:[%s6546_s5 + $0x178] sm:$0xff] }
 0x236   : > { %4074 = vmatpush.bf16.msrb.mxu2 %v5281_v23  ;;  %3927 = vmatpush.bf16.msrb.mxu3 %v5257_v24  ;;  %v5276_v23 = vld [vmem:[%s6546_s5 + $0x110] sm:$0xff]  ;;  %v5267_v24 = vld [vmem:[%s6546_s5 + $0xc8] sm:$0xff]  ;;  %v1637_v7 = vld [vmem:[#allocation2 + $0x1c] sm:$0xf]  ;;  %v1709_v9 = vshll.u32 %v1636_v5, 16 }
 0x237   : > { %4031 = vmatpush.bf16.msrb.mxu0 %v5267_v24  ;;  %v1688_v37 = vor.u32 %v1687_v31, %v1684_v25  ;;  %v1693_v40 = vrot.slane %v1691_v26, 5  ;;  %v5175_v50 = vld [vmem:[#allocation3 + $0x28] sm:$0xf0]  ;;  %v1715_v12 = vshll.u32 %v1637_v7, 16  ;;  %v1719_v13 = vshrl.u32 %v1637_v7, 16  ;;  %v5274_v16 = vld [vmem:[%s6546_s5 + $0x100] sm:$0xff] }
 0x238   : > { %3983 = vmatpush.bf16.msra.mxu1 %v5258_v27  ;;  %v5171_v60 = vld [vmem:[#allocation3 + $0xc] sm:$0xf]  ;;  %v4593_v29 = vld [vmem:[#allocation3 + $0x2c] sm:$0xf0]  ;;  %v2023_v14 = vld [vmem:[#allocation2 + $0x18] sm:$0xf] }
 0x239   : > { %v1689_v42 = vrot.slane %v1688_v37, 4  ;;  %v4596_v63 = vor.u32 %v5171_v60, %v4593_v29  ;;  %v2053_v15 = vld [vmem:[#allocation2 + $0xc] sm:$0xf]  ;;  %2039 = vst [vmem:[#allocation3 + $0x54] sm:$0xf] %v2023_v14  ;;  %v1711_v21 = vrot.slane %v1709_v9, 5 }
 0x23a   : > { %4075 = vmatpush.bf16.msrb.mxu2 %v5280_v33  ;;  %3928 = vmatpush.bf16.msrb.mxu3 %v5256_v34  ;;  %v5266_v33 = vld [vmem:[%s6546_s5 + $0xc0] sm:$0xff]  ;;  %v5275_v34 = vld [vmem:[%s6546_s5 + $0x108] sm:$0xff]  ;;  %v1717_v22 = vrot.slane %v1715_v12, 5  ;;  %v2054_v25 = vld [vmem:[#allocation2 + $0x10] sm:$0xf]  ;;  %v2078_v26 = vshrl.u32 %v2053_v15, 16 }
 0x23b   : > { %4032 = vmatpush.bf16.msrb.mxu0 %v5266_v33  ;;  %v1694_v51 = vsel %vm5940_vm12, %v1689_v42, %v1693_v40  ;;  %v1638_v19 = vld [vmem:[#allocation2 + $0x20] sm:$0x1]  ;;  %v2055_v28 = vld [vmem:[#allocation2 + $0x14] sm:$0x1]  ;;  %v2081_v30 = vshll.u32 %v2053_v15, 16  ;;  %v2087_v31 = vshll.u32 %v2054_v25, 16 }
 0x23c   : > { %1867 = vst [vmem:[#allocation3 + $0x4c] sm:$0xf] %v1694_v51  ;;  %v1725_v24 = vshll.u32 %v1638_v19, 16  ;;  %v2080_v35 = vrot.slane %v2078_v26, 4  ;;  %v2097_v36 = vshll.u32 %v2055_v28, 16 }
 0x23d   : > { %v4585_v60 = vld [vmem:[#allocation3 + $0x24] sm:$0xf0]  ;;  %v1640_v7 = vld [vmem:[#allocation2 + $0x28] sm:$0xf]  ;;  %v2025_v15 = vld [vmem:[#allocation2 + $0x24] sm:$0xf] }
 0x23e   : > { %4076 = vmatpush.bf16.msrb.mxu2 %v5279_v45  ;;  %3929 = vmatpush.bf16.msrb.mxu3 %v5255_v46  ;;  %v4591_v45 = vld [vmem:[#allocation3 + $0x8] sm:$0xf]  ;;  %v1697_v46 = vrot.slane %v1695_v41, 4  ;;  %v2089_v41 = vrot.slane %v2087_v31, 5  ;;  %v1743_v14 = vshrl.u32 %v1640_v7, 16 }
 0x23f   : > { %v4592_v52 = vor.u32 %v5175_v50, %v4591_v45  ;;  %4033 = vmatmul.bf16.vlgmr.msrb.gmra.mxu0 %v4596_v63  ;;  %v4691_v45 = vld [vmem:[#allocation3 + $0xd8] sm:$0xf]  ;;  %v1887_v63 = vld [vmem:[#allocation2 + $0x18] sm:$0xe]  ;;  %2041 = vst [vmem:[#allocation3 + $0x9c] sm:$0xf] %v2025_v15 }
 0x240   : > { %v1698_v53 = vor.u32 %v1697_v46, %v1693_v40  ;;  %v2083_v40 = vrot.slane %v2081_v30, 5  ;;  %v5201_v46 = vld [vmem:[#allocation3 + $0xf8] sm:$0xf0]  ;;  %v2057_v19 = vld [vmem:[#allocation2 + $0x1c] sm:$0xf] }
 0x241   : > { %3984 = vmatmul.bf16.vlgmr.msra.gmra.mxu1 %v4592_v52  ;;  %v2099_v52 = vrot.slane %v2097_v36, 5  ;;  %v2115_v36 = vshrl.u32 %v2057_v19, 16 }
 0x242   : > { %3930 = vmatpush.bf16.msrb.mxu3 %v5254_v57  ;;  %4077 = vmatpush.bf16.msrb.mxu2 %v5278_v58  ;;  %v1885_v57 = vld [vmem:[#allocation2 + $0x10] sm:$0xf]  ;;  %v5237_v58 = vld [vmem:[#allocation3 + $0x218] sm:$0xf0]  ;;  %v1699_v38 = vrot.slane %v1698_v53, 4  ;;  %v2084_v51 = vor.u32 %v2083_v40, %v2080_v35  ;;  %v2111_v35 = vshll.u32 %v2057_v19, 16 }
 0x243   : > { %v1941_v61 = vrot.slane %v1885_v57, 5  ;;  %v4836_v3 = vor.u32 %v5237_v58, %v4835_v49  ;;  %v5180_v49 = vld [vmem:[#allocation3 + $0x54] sm:$0xf]  ;;  %v1888_v58 = vld [vmem:[#allocation2 + $0x1c] sm:$0xf] }
 0x244   : > { %v1704_v56 = vsel %vm5940_vm12, %v1699_v38, %v1703_v54  ;;  %v2085_v29 = vrot.slane %v2084_v51, 4  ;;  %v1948_v38 = vrot.slane %v1888_v58, 5 }
 0x245   : > { %3891 = vmatmul.bf16.gmra.mxu2 %v4620_v8  ;;  %3916 = vmatmul.bf16.gmra.mxu3 %v4800_v10  ;;  %v1943_v1 = vrot.slane %v1941_v61, 4  ;;  %1868 = vst [vmem:[#allocation3 + $0x70] sm:$0xf] %v1704_v56  ;;  %v1942_v6 = vsel %vm5963_vm15, %v4558_v0, %v1941_v61  ;;  %v1706_v8 = vshrl.u32 %v1636_v5, 16  ;;  %v4692_v56 = vor.u32 %v5201_v46, %v4691_v45 }
 0x246   : > { %3931 = vmatpush.bf16.msrb.mxu3 %v5253_v2  ;;  %4078 = vmatpush.bf16.msrb.mxu2 %v5277_v4  ;;  %v4656_v2 = vor.u32 %v5192_v48, %v4655_v47  ;;  %v1944_v4 = vrot.slane %v1886_v55, 5  ;;  %2006 = vst [vmem:[#allocation3 + $0x50] sm:$0xf] %v1942_v6  ;;  %v5170_v47 = vld [vmem:[#allocation3 + $0x4] sm:$0xf]  ;;  %v2090_v0 = vsel %vm5940_vm12, %v2085_v29, %v2089_v41  ;;  %v2113_v45 = vrot.slane %v2111_v35, 5 }
 0x247   : > { %v1708_v20 = vrot.slane %v1706_v8, 4  ;;  %v1889_v55 = vld [vmem:[#allocation2 + $0x20] sm:$0x1]  ;;  %2285 = vst [vmem:[#allocation3 + $0x10] sm:$0xf] %v2090_v0  ;;  %v2117_v46 = vrot.slane %v2115_v36, 4 }
 0x248   : > { %v1945_v10 = vsel %vm5963_vm15, %v1943_v1, %v1944_v4  ;;  %v4559_v1 = vrot.slane %v1887_v63, 9  ;;  %v4588_v4 = vor.u32 %v5170_v47, %v4585_v60  ;;  %v1639_v6 = vld [vmem:[#allocation2 + $0x24] sm:$0xf]  ;;  %v4727_v47 = vld [vmem:[#allocation3 + $0x120] sm:$0xf] }
 0x249   : > { %2007 = vst [vmem:[#allocation3 + $0x74] sm:$0xf] %v1945_v10  ;;  %v1712_v27 = vor.u32 %v1711_v21, %v1708_v20  ;;  %v1730_v10 = vshrl.u32 %v1639_v6, 16  ;;  %v1733_v12 = vshll.u32 %v1639_v6, 16  ;;  %v5305_v20 = vld [vmem:[%s6546_s5 + $0x1f8] sm:$0xff]  ;;  %v2118_v60 = vor.u32 %v2117_v46, %v2113_v45 }
 0x24a   : > { %3932 = vmatpush.bf16.msrb.mxu3 %v5252_v17  ;;  %4079 = vmatpush.bf16.msrb.mxu2 %v5276_v23  ;;  %v2024_v17 = vld [vmem:[#allocation2 + $0x1c] sm:$0xf]  ;;  %v1721_v23 = vrot.slane %v1719_v13, 4  ;;  %v1949_v8 = vsel %vm5963_vm15, %v4559_v1, %v1948_v38  ;;  %v1739_v13 = vshll.u32 %v1640_v7, 16  ;;  %v2026_v21 = vld [vmem:[#allocation2 + $0x28] sm:$0xf] }
 0x24b   : > { %2040 = vst [vmem:[#allocation3 + $0x78] sm:$0xf] %v2024_v17  ;;  %v1713_v39 = vrot.slane %v1712_v27, 4  ;;  %v5313_v17 = vld [vmem:[%s6546_s5 + $0x238] sm:$0xff]  ;;  %v1745_v27 = vrot.slane %v1743_v14, 4  ;;  %4221 = vmatpush.bf16.msra.mxu0 %v5305_v20  ;;  %v2119_v0 = vrot.slane %v2118_v60, 4 }
 0x24c   : > { %v1722_v33 = vor.u32 %v1721_v23, %v1717_v22  ;;  %2008 = vst [vmem:[#allocation3 + $0x98] sm:$0xf] %v1949_v8  ;;  %v1732_v23 = vrot.slane %v1730_v10, 4  ;;  %v1741_v26 = vrot.slane %v1739_v13, 5  ;;  %v5189_v51 = vld [vmem:[#allocation3 + $0x9c] sm:$0xf] }
 0x24d   : > { %v4627_v37 = vld [vmem:[#allocation3 + $0x50] sm:$0xf]  ;;  %v1718_v50 = vsel %vm5940_vm12, %v1713_v39, %v1717_v22  ;;  %2042 = vst [vmem:[#allocation3 + $0xc0] sm:$0xf] %v2026_v21  ;;  %v1890_v1 = vld [vmem:[#allocation2 + $0x24] sm:$0xe] }
 0x24e   : > { %3933 = vmatpush.bf16.msrb.mxu3 %v5251_v32  ;;  %4080 = vmatpush.bf16.msrb.mxu2 %v5275_v34  ;;  %v2091_v32 = vshrl.u32 %v2054_v25, 16  ;;  %v1727_v34 = vrot.slane %v1725_v24, 5  ;;  %v1723_v43 = vrot.slane %v1722_v33, 4  ;;  %1869 = vst [vmem:[#allocation3 + $0x94] sm:$0xf] %v1718_v50  ;;  %v5288_v22 = vld [vmem:[%s6546_s5 + $0x170] sm:$0xff] }
 0x24f   : > { %v1735_v24 = vrot.slane %v1733_v12, 5  ;;  %v1641_v25 = vld [vmem:[#allocation2 + $0x2c] sm:$0x1]  ;;  %v2058_v33 = vld [vmem:[#allocation2 + $0x20] sm:$0x1] }
 0x250   : > { %v5184_v42 = vld [vmem:[#allocation3 + $0x70] sm:$0xf0]  ;;  %v1728_v54 = vsel %vm5940_vm12, %v1723_v43, %v1727_v34  ;;  %v1749_v30 = vshll.u32 %v1641_v25, 16  ;;  %v1643_v10 = vld [vmem:[#allocation2 + $0x34] sm:$0xf] }
 0x251   : > { %v4628_v48 = vor.u32 %v5184_v42, %v4627_v37  ;;  %1870 = vst [vmem:[#allocation3 + $0xb8] sm:$0xf] %v1728_v54  ;;  %v1736_v28 = vor.u32 %v1735_v24, %v1732_v23  ;;  %v4621_v54 = vld [vmem:[#allocation3 + $0x6c] sm:$0xf0]  ;;  %v2059_v12 = vld [vmem:[#allocation2 + $0x24] sm:$0xf] }
 0x252   : > { %3934 = vmatpush.bf16.msrb.mxu3 %v5250_v44  ;;  %4081 = vmatpush.bf16.msrb.mxu2 %v5274_v16  ;;  %v2093_v44 = vrot.slane %v2091_v32, 4  ;;  %v4629_v53 = vld [vmem:[#allocation3 + $0x74] sm:$0xf0]  ;;  %v2056_v16 = vld [vmem:[#allocation2 + $0x18] sm:$0xf]  ;;  %v1746_v32 = vor.u32 %v1745_v27, %v1741_v26  ;;  %v1751_v40 = vrot.slane %v1749_v30, 5 }
 0x253   : > { %v4632_v61 = vor.u32 %v5180_v49, %v4629_v53  ;;  %3989 = vmatmul.bf16.gmra.mxu1 %v4628_v48  ;;  %v2102_v31 = vshrl.u32 %v2056_v16, 16  ;;  %v2105_v34 = vshll.u32 %v2056_v16, 16  ;;  %v4663_v37 = vld [vmem:[#allocation3 + $0x98] sm:$0xf]  ;;  %v1737_v39 = vrot.slane %v1736_v28, 4  ;;  %v5296_v23 = vld [vmem:[%s6546_s5 + $0x1b0] sm:$0xff] }
 0x254   : > { %v2094_v57 = vor.u32 %v2093_v44, %v2089_v41  ;;  %v1747_v43 = vrot.slane %v1746_v32, 4  ;;  %v5210_v48 = vld [vmem:[#allocation3 + $0x140] sm:$0xf0]  ;;  %v5179_v49 = vld [vmem:[#allocation3 + $0x4c] sm:$0xf]  ;;  %v2121_v53 = vshll.u32 %v2058_v33, 16 }
 0x255   : > { %3896 = vmatmul.bf16.gmra.mxu2 %v4656_v2  ;;  %3921 = vmatmul.bf16.gmra.mxu3 %v4836_v3  ;;  %v1950_v2 = vrot.slane %v1948_v38, 4  ;;  %v1951_v3 = vrot.slane %v1889_v55, 5  ;;  %v2104_v41 = vrot.slane %v2102_v31, 4  ;;  %v2107_v44 = vrot.slane %v2105_v34, 5  ;;  %v4665_v29 = vld [vmem:[#allocation3 + $0xbc] sm:$0xf0] }
 0x256   : > { %4123 = vmatpush.bf16.msra.mxu3 %v5289_v18  ;;  %v2095_v62 = vrot.slane %v2094_v57, 4  ;;  %4038 = vmatmul.bf16.gmra.mxu0 %v4632_v61  ;;  %v5297_v18 = vld [vmem:[%s6546_s5 + $0x1b8] sm:$0xff]  ;;  %v1752_v57 = vsel %vm5940_vm12, %v1747_v43, %v1751_v40  ;;  %v1891_v61 = vld [vmem:[#allocation2 + $0x28] sm:$0xf]  ;;  %v2123_v38 = vrot.slane %v2121_v53, 5  ;;  %v4668_v63 = vor.u32 %v5189_v51, %v4665_v29  ;;  %v5287_v27 = vld [vmem:[%s6546_s5 + $0x168] sm:$0xff] }
 0x257   : > { %v1952_v9 = vsel %vm5963_vm15, %v1950_v2, %v1951_v3  ;;  %4270 = vmatpush.bf16.msra.mxu2 %v5313_v17  ;;  %4172 = vmatpush.bf16.msrb.mxu1 %v5297_v18  ;;  %v2108_v58 = vor.u32 %v2107_v44, %v2104_v41  ;;  %1872 = vst [vmem:[#allocation3 + $0x100] sm:$0xf] %v1752_v57  ;;  %v1892_v2 = vld [vmem:[#allocation2 + $0x2c] sm:$0x1]  ;;  %v4560_v3 = vrot.slane %v1890_v1, 9  ;;  %v1763_v17 = vshll.u32 %v1643_v10, 16 }
 0x258   : > { %v2100_v5 = vsel %vm5940_vm12, %v2095_v62, %v2099_v52  ;;  %2009 = vst [vmem:[#allocation3 + $0xbc] sm:$0xf] %v1952_v9  ;;  %v1742_v52 = vsel %vm5940_vm12, %v1737_v39, %v1741_v26  ;;  %v1955_v62 = vrot.slane %v1891_v61, 5  ;;  %v4624_v6 = vor.u32 %v5179_v49, %v4621_v54  ;;  %v1642_v9 = vld [vmem:[#allocation2 + $0x30] sm:$0xf]  ;;  %v5304_v25 = vld [vmem:[%s6546_s5 + $0x1f0] sm:$0xff] }
 0x259   : > { %2286 = vst [vmem:[#allocation3 + $0x34] sm:$0xf] %v2100_v5  ;;  %v2109_v55 = vrot.slane %v2108_v58, 4  ;;  %v4728_v5 = vor.u32 %v5210_v48, %v4727_v47  ;;  %v2124_v8 = vsel %vm5940_vm12, %v2119_v0, %v2123_v38  ;;  %v1754_v15 = vshrl.u32 %v1642_v9, 16  ;;  %v2027_v18 = vld [vmem:[#allocation2 + $0x30] sm:$0xf]  ;;  %4222 = vmatpush.bf16.msra.mxu0 %v5304_v25 }
 0x25a   : > { %4124 = vmatpush.bf16.msra.mxu3 %v5288_v22  ;;  %1871 = vst [vmem:[#allocation3 + $0xdc] sm:$0xf] %v1742_v52  ;;  %v1956_v13 = vsel %vm5963_vm15, %v4560_v3, %v1955_v62  ;;  %v1757_v16 = vshll.u32 %v1642_v9, 16  ;;  %v1767_v19 = vshrl.u32 %v1643_v10, 16  ;;  %v2060_v20 = vld [vmem:[#allocation2 + $0x28] sm:$0xf] }
 0x25b   : > { %v2114_v7 = vsel %vm5940_vm12, %v2109_v55, %v2113_v45  ;;  %2288 = vst [vmem:[#allocation3 + $0x7c] sm:$0xf] %v2124_v8  ;;  %v2126_v21 = vshrl.u32 %v2059_v12, 16  ;;  %v5312_v22 = vld [vmem:[%s6546_s5 + $0x230] sm:$0xff]  ;;  %v2129_v24 = vshll.u32 %v2059_v12, 16  ;;  %4173 = vmatpush.bf16.msrb.mxu1 %v5296_v23  ;;  %v1756_v30 = vrot.slane %v1754_v15, 4 }
 0x25c   : > { %2287 = vst [vmem:[#allocation3 + $0x58] sm:$0xf] %v2114_v7  ;;  %v2028_v26 = vld [vmem:[#allocation2 + $0x34] sm:$0xf]  ;;  %4271 = vmatpush.bf16.msra.mxu2 %v5312_v22  ;;  %v1644_v28 = vld [vmem:[#allocation2 + $0x38] sm:$0x1] }
 0x25d   : > { %2010 = vst [vmem:[#allocation3 + $0xe0] sm:$0xf] %v1956_v13  ;;  %v1759_v31 = vrot.slane %v1757_v16, 5  ;;  %v1765_v32 = vrot.slane %v1763_v17, 5  ;;  %v1769_v33 = vrot.slane %v1767_v19, 4  ;;  %v1773_v34 = vshll.u32 %v1644_v28, 16 }
 0x25e   : > { %2043 = vst [vmem:[#allocation3 + $0xe4] sm:$0xf] %v2027_v18  ;;  %4125 = vmatpush.bf16.msra.mxu3 %v5287_v27  ;;  %v2061_v35 = vld [vmem:[#allocation2 + $0x2c] sm:$0x1]  ;;  %v2128_v36 = vrot.slane %v2126_v21, 4  ;;  %v2131_v39 = vrot.slane %v2129_v24, 5 }
 0x25f   : > { %v5193_v42 = vld [vmem:[#allocation3 + $0xb8] sm:$0xf0]  ;;  %2044 = vst [vmem:[#allocation3 + $0x108] sm:$0xf] %v2028_v26  ;;  %v2135_v40 = vshll.u32 %v2060_v20, 16  ;;  %v2139_v41 = vshrl.u32 %v2060_v20, 16 }
 0x260   : > { %v4664_v50 = vor.u32 %v5193_v42, %v4663_v37  ;;  %v1760_v37 = vor.u32 %v1759_v31, %v1756_v30  ;;  %v1770_v42 = vor.u32 %v1769_v33, %v1765_v32  ;;  %v1775_v43 = vrot.slane %v1773_v34, 5  ;;  %v5188_v49 = vld [vmem:[#allocation3 + $0x94] sm:$0xf]  ;;  %v4599_v51 = vld [vmem:[#allocation3 + $0x10] sm:$0xf]  ;;  %v5311_v24 = vld [vmem:[%s6546_s5 + $0x228] sm:$0xff] }
 0x261   : > { %v2145_v44 = vshll.u32 %v2061_v35, 16  ;;  %v2132_v47 = vor.u32 %v2131_v39, %v2128_v36  ;;  %v2137_v48 = vrot.slane %v2135_v40, 5  ;;  %v5176_v52 = vld [vmem:[#allocation3 + $0x30] sm:$0xf0]  ;;  %v2141_v57 = vrot.slane %v2139_v41, 4  ;;  %v5295_v25 = vld [vmem:[%s6546_s5 + $0x1a8] sm:$0xff]  ;;  %4272 = vmatpush.bf16.msra.mxu2 %v5311_v24 }
 0x262   : > { %v1761_v46 = vrot.slane %v1760_v37, 4  ;;  %v1771_v54 = vrot.slane %v1770_v42, 4  ;;  %v1894_v38 = vld [vmem:[#allocation2 + $0x34] sm:$0xf]  ;;  %v4600_v10 = vor.u32 %v5176_v52, %v4599_v51  ;;  %v1645_v12 = vld [vmem:[#allocation2 + $0x3c] sm:$0xf]  ;;  %4174 = vmatpush.bf16.msrb.mxu1 %v5295_v25 }
 0x263   : > { %3994 = vmatmul.bf16.gmra.mxu1 %v4664_v50  ;;  %v4657_v50 = vld [vmem:[#allocation3 + $0xb4] sm:$0xf0]  ;;  %v2133_v29 = vrot.slane %v2132_v47, 4  ;;  %v2142_v55 = vor.u32 %v2141_v57, %v2137_v48  ;;  %v2147_v0 = vrot.slane %v2145_v44, 5  ;;  %v1962_v1 = vrot.slane %v1894_v38, 5  ;;  %v5303_v27 = vld [vmem:[%s6546_s5 + $0x1e8] sm:$0xff] }
 0x264   : > { %v4699_v45 = vld [vmem:[#allocation3 + $0xe0] sm:$0xf]  ;;  %v1766_v61 = vsel %vm5940_vm12, %v1761_v46, %v1765_v32  ;;  %v4660_v9 = vor.u32 %v5188_v49, %v4657_v50  ;;  %v1646_v13 = vld [vmem:[#allocation2 + $0x40] sm:$0xf]  ;;  %v2062_v17 = vld [vmem:[#allocation2 + $0x30] sm:$0xf]  ;;  %4223 = vmatpush.bf16.msra.mxu0 %v5303_v27 }
 0x265   : > { %3901 = vmatmul.bf16.gmra.mxu2 %v4692_v56  ;;  %3935 = vmatmul.bf16.vlgmr.msrb.gmra.mxu3 %v4588_v4  ;;  %v1957_v56 = vrot.slane %v1955_v62, 4  ;;  %v1958_v4 = vrot.slane %v1892_v2, 5  ;;  %v5198_v60 = vld [vmem:[#allocation3 + $0xe4] sm:$0xf]  ;;  %1873 = vst [vmem:[#allocation3 + $0x124] sm:$0xf] %v1766_v61  ;;  %v2138_v3 = vsel %vm5940_vm12, %v2133_v29, %v2137_v48 }
 0x266   : > { %4043 = vmatmul.bf16.gmra.mxu0 %v4668_v63  ;;  %v4701_v62 = vld [vmem:[#allocation3 + $0x104] sm:$0xf0]  ;;  %v1776_v63 = vsel %vm5940_vm12, %v1771_v54, %v1775_v43  ;;  %2289 = vst [vmem:[#allocation3 + $0xa0] sm:$0xf] %v2138_v3  ;;  %v1964_v7 = vrot.slane %v1962_v1, 4  ;;  %v1778_v18 = vshrl.u32 %v1645_v12, 16 }
 0x267   : > { %v1959_v14 = vsel %vm5963_vm15, %v1957_v56, %v1958_v4  ;;  %v4704_v2 = vor.u32 %v5198_v60, %v4701_v62  ;;  %1874 = vst [vmem:[#allocation3 + $0x148] sm:$0xf] %v1776_v63  ;;  %v1893_v56 = vld [vmem:[#allocation2 + $0x30] sm:$0xe]  ;;  %v1895_v4 = vld [vmem:[#allocation2 + $0x38] sm:$0x1] }
 0x268   : > { %2011 = vst [vmem:[#allocation3 + $0x104] sm:$0xf] %v1959_v14  ;;  %v1965_v8 = vrot.slane %v1895_v4, 5  ;;  %v1781_v19 = vshll.u32 %v1645_v12, 16  ;;  %v1787_v20 = vshll.u32 %v1646_v13, 16  ;;  %v1791_v21 = vshrl.u32 %v1646_v13, 16 }
 0x269   : > { %v2029_v22 = vld [vmem:[#allocation2 + $0x3c] sm:$0xf]  ;;  %v2030_v23 = vld [vmem:[#allocation2 + $0x40] sm:$0xf]  ;;  %v2150_v26 = vshrl.u32 %v2062_v17, 16  ;;  %v1780_v32 = vrot.slane %v1778_v18, 4 }
 0x26a   : > { %v1966_v16 = vsel %vm5963_vm15, %v1964_v7, %v1965_v8  ;;  %2045 = vst [vmem:[#allocation3 + $0x12c] sm:$0xf] %v2029_v22  ;;  %v5286_v28 = vld [vmem:[%s6546_s5 + $0x160] sm:$0xff]  ;;  %v2063_v30 = vld [vmem:[#allocation2 + $0x34] sm:$0xf]  ;;  %v1783_v33 = vrot.slane %v1781_v19, 5 }
 0x26b   : > { %2013 = vst [vmem:[#allocation3 + $0x14c] sm:$0xf] %v1966_v16  ;;  %v1647_v31 = vld [vmem:[#allocation2 + $0x44] sm:$0x1]  ;;  %4126 = vmatpush.bf16.msra.mxu3 %v5286_v28  ;;  %v1789_v34 = vrot.slane %v1787_v20, 5  ;;  %v1793_v35 = vrot.slane %v1791_v21, 4 }
 0x26c   : > { %2046 = vst [vmem:[#allocation3 + $0x150] sm:$0xf] %v2030_v23  ;;  %v2064_v36 = vld [vmem:[#allocation2 + $0x38] sm:$0x1]  ;;  %v1797_v37 = vshll.u32 %v1647_v31, 16  ;;  %v2152_v39 = vrot.slane %v2150_v26, 4  ;;  %v1784_v42 = vor.u32 %v1783_v33, %v1780_v32 }
 0x26d   : > { %v2153_v40 = vshll.u32 %v2062_v17, 16  ;;  %v2159_v41 = vshll.u32 %v2063_v30, 16  ;;  %v1794_v43 = vor.u32 %v1793_v35, %v1789_v34  ;;  %v2163_v44 = vshrl.u32 %v2063_v30, 16  ;;  %v5197_v46 = vld [vmem:[#allocation3 + $0xdc] sm:$0xf]  ;;  %v5310_v27 = vld [vmem:[%s6546_s5 + $0x220] sm:$0xff] }
 0x26e   : > { %v4693_v47 = vld [vmem:[#allocation3 + $0xfc] sm:$0xf0]  ;;  %v1799_v49 = vrot.slane %v1797_v37, 5  ;;  %v4635_v52 = vld [vmem:[#allocation3 + $0x58] sm:$0xf]  ;;  %v1785_v54 = vrot.slane %v1784_v42, 4  ;;  %4273 = vmatpush.bf16.msra.mxu2 %v5310_v27 }
 0x26f   : > { %v5202_v53 = vld [vmem:[#allocation3 + $0x100] sm:$0xf0]  ;;  %v2155_v50 = vrot.slane %v2153_v40, 5  ;;  %v2161_v51 = vrot.slane %v2159_v41, 5  ;;  %v1795_v57 = vrot.slane %v1794_v43, 4  ;;  %v5285_v37 = vld [vmem:[%s6546_s5 + $0x158] sm:$0xff] }
 0x270   : > { %v4700_v58 = vor.u32 %v5202_v53, %v4699_v45  ;;  %v2169_v45 = vshll.u32 %v2064_v36, 16  ;;  %v1897_v62 = vld [vmem:[#allocation2 + $0x40] sm:$0xf]  ;;  %v5185_v63 = vld [vmem:[#allocation3 + $0x78] sm:$0xf0]  ;;  %v5294_v28 = vld [vmem:[%s6546_s5 + $0x1a0] sm:$0xff]  ;;  %4127 = vmatpush.bf16.msra.mxu3 %v5285_v37 }
 0x271   : > { %v5207_v61 = vld [vmem:[#allocation3 + $0x12c] sm:$0xf]  ;;  %v2156_v29 = vor.u32 %v2155_v50, %v2152_v39  ;;  %v1969_v3 = vrot.slane %v1897_v62, 5  ;;  %v1649_v16 = vld [vmem:[#allocation2 + $0x4c] sm:$0xf]  ;;  %4175 = vmatpush.bf16.msrb.mxu1 %v5294_v28  ;;  %v5302_v36 = vld [vmem:[%s6546_s5 + $0x1e0] sm:$0xff] }
 0x272   : > { %v5211_v53 = vld [vmem:[#allocation3 + $0x148] sm:$0xf0]  ;;  %v2171_v38 = vrot.slane %v2169_v45, 5  ;;  %v1811_v22 = vshll.u32 %v1649_v16, 16  ;;  %v1815_v23 = vshrl.u32 %v1649_v16, 16  ;;  %4224 = vmatpush.bf16.msra.mxu0 %v5302_v36 }
 0x273   : > { %3999 = vmatmul.bf16.gmra.mxu1 %v4700_v58  ;;  %v2165_v58 = vrot.slane %v2163_v44, 4  ;;  %v2157_v4 = vrot.slane %v2156_v29, 4  ;;  %v1898_v8 = vld [vmem:[#allocation2 + $0x44] sm:$0x1]  ;;  %v1971_v13 = vrot.slane %v1969_v3, 4 }
 0x274   : > { %v2065_v24 = vld [vmem:[#allocation2 + $0x3c] sm:$0xf]  ;;  %v2031_v25 = vld [vmem:[#allocation2 + $0x48] sm:$0xf]  ;;  %v2032_v26 = vld [vmem:[#allocation2 + $0x4c] sm:$0xf] }
 0x275   : > { %3906 = vmatmul.bf16.gmra.mxu2 %v4728_v5  ;;  %3940 = vmatmul.bf16.gmra.mxu3 %v4624_v6  ;;  %v2143_v5 = vrot.slane %v2142_v55, 4  ;;  %v4561_v6 = vrot.slane %v1893_v56, 9  ;;  %v4737_v55 = vld [vmem:[#allocation3 + $0x14c] sm:$0xf0]  ;;  %v2162_v12 = vsel %vm5940_vm12, %v2157_v4, %v2161_v51  ;;  %v1650_v30 = vld [vmem:[#allocation2 + $0x50] sm:$0x1] }
 0x276   : > { %4048 = vmatmul.bf16.gmra.mxu0 %v4704_v2  ;;  %v2166_v2 = vor.u32 %v2165_v58, %v2161_v51  ;;  %v4740_v56 = vor.u32 %v5207_v61, %v4737_v55  ;;  %2291 = vst [vmem:[#allocation3 + $0xe8] sm:$0xf] %v2162_v12  ;;  %v2066_v33 = vld [vmem:[#allocation2 + $0x40] sm:$0xf]  ;;  %v1817_v35 = vrot.slane %v1815_v23, 4  ;;  %v1821_v40 = vshll.u32 %v1650_v30, 16 }
 0x277   : > { %v2148_v14 = vsel %vm5940_vm12, %v2143_v5, %v2147_v0  ;;  %v1963_v15 = vsel %vm5963_vm15, %v4561_v6, %v1962_v1  ;;  %v1790_v0 = vsel %vm5940_vm12, %v1785_v54, %v1789_v34  ;;  %v1800_v1 = vsel %vm5940_vm12, %v1795_v57, %v1799_v49  ;;  %v1896_v5 = vld [vmem:[#allocation2 + $0x3c] sm:$0xe]  ;;  %2047 = vst [vmem:[#allocation3 + $0x174] sm:$0xf] %v2031_v25  ;;  %v2067_v41 = vld [vmem:[#allocation2 + $0x44] sm:$0x1] }
 0x278   : > { %2290 = vst [vmem:[#allocation3 + $0xc4] sm:$0xf] %v2148_v14  ;;  %v4696_v6 = vor.u32 %v5197_v46, %v4693_v47  ;;  %v2167_v7 = vrot.slane %v2166_v2, 4  ;;  %v1972_v14 = vrot.slane %v1898_v8, 5  ;;  %v1813_v34 = vrot.slane %v1811_v22, 5 }
 0x279   : > { %2012 = vst [vmem:[#allocation3 + $0x128] sm:$0xf] %v1963_v15  ;;  %v1648_v15 = vld [vmem:[#allocation2 + $0x48] sm:$0xf]  ;;  %v2174_v42 = vshrl.u32 %v2065_v24, 16  ;;  %v2177_v44 = vshll.u32 %v2065_v24, 16 }
 0x27a   : > { %1875 = vst [vmem:[#allocation3 + $0x16c] sm:$0xf] %v1790_v0  ;;  %v2172_v17 = vsel %vm5940_vm12, %v2167_v7, %v2171_v38  ;;  %v1802_v19 = vshrl.u32 %v1648_v15, 16  ;;  %v1805_v20 = vshll.u32 %v1648_v15, 16  ;;  %v1973_v21 = vsel %vm5963_vm15, %v1971_v13, %v1972_v14  ;;  %v5206_v57 = vld [vmem:[#allocation3 + $0x124] sm:$0xf] }
 0x27b   : > { %1876 = vst [vmem:[#allocation3 + $0x190] sm:$0xf] %v1800_v1  ;;  %v1818_v43 = vor.u32 %v1817_v35, %v1813_v34  ;;  %v2183_v45 = vshll.u32 %v2066_v33, 16  ;;  %v2187_v46 = vshrl.u32 %v2066_v33, 16  ;;  %v2176_v49 = vrot.slane %v2174_v42, 4  ;;  %v5284_v42 = vld [vmem:[%s6546_s5 + $0x150] sm:$0xff] }
 0x27c   : > { %2292 = vst [vmem:[#allocation3 + $0x10c] sm:$0xf] %v2172_v17  ;;  %v1804_v31 = vrot.slane %v1802_v19, 4  ;;  %v1807_v32 = vrot.slane %v1805_v20, 5  ;;  %v2193_v50 = vshll.u32 %v2067_v41, 16  ;;  %v5301_v41 = vld [vmem:[%s6546_s5 + $0x1d8] sm:$0xff]  ;;  %4128 = vmatpush.bf16.msra.mxu3 %v5284_v42 }
 0x27d   : > { %2015 = vst [vmem:[#allocation3 + $0x194] sm:$0xf] %v1973_v21  ;;  %v2185_v54 = vrot.slane %v2183_v45, 5  ;;  %v4729_v58 = vld [vmem:[#allocation3 + $0x144] sm:$0xf0]  ;;  %v2189_v62 = vrot.slane %v2187_v46, 4  ;;  %4225 = vmatpush.bf16.msra.mxu0 %v5301_v41 }
 0x27e   : > { %2048 = vst [vmem:[#allocation3 + $0x198] sm:$0xf] %v2032_v26  ;;  %v1808_v39 = vor.u32 %v1807_v32, %v1804_v31  ;;  %v5216_v55 = vld [vmem:[#allocation3 + $0x174] sm:$0xf]  ;;  %v2195_v4 = vrot.slane %v2193_v50, 5  ;;  %v4732_v15 = vor.u32 %v5206_v57, %v4729_v58  ;;  %v5309_v31 = vld [vmem:[%s6546_s5 + $0x218] sm:$0xff] }
 0x27f   : > { %v5194_v61 = vld [vmem:[#allocation3 + $0xc0] sm:$0xf0]  ;;  %v1900_v2 = vld [vmem:[#allocation2 + $0x4c] sm:$0xf]  ;;  %v1899_v8 = vld [vmem:[#allocation2 + $0x48] sm:$0xe]  ;;  %4274 = vmatpush.bf16.msra.mxu2 %v5309_v31 }
 0x280   : > { %v4735_v48 = vld [vmem:[#allocation3 + $0x128] sm:$0xf]  ;;  %v1809_v47 = vrot.slane %v1808_v39, 4  ;;  %v4563_v12 = vrot.slane %v1899_v8, 9  ;;  %v1652_v19 = vld [vmem:[#allocation2 + $0x58] sm:$0xf] }
 0x281   : > { %v4736_v60 = vor.u32 %v5211_v53, %v4735_v48  ;;  %v1823_v48 = vrot.slane %v1821_v40, 5  ;;  %v2179_v53 = vrot.slane %v2177_v44, 5  ;;  %v2068_v20 = vld [vmem:[#allocation2 + $0x48] sm:$0xf]  ;;  %v1835_v26 = vshll.u32 %v1652_v19, 16  ;;  %v5293_v32 = vld [vmem:[%s6546_s5 + $0x198] sm:$0xff] }
 0x282   : > { %v1814_v38 = vsel %vm5940_vm12, %v1809_v47, %v1813_v34  ;;  %v1839_v27 = vshrl.u32 %v1652_v19, 16  ;;  %v2033_v28 = vld [vmem:[#allocation2 + $0x54] sm:$0xf]  ;;  %v2198_v30 = vshrl.u32 %v2068_v20, 16  ;;  %v2069_v33 = vld [vmem:[#allocation2 + $0x4c] sm:$0xf]  ;;  %4176 = vmatpush.bf16.msrb.mxu1 %v5293_v32 }
 0x283   : > { %4004 = vmatmul.bf16.gmra.mxu1 %v4736_v60  ;;  %v4671_v60 = vld [vmem:[#allocation3 + $0xa0] sm:$0xf]  ;;  %1877 = vst [vmem:[#allocation3 + $0x1b4] sm:$0xf] %v1814_v38  ;;  %v2180_v1 = vor.u32 %v2179_v53, %v2176_v49  ;;  %v1653_v35 = vld [vmem:[#allocation2 + $0x5c] sm:$0x1] }
 0x284   : > { %v5220_v29 = vld [vmem:[#allocation3 + $0x190] sm:$0xf0]  ;;  %v4672_v16 = vor.u32 %v5194_v61, %v4671_v60  ;;  %v2034_v34 = vld [vmem:[#allocation2 + $0x58] sm:$0xf]  ;;  %2049 = vst [vmem:[#allocation3 + $0x1bc] sm:$0xf] %v2033_v28 }
 0x285   : > { %3945 = vmatmul.bf16.gmra.mxu3 %v4660_v9  ;;  %4082 = vmatmul.bf16.vlgmr.msrb.gmra.mxu2 %v4600_v10  ;;  %v4562_v9 = vrot.slane %v1896_v5, 9  ;;  %v4636_v10 = vor.u32 %v5185_v63, %v4635_v52  ;;  %v1819_v52 = vrot.slane %v1818_v43, 4  ;;  %v1976_v5 = vrot.slane %v1900_v2, 5  ;;  %2050 = vst [vmem:[#allocation3 + $0x1e0] sm:$0xf] %v2034_v34  ;;  %v5292_v34 = vld [vmem:[%s6546_s5 + $0x190] sm:$0xff] }
 0x286   : > { %4053 = vmatmul.bf16.gmra.mxu0 %v4740_v56  ;;  %v2190_v56 = vor.u32 %v2189_v62, %v2185_v54  ;;  %v2181_v7 = vrot.slane %v2180_v1, 4  ;;  %v1837_v39 = vrot.slane %v1835_v26, 5  ;;  %v1841_v40 = vrot.slane %v1839_v27, 4  ;;  %v2070_v44 = vld [vmem:[#allocation2 + $0x50] sm:$0x1]  ;;  %4177 = vmatpush.bf16.msrb.mxu1 %v5292_v34  ;;  %v5300_v42 = vld [vmem:[%s6546_s5 + $0x1d0] sm:$0xff] }
 0x287   : > { %v1970_v18 = vsel %vm5963_vm15, %v4562_v9, %v1969_v3  ;;  %v1824_v0 = vsel %vm5940_vm12, %v1819_v52, %v1823_v48  ;;  %v4773_v3 = vld [vmem:[#allocation3 + $0x194] sm:$0xf0]  ;;  %v1978_v13 = vrot.slane %v1976_v5, 4  ;;  %v1977_v22 = vsel %vm5963_vm15, %v4563_v12, %v1976_v5  ;;  %v5215_v60 = vld [vmem:[#allocation3 + $0x16c] sm:$0xf]  ;;  %4226 = vmatpush.bf16.msra.mxu0 %v5300_v42 }
 0x288   : > { %2014 = vst [vmem:[#allocation3 + $0x170] sm:$0xf] %v1970_v18  ;;  %v1901_v9 = vld [vmem:[#allocation2 + $0x50] sm:$0x1]  ;;  %v2186_v17 = vsel %vm5940_vm12, %v2181_v7, %v2185_v54  ;;  %v1651_v18 = vld [vmem:[#allocation2 + $0x54] sm:$0xf]  ;;  %v1842_v47 = vor.u32 %v1841_v40, %v1837_v39 }
 0x289   : > { %1878 = vst [vmem:[#allocation3 + $0x1d8] sm:$0xf] %v1824_v0  ;;  %v1979_v14 = vrot.slane %v1901_v9, 5  ;;  %v1826_v24 = vshrl.u32 %v1651_v18, 16  ;;  %v1829_v25 = vshll.u32 %v1651_v18, 16  ;;  %v1845_v43 = vshll.u32 %v1653_v35, 16 }
 0x28a   : > { %2293 = vst [vmem:[#allocation3 + $0x130] sm:$0xf] %v2186_v17  ;;  %v2200_v45 = vrot.slane %v2198_v30, 4  ;;  %v2201_v48 = vshll.u32 %v2068_v20, 16  ;;  %v2207_v49 = vshll.u32 %v2069_v33, 16  ;;  %v2217_v52 = vshll.u32 %v2070_v44, 16 }
 0x28b   : > { %v1980_v23 = vsel %vm5963_vm15, %v1978_v13, %v1979_v14  ;;  %2016 = vst [vmem:[#allocation3 + $0x1b8] sm:$0xf] %v1977_v22  ;;  %v1828_v36 = vrot.slane %v1826_v24, 4  ;;  %v1831_v37 = vrot.slane %v1829_v25, 5  ;;  %v1847_v50 = vrot.slane %v1845_v43, 5  ;;  %v5283_v43 = vld [vmem:[%s6546_s5 + $0x148] sm:$0xff] }
 0x28c   : > { %2017 = vst [vmem:[#allocation3 + $0x1dc] sm:$0xf] %v1980_v23  ;;  %v1843_v57 = vrot.slane %v1842_v47, 4  ;;  %v2203_v58 = vrot.slane %v2201_v48, 5  ;;  %v4765_v61 = vld [vmem:[#allocation3 + $0x18c] sm:$0xf0]  ;;  %4129 = vmatpush.bf16.msra.mxu3 %v5283_v43 }
 0x28d   : > { %v1832_v46 = vor.u32 %v1831_v37, %v1828_v36  ;;  %v2209_v62 = vrot.slane %v2207_v49, 5  ;;  %v5225_v1 = vld [vmem:[#allocation3 + $0x1bc] sm:$0xf]  ;;  %v4809_v5 = vld [vmem:[#allocation3 + $0x1dc] sm:$0xf0]  ;;  %v2219_v7 = vrot.slane %v2217_v52, 5  ;;  %v4768_v17 = vor.u32 %v5215_v60, %v4765_v61 }
 0x28e   : > { %v4812_v9 = vor.u32 %v5225_v1, %v4809_v5  ;;  %v1902_v12 = vld [vmem:[#allocation2 + $0x54] sm:$0xe]  ;;  %v1904_v14 = vld [vmem:[#allocation2 + $0x5c] sm:$0x1]  ;;  %v2072_v22 = vld [vmem:[#allocation2 + $0x58] sm:$0xf] }
 0x28f   : > { %v4771_v51 = vld [vmem:[#allocation3 + $0x170] sm:$0xf]  ;;  %v1833_v54 = vrot.slane %v1832_v46, 4  ;;  %v1986_v20 = vrot.slane %v1904_v14, 5  ;;  %v2231_v28 = vshll.u32 %v2072_v22, 16  ;;  %v2235_v30 = vshrl.u32 %v2072_v22, 16 }
 0x290   : > { %v4772_v63 = vor.u32 %v5220_v29, %v4771_v51  ;;  %v2211_v51 = vshrl.u32 %v2069_v33, 16  ;;  %v4707_v29 = vld [vmem:[#allocation3 + $0xe8] sm:$0xf]  ;;  %v2036_v32 = vld [vmem:[#allocation2 + $0x64] sm:$0xf]  ;;  %v5308_v33 = vld [vmem:[%s6546_s5 + $0x210] sm:$0xff] }
 0x291   : > { %v1838_v2 = vsel %vm5940_vm12, %v1833_v54, %v1837_v39  ;;  %v2035_v31 = vld [vmem:[#allocation2 + $0x60] sm:$0xf]  ;;  %v2073_v35 = vld [vmem:[#allocation2 + $0x5c] sm:$0x1]  ;;  %4275 = vmatpush.bf16.msra.mxu2 %v5308_v33  ;;  %2052 = vst [vmem:[#allocation3 + $0x228] sm:$0xf] %v2036_v32 }
 0x292   : > { %v4807_v53 = vld [vmem:[#allocation3 + $0x1b8] sm:$0xf]  ;;  %1879 = vst [vmem:[#allocation3 + $0x1fc] sm:$0xf] %v1838_v2  ;;  %v2233_v39 = vrot.slane %v2231_v28, 5  ;;  %v2237_v44 = vrot.slane %v2235_v30, 4 }
 0x293   : > { %4009 = vmatmul.bf16.gmra.mxu1 %v4772_v63  ;;  %v5229_v38 = vld [vmem:[#allocation3 + $0x1d8] sm:$0xf0]  ;;  %v2213_v63 = vrot.slane %v2211_v51, 4  ;;  %2051 = vst [vmem:[#allocation3 + $0x204] sm:$0xf] %v2035_v31  ;;  %v5307_v43 = vld [vmem:[%s6546_s5 + $0x208] sm:$0xff] }
 0x294   : > { %v4808_v0 = vor.u32 %v5229_v38, %v4807_v53  ;;  %v2301_v46 = vld [vmem:[#allocation2 + $0xc] sm:$0xe]  ;;  %v2302_v48 = vld [vmem:[#allocation2 + $0x10] sm:$0xf]  ;;  %v2303_v49 = vld [vmem:[#allocation2 + $0x14] sm:$0x1] }
 0x295   : > { %3950 = vmatmul.bf16.gmra.mxu3 %v4696_v6  ;;  %4087 = vmatmul.bf16.gmra.mxu2 %v4636_v10  ;;  %v4776_v6 = vor.u32 %v5216_v55, %v4773_v3  ;;  %v2191_v10 = vrot.slane %v2190_v56, 4  ;;  %v5203_v55 = vld [vmem:[#allocation3 + $0x108] sm:$0xf0]  ;;  %v1848_v3 = vsel %vm5940_vm12, %v1843_v57, %v1847_v50  ;;  %v2204_v56 = vor.u32 %v2203_v58, %v2200_v45  ;;  %v2470_v60 = vld [vmem:[#allocation2 + $0x18] sm:$0xf] }
 0x296   : > { %1880 = vst [vmem:[#allocation3 + $0x220] sm:$0xf] %v1848_v3  ;;  %v4708_v18 = vor.u32 %v5203_v55, %v4707_v29  ;;  %v2241_v45 = vshll.u32 %v2073_v35, 16  ;;  %v2238_v50 = vor.u32 %v2237_v44, %v2233_v39  ;;  %v4565_v52 = vrot.slane %v2301_v46, 9  ;;  %v5224_v61 = vld [vmem:[#allocation3 + $0x1b4] sm:$0xf]  ;;  %4276 = vmatpush.bf16.msra.mxu2 %v5307_v43 }
 0x297   : > { %4058 = vmatmul.bf16.gmra.mxu0 %v4776_v6  ;;  %v2196_v21 = vsel %vm5940_vm12, %v2191_v10, %v2195_v4  ;;  %v1903_v4 = vld [vmem:[#allocation2 + $0x58] sm:$0xf]  ;;  %v2214_v6 = vor.u32 %v2213_v63, %v2209_v62  ;;  %v2205_v10 = vrot.slane %v2204_v56, 4  ;;  %v2351_v53 = vrot.slane %v2302_v48, 5  ;;  %v4801_v29 = vld [vmem:[#allocation3 + $0x1d4] sm:$0xf0] }
 0x298   : > { %2294 = vst [vmem:[#allocation3 + $0x154] sm:$0xf] %v2196_v21  ;;  %v1983_v8 = vrot.slane %v1903_v4, 5  ;;  %v2071_v21 = vld [vmem:[#allocation2 + $0x54] sm:$0xf]  ;;  %v2243_v51 = vrot.slane %v2241_v45, 5 }
 0x299   : > { %v2215_v13 = vrot.slane %v2214_v6, 4  ;;  %v2210_v19 = vsel %vm5940_vm12, %v2205_v10, %v2209_v62  ;;  %v2222_v25 = vshrl.u32 %v2071_v21, 16  ;;  %v2225_v27 = vshll.u32 %v2071_v21, 16  ;;  %v4743_v38 = vld [vmem:[#allocation3 + $0x130] sm:$0xf] }
 0x29a   : > { %2295 = vst [vmem:[#allocation3 + $0x178] sm:$0xf] %v2210_v19  ;;  %v2354_v58 = vrot.slane %v2303_v49, 5  ;;  %v2239_v55 = vrot.slane %v2238_v50, 4  ;;  %v2353_v1 = vrot.slane %v2351_v53, 4  ;;  %v2495_v5 = vshrl.u32 %v2470_v60, 16 }
 0x29b   : > { %v2220_v23 = vsel %vm5940_vm12, %v2215_v13, %v2219_v7  ;;  %v2224_v36 = vrot.slane %v2222_v25, 4  ;;  %v2227_v37 = vrot.slane %v2225_v27, 5  ;;  %v2471_v2 = vld [vmem:[#allocation2 + $0x1c] sm:$0xf]  ;;  %v2498_v6 = vshll.u32 %v2470_v60, 16 }
 0x29c   : > { %2296 = vst [vmem:[#allocation3 + $0x19c] sm:$0xf] %v2220_v23  ;;  %v5234_v56 = vld [vmem:[#allocation3 + $0x204] sm:$0xf]  ;;  %v4845_v7 = vld [vmem:[#allocation3 + $0x224] sm:$0xf0]  ;;  %v4804_v23 = vor.u32 %v5224_v61, %v4801_v29 }
 0x29d   : > { %v2228_v47 = vor.u32 %v2227_v37, %v2224_v36  ;;  %v2504_v10 = vshll.u32 %v2471_v2, 16  ;;  %v4848_v13 = vor.u32 %v5234_v56, %v4845_v7  ;;  %v2472_v14 = vld [vmem:[#allocation2 + $0x20] sm:$0x1]  ;;  %v5282_v19 = vld [vmem:[%s6546_s5 + $0x140] sm:$0xff]  ;;  %v2075_v27 = vld [vmem:[#allocation2 + $0x64] sm:$0xf] }
 0x29e   : > { %v2514_v22 = vshll.u32 %v2472_v14, 16  ;;  %4130 = vmatpush.bf16.msra.mxu3 %v5282_v19  ;;  %v2438_v28 = vld [vmem:[#allocation2 + $0x18] sm:$0xf]  ;;  %v2439_v30 = vld [vmem:[#allocation2 + $0x1c] sm:$0xf]  ;;  %v2255_v36 = vshll.u32 %v2075_v27, 16 }
 0x29f   : > { %v2229_v57 = vrot.slane %v2228_v47, 4  ;;  %v5212_v62 = vld [vmem:[#allocation3 + $0x150] sm:$0xf0]  ;;  %2454 = vst [vmem:[#allocation3 + $0x18] sm:$0xf] %v2438_v28  ;;  %v2259_v37 = vshrl.u32 %v2075_v27, 16 }
 0x2a0   : > { %v2516_v32 = vrot.slane %v2514_v22, 5  ;;  %2455 = vst [vmem:[#allocation3 + $0x3c] sm:$0xf] %v2439_v30  ;;  %v2076_v45 = vld [vmem:[#allocation2 + $0x68] sm:$0x1]  ;;  %v5299_v47 = vld [vmem:[%s6546_s5 + $0x1c8] sm:$0xff] }
 0x2a1   : > { %v2234_v4 = vsel %vm5940_vm12, %v2229_v57, %v2233_v39  ;;  %v5291_v39 = vld [vmem:[%s6546_s5 + $0x188] sm:$0xff]  ;;  %v2257_v50 = vrot.slane %v2255_v36, 5  ;;  %4227 = vmatpush.bf16.msra.mxu0 %v5299_v47  ;;  %v2304_v60 = vld [vmem:[#allocation2 + $0x18] sm:$0xe]  ;;  %v2305_v61 = vld [vmem:[#allocation2 + $0x1c] sm:$0xf] }
 0x2a2   : > { %2297 = vst [vmem:[#allocation3 + $0x1c0] sm:$0xf] %v2234_v4  ;;  %4178 = vmatpush.bf16.msrb.mxu1 %v5291_v39  ;;  %v2473_v7 = vld [vmem:[#allocation2 + $0x24] sm:$0xf] }
 0x2a3   : > { %4014 = vmatmul.bf16.gmra.mxu1 %v4808_v0  ;;  %v2352_v0 = vsel %vm5963_vm15, %v4565_v52, %v2351_v53  ;;  %v2519_v19 = vshrl.u32 %v2473_v7, 16 }
 0x2a4   : > { %2421 = vst [vmem:[#allocation3 + $0x14] sm:$0xf] %v2352_v0 }
 0x2a5   : > { %3955 = vmatmul.bf16.gmra.mxu3 %v4732_v15  ;;  %4092 = vmatmul.bf16.gmra.mxu2 %v4672_v16  ;;  %v4564_v15 = vrot.slane %v1902_v12, 9  ;;  %v1985_v16 = vrot.slane %v1983_v8, 4  ;;  %v2508_v12 = vshrl.u32 %v2471_v2, 16  ;;  %v2521_v27 = vrot.slane %v2519_v19, 4 }
 0x2a6   : > { %v4607_v0 = vld [vmem:[#allocation3 + $0x18] sm:$0xf] }
 0x2a7   : > { %4063 = vmatmul.bf16.gmra.mxu0 %v4812_v9  ;;  %v1984_v24 = vsel %vm5963_vm15, %v4564_v15, %v1983_v8  ;;  %v1987_v26 = vsel %vm5963_vm15, %v1985_v16, %v1986_v20  ;;  %v2244_v8 = vsel %vm5940_vm12, %v2239_v55, %v2243_v51  ;;  %v2355_v9 = vsel %vm5963_vm15, %v2353_v1, %v2354_v58  ;;  %v5298_v55 = vld [vmem:[%s6546_s5 + $0x1c0] sm:$0xff]  ;;  %v5177_v56 = vld [vmem:[#allocation3 + $0x38] sm:$0xf0] }
 0x2a8   : > { %2018 = vst [vmem:[#allocation3 + $0x200] sm:$0xf] %v1984_v24  ;;  %v2497_v15 = vrot.slane %v2495_v5, 4  ;;  %v2500_v16 = vrot.slane %v2498_v6, 5  ;;  %v2506_v20 = vrot.slane %v2504_v10, 5  ;;  %v2510_v21 = vrot.slane %v2508_v12, 4  ;;  %4228 = vmatpush.bf16.msra.mxu0 %v5298_v55 }
 0x2a9   : > { %2019 = vst [vmem:[#allocation3 + $0x224] sm:$0xf] %v1987_v26  ;;  %v4744_v24 = vor.u32 %v5212_v62, %v4743_v38  ;;  %v2074_v26 = vld [vmem:[#allocation2 + $0x60] sm:$0xf]  ;;  %v2261_v51 = vrot.slane %v2259_v37, 4  ;;  %v2265_v58 = vshll.u32 %v2076_v45, 16  ;;  %v4608_v14 = vor.u32 %v5177_v56, %v4607_v0 }
 0x2aa   : > { %2298 = vst [vmem:[#allocation3 + $0x1e4] sm:$0xf] %v2244_v8  ;;  %v2501_v25 = vor.u32 %v2500_v16, %v2497_v15  ;;  %v2511_v31 = vor.u32 %v2510_v21, %v2506_v20  ;;  %v2246_v33 = vshrl.u32 %v2074_v26, 16  ;;  %v2249_v35 = vshll.u32 %v2074_v26, 16  ;;  %v2306_v38 = vld [vmem:[#allocation2 + $0x20] sm:$0x1] }
 0x2ab   : > { %2422 = vst [vmem:[#allocation3 + $0x38] sm:$0xf] %v2355_v9  ;;  %v2262_v29 = vor.u32 %v2261_v51, %v2257_v50  ;;  %v4566_v62 = vrot.slane %v2304_v60, 9  ;;  %v2267_v2 = vrot.slane %v2265_v58, 5  ;;  %v5233_v8 = vld [vmem:[#allocation3 + $0x1fc] sm:$0xf] }
 0x2ac   : > { %v2502_v34 = vrot.slane %v2501_v25, 4  ;;  %v2512_v42 = vrot.slane %v2511_v31, 4  ;;  %v2248_v46 = vrot.slane %v2246_v33, 4  ;;  %v2251_v49 = vrot.slane %v2249_v35, 5  ;;  %v4837_v9 = vld [vmem:[#allocation3 + $0x21c] sm:$0xf0] }
 0x2ad   : > { %v2263_v4 = vrot.slane %v2262_v29, 4  ;;  %v4779_v10 = vld [vmem:[#allocation3 + $0x178] sm:$0xf]  ;;  %v5221_v12 = vld [vmem:[#allocation3 + $0x198] sm:$0xf0] }
 0x2ae   : > { %v2507_v44 = vsel %vm5940_vm12, %v2502_v34, %v2506_v20  ;;  %v2517_v48 = vsel %vm5940_vm12, %v2512_v42, %v2516_v32  ;;  %v2252_v57 = vor.u32 %v2251_v49, %v2248_v46  ;;  %v2474_v16 = vld [vmem:[#allocation2 + $0x28] sm:$0xf]  ;;  %v2522_v20 = vshll.u32 %v2473_v7, 16  ;;  %v2475_v32 = vld [vmem:[#allocation2 + $0x2c] sm:$0x1] }
 0x2af   : > { %v4843_v54 = vld [vmem:[#allocation3 + $0x200] sm:$0xf]  ;;  %2702 = vst [vmem:[#allocation3 + $0x1c] sm:$0xf] %v2507_v44  ;;  %v2268_v22 = vsel %vm5940_vm12, %v2263_v4, %v2267_v2  ;;  %v2532_v25 = vshrl.u32 %v2474_v16, 16  ;;  %v2538_v39 = vshll.u32 %v2475_v32, 16  ;;  %v4840_v42 = vor.u32 %v5233_v8, %v4837_v9 }
 0x2b0   : > { %v5238_v63 = vld [vmem:[#allocation3 + $0x220] sm:$0xf0]  ;;  %2703 = vst [vmem:[#allocation3 + $0x40] sm:$0xf] %v2517_v48  ;;  %v2253_v1 = vrot.slane %v2252_v57, 4  ;;  %v2524_v28 = vrot.slane %v2522_v20, 5  ;;  %v4780_v43 = vor.u32 %v5221_v12, %v4779_v10 }
 0x2b1   : > { %v4844_v3 = vor.u32 %v5238_v63, %v4843_v54  ;;  %v5290_v54 = vld [vmem:[%s6546_s5 + $0x180] sm:$0xff]  ;;  %v2358_v63 = vrot.slane %v2305_v61, 5  ;;  %2300 = vst [vmem:[#allocation3 + $0x22c] sm:$0xf] %v2268_v22  ;;  %v2534_v34 = vrot.slane %v2532_v25, 4  ;;  %v2540_v48 = vrot.slane %v2538_v39, 5 }
 0x2b2   : > { %4179 = vmatpush.bf16.msrb.mxu1 %v5290_v54  ;;  %v2258_v15 = vsel %vm5940_vm12, %v2253_v1, %v2257_v50  ;;  %v2525_v37 = vor.u32 %v2524_v28, %v2521_v27  ;;  %v2440_v45 = vld [vmem:[#allocation2 + $0x24] sm:$0xf]  ;;  %v2441_v46 = vld [vmem:[#allocation2 + $0x28] sm:$0xf]  ;;  %v5306_v54 = vld [vmem:[%s6546_s5 + $0x200] sm:$0xff] }
 0x2b3   : > { %4019 = vmatmul.bf16.gmra.mxu1 %v4844_v3  ;;  %v2361_v3 = vrot.slane %v2306_v38, 5  ;;  %v2359_v5 = vsel %vm5963_vm15, %v4566_v62, %v2358_v63  ;;  %v2360_v6 = vrot.slane %v2358_v63, 4  ;;  %2299 = vst [vmem:[#allocation3 + $0x208] sm:$0xf] %v2258_v15  ;;  %v2308_v58 = vld [vmem:[#allocation2 + $0x28] sm:$0xf]  ;;  %4277 = vmatpush.bf16.msra.mxu2 %v5306_v54 }
 0x2b4   : > { %2423 = vst [vmem:[#allocation3 + $0x5c] sm:$0xf] %v2359_v5  ;;  %v2526_v47 = vrot.slane %v2525_v37, 4  ;;  %v2307_v61 = vld [vmem:[#allocation2 + $0x24] sm:$0xe]  ;;  %v2365_v38 = vrot.slane %v2308_v58, 5 }
 0x2b5   : > { %3960 = vmatmul.bf16.gmra.mxu3 %v4768_v17  ;;  %4097 = vmatmul.bf16.gmra.mxu2 %v4708_v18  ;;  %2456 = vst [vmem:[#allocation3 + $0x60] sm:$0xf] %v2440_v45  ;;  %v2309_v29 = vld [vmem:[#allocation2 + $0x2c] sm:$0x1]  ;;  %v4567_v55 = vrot.slane %v2307_v61, 9 }
 0x2b6   : > { %v5173_v21 = vld [vmem:[#allocation3 + $0x1c] sm:$0xf]  ;;  %2457 = vst [vmem:[#allocation3 + $0x84] sm:$0xf] %v2441_v46  ;;  %v2368_v0 = vrot.slane %v2309_v29, 5 }
 0x2b7   : > { %4068 = vmatmul.bf16.gmra.mxu0 %v4848_v13  ;;  %v4609_v26 = vld [vmem:[#allocation3 + $0x3c] sm:$0xf0]  ;;  %v2719_v2 = vld [vmem:[#allocation2 + $0x1c] sm:$0xf]  ;;  %v2720_v56 = vld [vmem:[#allocation2 + $0x20] sm:$0x1]  ;;  %v2366_v7 = vsel %vm5963_vm15, %v4567_v55, %v2365_v38 }
 0x2b8   : > { %v6150_v40 = vpop.f32.mrf.mxu2  ;;  %v6152_v41 = vpop.f32.mrf.mxu3  ;;  %v4612_v31 = vor.u32 %v5173_v21, %v4609_v26  ;;  %v2718_v1 = vld [vmem:[#allocation2 + $0x18] sm:$0xe]  ;;  %v2768_v5 = vrot.slane %v2719_v2, 5  ;;  %v2771_v8 = vrot.slane %v2720_v56, 5  ;;  %2425 = vst [vmem:[#allocation3 + $0xa4] sm:$0xf] %v2366_v7 }
 0x2b9   : > { %v4573_v4 = vrot.slane %v2718_v1, 9  ;;  %v4815_v15 = vld [vmem:[#allocation3 + $0x1c0] sm:$0xf]  ;;  %v5172_v19 = vld [vmem:[#allocation3 + $0x14] sm:$0xf] }
 0x2ba   : > { %v4601_v20 = vld [vmem:[#allocation3 + $0x34] sm:$0xf0]  ;;  %v2477_v27 = vld [vmem:[#allocation2 + $0x34] sm:$0xf]  ;;  %v2478_v37 = vld [vmem:[#allocation2 + $0x38] sm:$0x1] }
 0x2bb   : > { %v2769_v12 = vsel %vm5963_vm15, %v4573_v4, %v2768_v5  ;;  %v2556_v39 = vshrl.u32 %v2477_v27, 16  ;;  %v2442_v54 = vld [vmem:[#allocation2 + $0x30] sm:$0xf]  ;;  %v2311_v1 = vld [vmem:[#allocation2 + $0x34] sm:$0xf] }
 0x2bc   : > { %v6208_v30 = vpop.f32.mrf.mxu0  ;;  %2838 = vst [vmem:[#allocation3 + $0x20] sm:$0xf] %v2769_v12  ;;  %v2722_v56 = vld [vmem:[#allocation2 + $0x28] sm:$0xf]  ;;  %v2312_v7 = vld [vmem:[#allocation2 + $0x38] sm:$0x1] }
 0x2bd   : > { %v5186_v9 = vld [vmem:[#allocation3 + $0x80] sm:$0xf0]  ;;  %2458 = vst [vmem:[#allocation3 + $0xa8] sm:$0xf] %v2442_v54 }
 0x2be   : > { %v6200_v13 = vpop.f32.mrf.mxu1 }
 0x2c0   : > { %v6168_v17 = vpop.f32.mrf.mxu2  ;;  %v6170_v18 = vpop.f32.mrf.mxu3 }
 0x2c3   : > { %4180 = vmatmul.bf16.vlgmr.msrb.gmra.mxu1 %v4608_v14  ;;  %v2770_v14 = vrot.slane %v2768_v5, 4 }
 0x2c4   : > { %v6223_v60 = vpop.f32.mrf.mxu0 }
 0x2c5   : > { %3965 = vmatmul.bf16.gmra.mxu3 %v4804_v23  ;;  %4102 = vmatmul.bf16.gmra.mxu2 %v4744_v24  ;;  %v2362_v23 = vsel %vm5963_vm15, %v2360_v6, %v2361_v3  ;;  %v2528_v24 = vshll.u32 %v2474_v16, 16  ;;  %v2367_v3 = vrot.slane %v2365_v38, 4  ;;  %v4643_v6 = vld [vmem:[#allocation3 + $0x60] sm:$0xf]  ;;  %v5230_v16 = vld [vmem:[#allocation3 + $0x1e0] sm:$0xf0]  ;;  %v2772_v26 = vsel %vm5963_vm15, %v2770_v14, %v2771_v8 }
 0x2c6   : > { %2424 = vst [vmem:[#allocation3 + $0x80] sm:$0xf] %v2362_v23  ;;  %v6214_v50 = vpop.f32.mrf.mxu1  ;;  %v4644_v22 = vor.u32 %v5186_v9, %v4643_v6  ;;  %v2310_v6 = vld [vmem:[#allocation2 + $0x30] sm:$0xe]  ;;  %v2375_v14 = vrot.slane %v2312_v7, 5 }
 0x2c7   : > { %v2530_v33 = vrot.slane %v2528_v24, 5  ;;  %4229 = vmatmul.bf16.vlgmr.msra.gmra.mxu0 %v4612_v31  ;;  %v2369_v10 = vsel %vm5963_vm15, %v2367_v3, %v2368_v0  ;;  %v2476_v24 = vld [vmem:[#allocation2 + $0x30] sm:$0xf]  ;;  %2839 = vst [vmem:[#allocation3 + $0x44] sm:$0xf] %v2772_v26  ;;  %v2372_v3 = vrot.slane %v2311_v1, 5 }
 0x2c8   : > { %v6188_v52 = vpop.f32.mrf.mxu2  ;;  %v6190_v53 = vpop.f32.mrf.mxu3  ;;  %2426 = vst [vmem:[#allocation3 + $0xc8] sm:$0xf] %v2369_v10  ;;  %v2543_v31 = vshrl.u32 %v2476_v24, 16  ;;  %v2546_v32 = vshll.u32 %v2476_v24, 16  ;;  %v4568_v10 = vrot.slane %v2310_v6, 9 }
 0x2c9   : > { %v2535_v44 = vor.u32 %v2534_v34, %v2530_v33  ;;  %v2531_v51 = vsel %vm5940_vm12, %v2526_v47, %v2530_v33  ;;  %v2552_v33 = vshll.u32 %v2477_v27, 16  ;;  %v2562_v47 = vshll.u32 %v2478_v37, 16  ;;  %v5181_v37 = vld [vmem:[#allocation3 + $0x5c] sm:$0xf] }
 0x2ca   : > { %2704 = vst [vmem:[#allocation3 + $0x64] sm:$0xf] %v2531_v51  ;;  %v2548_v45 = vrot.slane %v2546_v32, 5  ;;  %v2558_v51 = vrot.slane %v2556_v39, 4  ;;  %v2374_v12 = vrot.slane %v2372_v3, 4 }
 0x2cb   : > { %v2536_v49 = vrot.slane %v2535_v44, 4  ;;  %v2545_v44 = vrot.slane %v2543_v31, 4  ;;  %v2554_v46 = vrot.slane %v2552_v33, 5  ;;  %v2564_v29 = vrot.slane %v2562_v47, 5  ;;  %v4851_v32 = vld [vmem:[#allocation3 + $0x208] sm:$0xf] }
 0x2cc   : > { %v2376_v24 = vsel %vm5963_vm15, %v2374_v12, %v2375_v14  ;;  %v5239_v33 = vld [vmem:[#allocation3 + $0x228] sm:$0xf0]  ;;  %v2444_v14 = vld [vmem:[#allocation2 + $0x3c] sm:$0xf] }
 0x2cd   : > { %v2541_v57 = vsel %vm5940_vm12, %v2536_v49, %v2540_v48  ;;  %v4816_v48 = vor.u32 %v5230_v16, %v4815_v15  ;;  %v4604_v49 = vor.u32 %v5172_v19, %v4601_v20  ;;  %v2549_v58 = vor.u32 %v2548_v45, %v2545_v44  ;;  %v2721_v19 = vld [vmem:[#allocation2 + $0x24] sm:$0xe]  ;;  %v2723_v20 = vld [vmem:[#allocation2 + $0x2c] sm:$0x1]  ;;  %2428 = vst [vmem:[#allocation3 + $0x110] sm:$0xf] %v2376_v24 }
 0x2ce   : > { %2705 = vst [vmem:[#allocation3 + $0x88] sm:$0xf] %v2541_v57  ;;  %v2443_v57 = vld [vmem:[#allocation2 + $0x34] sm:$0xf]  ;;  %v2559_v61 = vor.u32 %v2558_v51, %v2554_v46  ;;  %v2775_v15 = vrot.slane %v2722_v56, 5  ;;  %v2778_v31 = vrot.slane %v2723_v20, 5 }
 0x2cf   : > { %2459 = vst [vmem:[#allocation3 + $0xcc] sm:$0xf] %v2443_v57  ;;  %v2550_v55 = vrot.slane %v2549_v58, 4  ;;  %v2479_v45 = vld [vmem:[#allocation2 + $0x3c] sm:$0xf] }
 0x2d0   : > { %v6210_v35 = vpop.f32.mrf.mxu2  ;;  %v6212_v36 = vpop.f32.mrf.mxu3  ;;  %v2560_v0 = vrot.slane %v2559_v61, 4  ;;  %v2777_v26 = vrot.slane %v2775_v15, 4  ;;  %v2570_v51 = vshll.u32 %v2479_v45, 16  ;;  %2460 = vst [vmem:[#allocation3 + $0xf0] sm:$0xf] %v2444_v14 }
 0x2d1   : > { %v6235_v21 = vpop.f32.mrf.mxu1  ;;  %v5182_v23 = vld [vmem:[#allocation3 + $0x64] sm:$0xf]  ;;  %v2555_v2 = vsel %vm5940_vm12, %v2550_v55, %v2554_v46  ;;  %v2480_v46 = vld [vmem:[#allocation2 + $0x40] sm:$0xf]  ;;  %v2481_v55 = vld [vmem:[#allocation2 + $0x44] sm:$0x1] }
 0x2d2   : > { %v2565_v5 = vsel %vm5940_vm12, %v2560_v0, %v2564_v29  ;;  %2706 = vst [vmem:[#allocation3 + $0xac] sm:$0xf] %v2555_v2  ;;  %v2576_v57 = vshll.u32 %v2480_v46, 16  ;;  %v2580_v58 = vshrl.u32 %v2480_v46, 16  ;;  %v2572_v1 = vrot.slane %v2570_v51, 5 }
 0x2d3   : > { %v6239_v34 = vpop.f32.mrf.mxu0  ;;  %4185 = vmatmul.bf16.gmra.mxu1 %v4644_v22  ;;  %2707 = vst [vmem:[#allocation3 + $0xd0] sm:$0xf] %v2565_v5  ;;  %v4679_v22 = vld [vmem:[#allocation3 + $0xa8] sm:$0xf]  ;;  %v2586_v6 = vshll.u32 %v2481_v55, 16 }
 0x2d4   : > { %v2578_v56 = vrot.slane %v2576_v57, 5  ;;  %v2582_v5 = vrot.slane %v2580_v58, 4  ;;  %v2726_v51 = vld [vmem:[#allocation2 + $0x38] sm:$0x1] }
 0x2d5   : > { %3970 = vmatmul.bf16.gmra.mxu3 %v4840_v42  ;;  %4107 = vmatmul.bf16.gmra.mxu2 %v4780_v43  ;;  %v4645_v25 = vld [vmem:[#allocation3 + $0x84] sm:$0xf0]  ;;  %v2785_v55 = vrot.slane %v2726_v51, 5 }
 0x2d6   : > { %v4648_v28 = vor.u32 %v5182_v23, %v4645_v25  ;;  %v2373_v23 = vsel %vm5963_vm15, %v4568_v10, %v2372_v3  ;;  %v4574_v25 = vrot.slane %v2721_v19, 9 }
 0x2d7   : > { %2427 = vst [vmem:[#allocation3 + $0xec] sm:$0xf] %v2373_v23  ;;  %v4715_v57 = vld [vmem:[#allocation3 + $0xf0] sm:$0xf] }
 0x2d8   : > { %v6225_v62 = vpop.f32.mrf.mxu2  ;;  %v6227_v63 = vpop.f32.mrf.mxu3  ;;  %4234 = vmatmul.bf16.gmra.mxu0 %v4648_v28  ;;  %v5195_v28 = vld [vmem:[#allocation3 + $0xc8] sm:$0xf0]  ;;  %v2776_v44 = vsel %vm5963_vm15, %v4574_v25, %v2775_v15  ;;  %v2445_v15 = vld [vmem:[#allocation2 + $0x40] sm:$0xf] }
 0x2d9   : > { %v6245_v38 = vpop.f32.mrf.mxu1  ;;  %v4680_v39 = vor.u32 %v5195_v28, %v4679_v22  ;;  %2840 = vst [vmem:[#allocation3 + $0x68] sm:$0xf] %v2776_v44  ;;  %v5191_v54 = vld [vmem:[#allocation3 + $0xac] sm:$0xf]  ;;  %v2588_v22 = vrot.slane %v2586_v6, 5 }
 0x2da   : > { %v4681_v29 = vld [vmem:[#allocation3 + $0xcc] sm:$0xf0]  ;;  %2461 = vst [vmem:[#allocation3 + $0x114] sm:$0xf] %v2445_v15  ;;  %v5178_v6 = vld [vmem:[#allocation3 + $0x40] sm:$0xf0] }
 0x2db   : > { %v6249_v4 = vpop.f32.mrf.mxu0  ;;  %v4684_v3 = vor.u32 %v5191_v54, %v4681_v29 }
 0x2e0   : > { %v6241_v42 = vpop.f32.mrf.mxu2  ;;  %v6243_v43 = vpop.f32.mrf.mxu3 }
 0x2e3   : > { %v6270_v61 = vpop.f32.mrf.mxu0  ;;  %4190 = vmatmul.bf16.gmra.mxu1 %v4680_v39 }
 0x2e5   : > { %4112 = vmatmul.bf16.gmra.mxu2 %v4816_v48  ;;  %4131 = vmatmul.bf16.vlgmr.msra.gmra.mxu3 %v4604_v49  ;;  %v4637_v48 = vld [vmem:[#allocation3 + $0x7c] sm:$0xf0]  ;;  %v2567_v49 = vshrl.u32 %v2479_v45, 16 }
 0x2e6   : > { %v4640_v10 = vor.u32 %v5181_v37, %v4637_v48  ;;  %v2315_v37 = vld [vmem:[#allocation2 + $0x44] sm:$0x1]  ;;  %v2724_v48 = vld [vmem:[#allocation2 + $0x30] sm:$0xe] }
 0x2e7   : > { %v2569_v0 = vrot.slane %v2567_v49, 4  ;;  %v2382_v46 = vrot.slane %v2315_v37, 5  ;;  %v4575_v54 = vrot.slane %v2724_v48, 9 }
 0x2e8   : > { %v6253_v8 = vpop.f32.mrf.mxu2  ;;  %v3936_v9 = vpop.f32.mrf.mxu3  ;;  %4239 = vmatmul.bf16.gmra.mxu0 %v4684_v3  ;;  %v2482_v3 = vld [vmem:[#allocation2 + $0x48] sm:$0xf] }
 0x2e9   : > { %v3937_v16 = vadd.f32 %v3936_v9, %v6150_v40  ;;  %v6261_v40 = vpop.f32.mrf.mxu1  ;;  %v4852_v9 = vor.u32 %v5239_v33, %v4851_v32  ;;  %v2573_v12 = vor.u32 %v2572_v1, %v2569_v0  ;;  %v2313_v33 = vld [vmem:[#allocation2 + $0x3c] sm:$0xe]  ;;  %v5204_v1 = vld [vmem:[#allocation3 + $0x110] sm:$0xf0]  ;;  %v2594_v14 = vshll.u32 %v2482_v3, 16 }
 0x2ea   : > { %v4569_v44 = vrot.slane %v2313_v33, 9 }
 0x2eb   : > { %v3986_v27 = vadd.f32 %v6200_v13, %v3937_v16  ;;  %v2779_v13 = vsel %vm5963_vm15, %v2777_v26, %v2778_v31  ;;  %v2583_v16 = vor.u32 %v2582_v5, %v2578_v56  ;;  %v2574_v20 = vrot.slane %v2573_v12, 4  ;;  %v2314_v26 = vld [vmem:[#allocation2 + $0x40] sm:$0xf]  ;;  %v6285_v32 = vpop.f32.mrf.mxu0  ;;  %v4615_v5 = vld [vmem:[#allocation3 + $0x20] sm:$0xf] }
 0x2ec   : > { %2841 = vst [vmem:[#allocation3 + $0x8c] sm:$0xf] %v2779_v13  ;;  %v2379_v28 = vrot.slane %v2314_v26, 5  ;;  %v2591_v12 = vshrl.u32 %v2482_v3, 16 }
 0x2ed   : > { %v6266_v47 = vadd.f32 %v6208_v30, %v3986_v27  ;;  %v2584_v24 = vrot.slane %v2583_v16, 4  ;;  %v2725_v27 = vld [vmem:[#allocation2 + $0x34] sm:$0xf] }
 0x2ee   : > { %v2782_v31 = vrot.slane %v2725_v27, 5  ;;  %v2381_v45 = vrot.slane %v2379_v28, 4  ;;  %v2380_v58 = vsel %vm5963_vm15, %v4569_v44, %v2379_v28  ;;  %v2484_v27 = vld [vmem:[#allocation2 + $0x50] sm:$0x1] }
 0x2ef   : > { %2429 = vst [vmem:[#allocation3 + $0x134] sm:$0xf] %v2380_v58  ;;  %v2610_v37 = vshll.u32 %v2484_v27, 16 }
 0x2f0   : > { %v6272_v30 = vpop.f32.mrf.mxu2  ;;  %v3938_v2 = vpop.f32.mrf.mxu3  ;;  %v2784_v13 = vrot.slane %v2782_v31, 4  ;;  %v2383_v29 = vsel %vm5963_vm15, %v2381_v45, %v2382_v46  ;;  %v4616_v45 = vor.u32 %v5178_v6, %v4615_v5 }
 0x2f1   : > { %v3939_v7 = vadd.f32 %v3938_v2, %v6168_v17  ;;  %v6276_v23 = vpop.f32.mrf.mxu1  ;;  %v2579_v17 = vsel %vm5940_vm12, %v2574_v20, %v2578_v56  ;;  %v2783_v2 = vsel %vm5963_vm15, %v4575_v54, %v2782_v31  ;;  %v5190_v56 = vld [vmem:[#allocation3 + $0xa4] sm:$0xf]  ;;  %2430 = vst [vmem:[#allocation3 + $0x158] sm:$0xf] %v2383_v29  ;;  %v2612_v58 = vrot.slane %v2610_v37, 5 }
 0x2f2   : > { %2708 = vst [vmem:[#allocation3 + $0xf4] sm:$0xf] %v2579_v17  ;;  %v2596_v17 = vrot.slane %v2594_v14, 5  ;;  %v4651_v37 = vld [vmem:[#allocation3 + $0x68] sm:$0xf] }
 0x2f3   : > { %v3988_v19 = vadd.f32 %v6214_v50, %v3939_v7  ;;  %v2589_v50 = vsel %vm5940_vm12, %v2584_v24, %v2588_v22  ;;  %v4716_v7 = vor.u32 %v5204_v1, %v4715_v57  ;;  %2842 = vst [vmem:[#allocation3 + $0xb0] sm:$0xf] %v2783_v2  ;;  %v2593_v24 = vrot.slane %v2591_v12, 4  ;;  %v6307_v46 = vpop.f32.mrf.mxu0 }
 0x2f4   : > { %2709 = vst [vmem:[#allocation3 + $0x118] sm:$0xf] %v2589_v50 }
 0x2f5   : > { %v6279_v25 = vadd.f32 %v6223_v60, %v3988_v19  ;;  %4117 = vmatmul.bf16.gmra.mxu2 %v4852_v9  ;;  %4136 = vmatmul.bf16.gmra.mxu3 %v4640_v10  ;;  %v2786_v9 = vsel %vm5963_vm15, %v2784_v13, %v2785_v55  ;;  %v2483_v10 = vld [vmem:[#allocation2 + $0x4c] sm:$0xf]  ;;  %v2446_v13 = vld [vmem:[#allocation2 + $0x48] sm:$0xf] }
 0x2f6   : > { %v2600_v19 = vshll.u32 %v2483_v10, 16  ;;  %v2604_v20 = vshrl.u32 %v2483_v10, 16  ;;  %2843 = vst [vmem:[#allocation3 + $0xd4] sm:$0xf] %v2786_v9  ;;  %4195 = vmatmul.bf16.gmra.mxu1 %v4716_v7  ;;  %v2317_v55 = vld [vmem:[#allocation2 + $0x4c] sm:$0xf] }
 0x2f7   : > { %2462 = vst [vmem:[#allocation3 + $0x138] sm:$0xf] %v2446_v13  ;;  %v2727_v10 = vld [vmem:[#allocation2 + $0x3c] sm:$0xe] }
 0x2f8   : > { %v6287_v60 = vpop.f32.mrf.mxu2  ;;  %v3941_v39 = vpop.f32.mrf.mxu3  ;;  %v2602_v50 = vrot.slane %v2600_v19, 5  ;;  %v2606_v28 = vrot.slane %v2604_v20, 4  ;;  %v2729_v19 = vld [vmem:[#allocation2 + $0x44] sm:$0x1]  ;;  %v4576_v20 = vrot.slane %v2727_v10, 9 }
 0x2f9   : > { %v3942_v49 = vadd.f32 %v3941_v39, %v6188_v52  ;;  %v4673_v52 = vld [vmem:[#allocation3 + $0xc4] sm:$0xf0]  ;;  %v6302_v15 = vpop.f32.mrf.mxu1  ;;  %v5200_v16 = vld [vmem:[#allocation3 + $0xf4] sm:$0xf] }
 0x2fa   : > { %v4676_v44 = vor.u32 %v5190_v56, %v4673_v52  ;;  %v2607_v48 = vor.u32 %v2606_v28, %v2602_v50  ;;  %v2316_v56 = vld [vmem:[#allocation2 + $0x48] sm:$0xe]  ;;  %v2318_v52 = vld [vmem:[#allocation2 + $0x50] sm:$0x1] }
 0x2fb   : > { %v3991_v0 = vadd.f32 %v6235_v21, %v3942_v49  ;;  %v4717_v22 = vld [vmem:[#allocation3 + $0x114] sm:$0xf0]  ;;  %v2447_v49 = vld [vmem:[#allocation2 + $0x4c] sm:$0xf]  ;;  %v4570_v6 = vrot.slane %v2316_v56, 9  ;;  %v2389_v9 = vrot.slane %v2318_v52, 5 }
 0x2fc   : > { %v4720_v26 = vor.u32 %v5200_v16, %v4717_v22  ;;  %v2608_v57 = vrot.slane %v2607_v48, 4  ;;  %2463 = vst [vmem:[#allocation3 + $0x15c] sm:$0xf] %v2447_v49  ;;  %v4709_v28 = vld [vmem:[#allocation3 + $0x10c] sm:$0xf0] }
 0x2fd   : > { %v6300_v21 = vadd.f32 %v6239_v34, %v3991_v0  ;;  %v2597_v34 = vor.u32 %v2596_v17, %v2593_v24  ;;  %v2728_v0 = vld [vmem:[#allocation2 + $0x40] sm:$0xf]  ;;  %v2486_v48 = vld [vmem:[#allocation2 + $0x58] sm:$0xf] }
 0x2fe   : > { %4244 = vmatmul.bf16.gmra.mxu0 %v4720_v26  ;;  %v2613_v1 = vsel %vm5940_vm12, %v2608_v57, %v2612_v58  ;;  %v2789_v2 = vrot.slane %v2728_v0, 5  ;;  %v4751_v22 = vld [vmem:[#allocation3 + $0x138] sm:$0xf]  ;;  %v2792_v26 = vrot.slane %v2729_v19, 5  ;;  %v2628_v57 = vshrl.u32 %v2486_v48, 16 }
 0x2ff   : > { %v2598_v54 = vrot.slane %v2597_v34, 4  ;;  %2711 = vst [vmem:[#allocation3 + $0x160] sm:$0xf] %v2613_v1  ;;  %v2485_v34 = vld [vmem:[#allocation2 + $0x54] sm:$0xf] }
 0x300   : > { %v6304_v31 = vpop.f32.mrf.mxu2  ;;  %v3943_v33 = vpop.f32.mrf.mxu3  ;;  %v2791_v12 = vrot.slane %v2789_v2, 4  ;;  %v2615_v13 = vshrl.u32 %v2485_v34, 16  ;;  %v2487_v1 = vld [vmem:[#allocation2 + $0x5c] sm:$0x1]  ;;  %v2449_v19 = vld [vmem:[#allocation2 + $0x58] sm:$0xf] }
 0x301   : > { %v3944_v39 = vadd.f32 %v3943_v33, %v6210_v35  ;;  %v2603_v35 = vsel %vm5940_vm12, %v2598_v54, %v2602_v50  ;;  %v6317_v3 = vpop.f32.mrf.mxu1  ;;  %v5199_v50 = vld [vmem:[#allocation3 + $0xec] sm:$0xf]  ;;  %v6328_v33 = vpop.f32.mrf.mxu0  ;;  %v2624_v54 = vshll.u32 %v2486_v48, 16  ;;  %2465 = vst [vmem:[#allocation3 + $0x1a4] sm:$0xf] %v2449_v19 }
 0x302   : > { %2710 = vst [vmem:[#allocation3 + $0x13c] sm:$0xf] %v2603_v35  ;;  %v2617_v35 = vrot.slane %v2615_v13, 4  ;;  %v2730_v48 = vld [vmem:[#allocation2 + $0x48] sm:$0xe] }
 0x303   : > { %v3993_v51 = vadd.f32 %v6245_v38, %v3944_v39  ;;  %v2386_v38 = vrot.slane %v2317_v55, 5  ;;  %v5187_v39 = vld [vmem:[#allocation3 + $0x88] sm:$0xf0] }
 0x305   : > { %v6311_v29 = vadd.f32 %v6249_v4, %v3993_v51  ;;  %4141 = vmatmul.bf16.gmra.mxu3 %v4676_v44  ;;  %4278 = vmatmul.bf16.vlgmr.msra.gmra.mxu2 %v4616_v45  ;;  %v2388_v7 = vrot.slane %v2386_v38, 4  ;;  %v2387_v24 = vsel %vm5963_vm15, %v4570_v6, %v2386_v38  ;;  %v2793_v45 = vsel %vm5963_vm15, %v2791_v12, %v2792_v26 }
 0x306   : > { %2431 = vst [vmem:[#allocation3 + $0x17c] sm:$0xf] %v2387_v24  ;;  %v4753_v58 = vld [vmem:[#allocation3 + $0x15c] sm:$0xf0]  ;;  %v2626_v38 = vrot.slane %v2624_v54, 5  ;;  %v2634_v6 = vshll.u32 %v2487_v1, 16 }
 0x307   : > { %v2390_v17 = vsel %vm5963_vm15, %v2388_v7, %v2389_v9  ;;  %2845 = vst [vmem:[#allocation3 + $0x11c] sm:$0xf] %v2793_v45  ;;  %v4652_v9 = vor.u32 %v5187_v39, %v4651_v37  ;;  %v2732_v54 = vld [vmem:[#allocation2 + $0x50] sm:$0x1] }
 0x308   : > { %v3946_v4 = vpop.f32.mrf.mxu3  ;;  %v4083_v5 = vpop.f32.mrf.mxu2  ;;  %2432 = vst [vmem:[#allocation3 + $0x1a0] sm:$0xf] %v2390_v17  ;;  %v2636_v17 = vrot.slane %v2634_v6, 5 }
 0x309   : > { %v3947_v14 = vadd.f32 %v3946_v4, %v6225_v62  ;;  %v6321_v16 = vadd.f32 %v4083_v5, %v6266_v47  ;;  %v5213_v62 = vld [vmem:[#allocation3 + $0x158] sm:$0xf0]  ;;  %v2790_v47 = vsel %vm5963_vm15, %v4576_v20, %v2789_v2  ;;  %v2630_v2 = vrot.slane %v2628_v57, 4  ;;  %v6341_v10 = vpop.f32.mrf.mxu1 }
 0x30a   : > { %v4752_v44 = vor.u32 %v5213_v62, %v4751_v22  ;;  %v5209_v51 = vld [vmem:[#allocation3 + $0x13c] sm:$0xf]  ;;  %2844 = vst [vmem:[#allocation3 + $0xf8] sm:$0xf] %v2790_v47  ;;  %v4712_v4 = vor.u32 %v5199_v50, %v4709_v28  ;;  %v2731_v50 = vld [vmem:[#allocation2 + $0x4c] sm:$0xf] }
 0x30b   : > { %v3996_v27 = vadd.f32 %v6261_v40, %v3947_v14  ;;  %v2618_v40 = vshll.u32 %v2485_v34, 16  ;;  %v4756_v0 = vor.u32 %v5209_v51, %v4753_v58  ;;  %v2631_v12 = vor.u32 %v2630_v2, %v2626_v38  ;;  %v2448_v14 = vld [vmem:[#allocation2 + $0x54] sm:$0xf]  ;;  %v2321_v34 = vld [vmem:[#allocation2 + $0x5c] sm:$0x1] }
 0x30c   : > { %4200 = vmatmul.bf16.gmra.mxu1 %v4752_v44  ;;  %2464 = vst [vmem:[#allocation3 + $0x180] sm:$0xf] %v2448_v14  ;;  %v2796_v62 = vrot.slane %v2731_v50, 5  ;;  %v2319_v47 = vld [vmem:[#allocation2 + $0x54] sm:$0xe]  ;;  %v2396_v45 = vrot.slane %v2321_v34, 5 }
 0x30d   : > { %v6335_v49 = vadd.f32 %v6270_v61, %v3996_v27  ;;  %v2620_v55 = vrot.slane %v2618_v40, 5  ;;  %v2632_v24 = vrot.slane %v2631_v12, 4  ;;  %v2320_v27 = vld [vmem:[#allocation2 + $0x58] sm:$0xf]  ;;  %v4571_v39 = vrot.slane %v2319_v47, 9 }
 0x30e   : > { %4249 = vmatmul.bf16.gmra.mxu0 %v4756_v0  ;;  %v2393_v28 = vrot.slane %v2320_v27, 5  ;;  %v2798_v13 = vrot.slane %v2796_v62, 4  ;;  %v4577_v57 = vrot.slane %v2730_v48, 9  ;;  %v2799_v0 = vrot.slane %v2732_v54, 5  ;;  %v4745_v2 = vld [vmem:[#allocation3 + $0x154] sm:$0xf0] }
 0x30f   : > { %v2621_v5 = vor.u32 %v2620_v55, %v2617_v35 }
 0x310   : > { %v3948_v56 = vpop.f32.mrf.mxu3  ;;  %v4085_v52 = vpop.f32.mrf.mxu2  ;;  %v2395_v44 = vrot.slane %v2393_v28, 4  ;;  %v2394_v35 = vsel %vm5963_vm15, %v4571_v39, %v2393_v28 }
 0x311   : > { %v3949_v61 = vadd.f32 %v3948_v56, %v6241_v42  ;;  %v6339_v7 = vadd.f32 %v4085_v52, %v6279_v25  ;;  %v2622_v22 = vrot.slane %v2621_v5, 4  ;;  %v6347_v42 = vpop.f32.mrf.mxu0  ;;  %v6362_v56 = vpop.f32.mrf.mxu1  ;;  %2433 = vst [vmem:[#allocation3 + $0x1c4] sm:$0xf] %v2394_v35  ;;  %v2488_v52 = vld [vmem:[#allocation2 + $0x60] sm:$0xf] }
 0x312   : > { %v2397_v55 = vsel %vm5963_vm15, %v2395_v44, %v2396_v45  ;;  %v5196_v5 = vld [vmem:[#allocation3 + $0xd0] sm:$0xf0]  ;;  %v2639_v12 = vshrl.u32 %v2488_v52, 16 }
 0x313   : > { %v3998_v20 = vadd.f32 %v6276_v23, %v3949_v61  ;;  %v2627_v25 = vsel %vm5940_vm12, %v2622_v22, %v2626_v38  ;;  %v2637_v23 = vsel %vm5940_vm12, %v2632_v24, %v2636_v17  ;;  %v4787_v58 = vld [vmem:[#allocation3 + $0x180] sm:$0xf]  ;;  %v5208_v38 = vld [vmem:[#allocation3 + $0x134] sm:$0xf]  ;;  %2434 = vst [vmem:[#allocation3 + $0x1e8] sm:$0xf] %v2397_v55  ;;  %v2800_v61 = vsel %vm5963_vm15, %v2798_v13, %v2799_v0 }
 0x314   : > { %2712 = vst [vmem:[#allocation3 + $0x184] sm:$0xf] %v2627_v25  ;;  %v2641_v17 = vrot.slane %v2639_v12, 4  ;;  %v2450_v13 = vld [vmem:[#allocation2 + $0x60] sm:$0xf] }
 0x315   : > { %v6345_v26 = vadd.f32 %v6285_v32, %v3998_v20  ;;  %4146 = vmatmul.bf16.gmra.mxu3 %v4712_v4  ;;  %4283 = vmatmul.bf16.gmra.mxu2 %v4652_v9  ;;  %2713 = vst [vmem:[#allocation3 + $0x1a8] sm:$0xf] %v2637_v23  ;;  %v4687_v4 = vld [vmem:[#allocation3 + $0xb0] sm:$0xf]  ;;  %v2489_v9 = vld [vmem:[#allocation2 + $0x64] sm:$0xf] }
 0x316   : > { %v2648_v20 = vshll.u32 %v2489_v9, 16  ;;  %v2652_v22 = vshrl.u32 %v2489_v9, 16  ;;  %2847 = vst [vmem:[#allocation3 + $0x164] sm:$0xf] %v2800_v61  ;;  %v2490_v23 = vld [vmem:[#allocation2 + $0x68] sm:$0x1]  ;;  %v4688_v45 = vor.u32 %v5196_v5, %v4687_v4 }
 0x317   : > { %2466 = vst [vmem:[#allocation3 + $0x1c8] sm:$0xf] %v2450_v13  ;;  %v2323_v0 = vld [vmem:[#allocation2 + $0x64] sm:$0xf]  ;;  %v2733_v61 = vld [vmem:[#allocation2 + $0x54] sm:$0xe] }
 0x318   : > { %v3951_v32 = vpop.f32.mrf.mxu3  ;;  %v4088_v37 = vpop.f32.mrf.mxu2  ;;  %v2650_v28 = vrot.slane %v2648_v20, 5  ;;  %v2735_v20 = vld [vmem:[#allocation2 + $0x5c] sm:$0x1] }
 0x319   : > { %v3952_v40 = vadd.f32 %v3951_v32, %v6253_v8  ;;  %v6355_v51 = vadd.f32 %v4088_v37, %v6300_v21  ;;  %v5222_v8 = vld [vmem:[#allocation3 + $0x1a0] sm:$0xf0]  ;;  %v2797_v21 = vsel %vm5963_vm15, %v4577_v57, %v2796_v62  ;;  %v6371_v27 = vpop.f32.mrf.mxu0  ;;  %v2654_v62 = vrot.slane %v2652_v22, 4 }
 0x31a   : > { %v4788_v6 = vor.u32 %v5222_v8, %v4787_v58  ;;  %2846 = vst [vmem:[#allocation3 + $0x140] sm:$0xf] %v2797_v21  ;;  %v4748_v32 = vor.u32 %v5208_v38, %v4745_v2  ;;  %v2658_v37 = vshll.u32 %v2490_v23, 16  ;;  %v2400_v38 = vrot.slane %v2323_v0, 5  ;;  %v2322_v8 = vld [vmem:[#allocation2 + $0x60] sm:$0xe] }
 0x31b   : > { %v4001_v1 = vadd.f32 %v6302_v15, %v3952_v40  ;;  %v2642_v15 = vshll.u32 %v2488_v52, 16  ;;  %v5218_v19 = vld [vmem:[#allocation3 + $0x184] sm:$0xf]  ;;  %v2655_v48 = vor.u32 %v2654_v62, %v2650_v28  ;;  %v2451_v40 = vld [vmem:[#allocation2 + $0x64] sm:$0xf]  ;;  %v4572_v4 = vrot.slane %v2322_v8, 9 }
 0x31c   : > { %v4789_v24 = vld [vmem:[#allocation3 + $0x1a4] sm:$0xf0]  ;;  %4205 = vmatmul.bf16.gmra.mxu1 %v4788_v6  ;;  %2467 = vst [vmem:[#allocation3 + $0x1ec] sm:$0xf] %v2451_v40  ;;  %v2660_v35 = vrot.slane %v2658_v37, 5  ;;  %v2402_v5 = vrot.slane %v2400_v38, 4 }
 0x31d   : > { %v6369_v14 = vadd.f32 %v6307_v46, %v4001_v1  ;;  %v2644_v25 = vrot.slane %v2642_v15, 5  ;;  %v4792_v50 = vor.u32 %v5218_v19, %v4789_v24  ;;  %v2656_v58 = vrot.slane %v2655_v48, 4  ;;  %v2734_v1 = vld [vmem:[#allocation2 + $0x58] sm:$0xf]  ;;  %v2324_v21 = vld [vmem:[#allocation2 + $0x68] sm:$0x1] }
 0x31e   : > { %v2803_v2 = vrot.slane %v2734_v1, 5  ;;  %v2403_v6 = vrot.slane %v2324_v21, 5  ;;  %v4578_v22 = vrot.slane %v2733_v61, 9  ;;  %v4823_v24 = vld [vmem:[#allocation3 + $0x1c8] sm:$0xf] }
 0x31f   : > { %v2645_v46 = vor.u32 %v2644_v25, %v2641_v17  ;;  %4254 = vmatmul.bf16.gmra.mxu0 %v4792_v50  ;;  %v2401_v17 = vsel %vm5963_vm15, %v4572_v4, %v2400_v38  ;;  %v2806_v50 = vrot.slane %v2735_v20, 5  ;;  %v4781_v62 = vld [vmem:[#allocation3 + $0x19c] sm:$0xf0]  ;;  %v2493_v1 = vld [vmem:[#allocation2 + $0x74] sm:$0x1] }
 0x320   : > { %v3953_v47 = vpop.f32.mrf.mxu3  ;;  %v4090_v34 = vpop.f32.mrf.mxu2  ;;  %v2805_v9 = vrot.slane %v2803_v2, 4  ;;  %v2404_v25 = vsel %vm5963_vm15, %v2402_v5, %v2403_v6  ;;  %2435 = vst [vmem:[#allocation3 + $0x20c] sm:$0xf] %v2401_v17  ;;  %v2452_v61 = vld [vmem:[#allocation2 + $0x6c] sm:$0xf] }
 0x321   : > { %v3954_v39 = vadd.f32 %v3953_v47, %v6272_v30  ;;  %v6375_v44 = vadd.f32 %v4090_v34, %v6311_v29  ;;  %v2646_v57 = vrot.slane %v2645_v46, 4  ;;  %v6381_v30 = vpop.f32.mrf.mxu1  ;;  %v6391_v19 = vpop.f32.mrf.mxu0  ;;  %v2491_v47 = vld [vmem:[#allocation2 + $0x6c] sm:$0xf]  ;;  %v4723_v34 = vld [vmem:[#allocation3 + $0xf8] sm:$0xf] }
 0x322   : > { %2436 = vst [vmem:[#allocation3 + $0x230] sm:$0xf] %v2404_v25  ;;  %v2807_v37 = vsel %vm5963_vm15, %v2805_v9, %v2806_v50  ;;  %v2666_v48 = vshll.u32 %v2491_v47, 16  ;;  %v2453_v9 = vld [vmem:[#allocation2 + $0x70] sm:$0xf] }
 0x323   : > { %v4003_v54 = vadd.f32 %v6317_v3, %v3954_v39  ;;  %v2651_v29 = vsel %vm5940_vm12, %v2646_v57, %v2650_v28  ;;  %v2661_v3 = vsel %vm5940_vm12, %v2656_v58, %v2660_v35  ;;  %v5217_v28 = vld [vmem:[#allocation3 + $0x17c] sm:$0xf]  ;;  %v2492_v39 = vld [vmem:[#allocation2 + $0x70] sm:$0xf]  ;;  %2849 = vst [vmem:[#allocation3 + $0x1ac] sm:$0xf] %v2807_v37 }
 0x324   : > { %2714 = vst [vmem:[#allocation3 + $0x1cc] sm:$0xf] %v2651_v29  ;;  %v2672_v40 = vshll.u32 %v2492_v39, 16  ;;  %v2668_v35 = vrot.slane %v2666_v48, 5  ;;  %v4784_v21 = vor.u32 %v5217_v28, %v4781_v62  ;;  %v2738_v28 = vld [vmem:[#allocation2 + $0x68] sm:$0x1] }
 0x325   : > { %v6379_v55 = vadd.f32 %v6328_v33, %v4003_v54  ;;  %4151 = vmatmul.bf16.gmra.mxu3 %v4748_v32  ;;  %4288 = vmatmul.bf16.gmra.mxu2 %v4688_v45  ;;  %2715 = vst [vmem:[#allocation3 + $0x1f0] sm:$0xf] %v2661_v3  ;;  %v5205_v32 = vld [vmem:[#allocation3 + $0x118] sm:$0xf0]  ;;  %v2663_v45 = vshrl.u32 %v2491_v47, 16  ;;  %v2676_v54 = vshrl.u32 %v2492_v39, 16 }
 0x326   : > { %v2674_v3 = vrot.slane %v2672_v40, 5  ;;  %v4724_v5 = vor.u32 %v5205_v32, %v4723_v34  ;;  %2468 = vst [vmem:[#allocation3 + $0x210] sm:$0xf] %v2452_v61  ;;  %v2739_v61 = vld [vmem:[#allocation2 + $0x6c] sm:$0xe] }
 0x327   : > { %v2665_v58 = vrot.slane %v2663_v45, 4  ;;  %v2678_v38 = vrot.slane %v2676_v54, 4  ;;  %2469 = vst [vmem:[#allocation3 + $0x234] sm:$0xf] %v2453_v9  ;;  %v4817_v54 = vld [vmem:[#allocation3 + $0x1e4] sm:$0xf0] }
 0x328   : > { %v3956_v33 = vpop.f32.mrf.mxu3  ;;  %v4093_v52 = vpop.f32.mrf.mxu2  ;;  %v2741_v9 = vld [vmem:[#allocation2 + $0x74] sm:$0x1] }
 0x329   : > { %v3957_v12 = vadd.f32 %v3956_v33, %v6287_v60  ;;  %v6389_v15 = vadd.f32 %v4093_v52, %v6335_v49  ;;  %v5231_v60 = vld [vmem:[#allocation3 + $0x1e8] sm:$0xf0]  ;;  %v2804_v49 = vsel %vm5963_vm15, %v4578_v22, %v2803_v2  ;;  %v6405_v29 = vpop.f32.mrf.mxu1  ;;  %v2682_v33 = vshll.u32 %v2493_v1, 16  ;;  %v4061_v20 = vpop.f32.mrf.mxu0 }
 0x32a   : > { %v4824_v46 = vor.u32 %v5231_v60, %v4823_v24  ;;  %2848 = vst [vmem:[#allocation3 + $0x188] sm:$0xf] %v2804_v49  ;;  %v2679_v6 = vor.u32 %v2678_v38, %v2674_v3 }
 0x32b   : > { %v4006_v23 = vadd.f32 %v6341_v10, %v3957_v12  ;;  %v5227_v13 = vld [vmem:[#allocation3 + $0x1cc] sm:$0xf]  ;;  %v2684_v17 = vrot.slane %v2682_v33, 5 }
 0x32c   : > { %v4825_v57 = vld [vmem:[#allocation3 + $0x1ec] sm:$0xf0]  ;;  %4210 = vmatmul.bf16.gmra.mxu1 %v4824_v46  ;;  %v2680_v24 = vrot.slane %v2679_v6, 4 }
 0x32d   : > { %v6403_v10 = vadd.f32 %v6347_v42, %v4006_v23  ;;  %v4828_v0 = vor.u32 %v5227_v13, %v4825_v57  ;;  %v2669_v42 = vor.u32 %v2668_v35, %v2665_v58  ;;  %v2736_v23 = vld [vmem:[#allocation2 + $0x60] sm:$0xe]  ;;  %v4859_v37 = vld [vmem:[#allocation3 + $0x210] sm:$0xf]  ;;  %v4759_v58 = vld [vmem:[#allocation3 + $0x140] sm:$0xf] }
 0x32e   : > { %v2685_v50 = vsel %vm5940_vm12, %v2680_v24, %v2684_v17  ;;  %v4579_v49 = vrot.slane %v2736_v23, 9  ;;  %v5240_v48 = vld [vmem:[#allocation3 + $0x230] sm:$0xf0]  ;;  %v5214_v35 = vld [vmem:[#allocation3 + $0x160] sm:$0xf0] }
 0x32f   : > { %4259 = vmatmul.bf16.gmra.mxu0 %v4828_v0  ;;  %v2670_v22 = vrot.slane %v2669_v42, 4  ;;  %2717 = vst [vmem:[#allocation3 + $0x238] sm:$0xf] %v2685_v50  ;;  %v4860_v13 = vor.u32 %v5240_v48, %v4859_v37 }
 0x330   : > { %v3958_v2 = vpop.f32.mrf.mxu3  ;;  %v4095_v8 = vpop.f32.mrf.mxu2 }
 0x331   : > { %v3959_v52 = vadd.f32 %v3958_v2, %v6304_v31  ;;  %v6409_v4 = vadd.f32 %v4095_v8, %v6345_v26  ;;  %v2675_v31 = vsel %vm5940_vm12, %v2670_v22, %v2674_v3  ;;  %v2737_v26 = vld [vmem:[#allocation2 + $0x64] sm:$0xf]  ;;  %v4015_v46 = vpop.f32.mrf.mxu1 }
 0x332   : > { %2716 = vst [vmem:[#allocation3 + $0x214] sm:$0xf] %v2675_v31 }
 0x333   : > { %v4008_v12 = vadd.f32 %v6362_v56, %v3959_v52  ;;  %v2810_v56 = vrot.slane %v2737_v26, 5  ;;  %v2740_v52 = vld [vmem:[#allocation2 + $0x70] sm:$0xf] }
 0x335   : > { %v6413_v25 = vadd.f32 %v6371_v27, %v4008_v12  ;;  %4156 = vmatmul.bf16.gmra.mxu3 %v4784_v21  ;;  %4293 = vmatmul.bf16.gmra.mxu2 %v4724_v5  ;;  %v2812_v47 = vrot.slane %v2810_v56, 4  ;;  %v2813_v27 = vrot.slane %v2738_v28, 5  ;;  %v2811_v59 = vsel %vm5963_vm15, %v4579_v49, %v2810_v56  ;;  %v5235_v56 = vld [vmem:[#allocation3 + $0x20c] sm:$0xf]  ;;  %v4853_v28 = vld [vmem:[#allocation3 + $0x22c] sm:$0xf0] }
 0x336   : > { %2850 = vst [vmem:[#allocation3 + $0x1d0] sm:$0xf] %v2811_v59  ;;  %v4861_v0 = vld [vmem:[#allocation3 + $0x234] sm:$0xf0]  ;;  %v4760_v21 = vor.u32 %v5214_v35, %v4759_v58  ;;  %v2817_v5 = vrot.slane %v2740_v52, 5 }
 0x337   : > { %v2814_v39 = vsel %vm5963_vm15, %v2812_v47, %v2813_v27  ;;  %v4856_v27 = vor.u32 %v5235_v56, %v4853_v28 }
 0x338   : > { %v3961_v62 = vpop.f32.mrf.mxu3  ;;  %v4098_v60 = vpop.f32.mrf.mxu2  ;;  %2851 = vst [vmem:[#allocation3 + $0x1f4] sm:$0xf] %v2814_v39  ;;  %v2819_v24 = vrot.slane %v2817_v5, 4 }
 0x339   : > { %v3962_v34 = vadd.f32 %v3961_v62, %v6152_v41  ;;  %v6421_v32 = vadd.f32 %v4098_v60, %v6369_v14  ;;  %v5226_v41 = vld [vmem:[#allocation3 + $0x1c4] sm:$0xf]  ;;  %v4064_v14 = vpop.f32.mrf.mxu0  ;;  %v5236_v57 = vld [vmem:[#allocation3 + $0x214] sm:$0xf]  ;;  %v4017_v42 = vpop.f32.mrf.mxu1  ;;  %v4795_v62 = vld [vmem:[#allocation3 + $0x188] sm:$0xf] }
 0x33a   : > { %v4864_v1 = vor.u32 %v5236_v57, %v4861_v0  ;;  %v4820_v8 = vor.u32 %v5226_v41, %v4817_v54  ;;  %v5223_v60 = vld [vmem:[#allocation3 + $0x1a8] sm:$0xf0] }
 0x33b   : > { %v4011_v45 = vadd.f32 %v6381_v30, %v3962_v34  ;;  %v4796_v34 = vor.u32 %v5223_v60, %v4795_v62 }
 0x33c   : > { %4215 = vmatmul.bf16.gmra.mxu1 %v4860_v13 }
 0x33d   : > { %v4060_v40 = vadd.f32 %v6391_v19, %v4011_v45 }
 0x33f   : > { %4264 = vmatmul.bf16.gmra.mxu0 %v4864_v1 }
 0x340   : > { %v3963_v3 = vpop.f32.mrf.mxu3  ;;  %v4100_v38 = vpop.f32.mrf.mxu2 }
 0x341   : > { %v3964_v2 = vadd.f32 %v3963_v3, %v6170_v18  ;;  %v6431_v30 = vadd.f32 %v4100_v38, %v6379_v55  ;;  %v4066_v6 = vpop.f32.mrf.mxu0  ;;  %v4580_v18 = vrot.slane %v2739_v61, 9  ;;  %v2820_v55 = vrot.slane %v2741_v9, 5  ;;  %v4020_v23 = vpop.f32.mrf.mxu1 }
 0x343   : > { %v4013_v19 = vadd.f32 %v6405_v29, %v3964_v2  ;;  %v2818_v29 = vsel %vm5963_vm15, %v4580_v18, %v2817_v5 }
 0x344   : > { %2852 = vst [vmem:[#allocation3 + $0x218] sm:$0xf] %v2818_v29 }
 0x345   : > { %v4062_v33 = vadd.f32 %v4061_v20, %v4013_v19  ;;  %4161 = vmatmul.bf16.gmra.mxu3 %v4820_v8  ;;  %4298 = vmatmul.bf16.gmra.mxu2 %v4760_v21  ;;  %v2821_v20 = vsel %vm5963_vm15, %v2819_v24, %v2820_v55 }
 0x346   : > { %2853 = vst [vmem:[#allocation3 + $0x23c] sm:$0xf] %v2821_v20 }
 0x348   : > { %v3966_v12 = vpop.f32.mrf.mxu3  ;;  %v4103_v22 = vpop.f32.mrf.mxu2 }
 0x349   : > { %v3967_v17 = vadd.f32 %v3966_v12, %v6190_v53  ;;  %v6436_v31 = vadd.f32 %v4103_v22, %v6403_v10  ;;  %v4069_v11 = vpop.f32.mrf.mxu0  ;;  %v4022_v59 = vpop.f32.mrf.mxu1 }
 0x34b   : > { %v4016_v26 = vadd.f32 %v4015_v46, %v3967_v17 }
 0x34d   : > { %v4065_v50 = vadd.f32 %v4064_v14, %v4016_v26  ;;  %v4831_v14 = vld [vmem:[#allocation3 + $0x1d0] sm:$0xf]  ;;  %v5241_v52 = vld [vmem:[#allocation3 + $0x238] sm:$0xf0] }
 0x350   : > { %v3968_v49 = vpop.f32.mrf.mxu3  ;;  %v4105_v53 = vpop.f32.mrf.mxu2 }
 0x351   : > { %v3969_v10 = vadd.f32 %v3968_v49, %v6212_v36  ;;  %v6444_v47 = vadd.f32 %v4105_v53, %v6413_v25  ;;  %v4071_v54 = vpop.f32.mrf.mxu0  ;;  %v5232_v25 = vld [vmem:[#allocation3 + $0x1f0] sm:$0xf0]  ;;  %v4181_v3 = vpop.f32.mrf.mxu1 }
 0x352   : > { %v4832_v1 = vor.u32 %v5232_v25, %v4831_v14 }
 0x353   : > { %v4018_v37 = vadd.f32 %v4017_v42, %v3969_v10  ;;  %v4867_v42 = vld [vmem:[#allocation3 + $0x218] sm:$0xf] }
 0x355   : > { %v4067_v46 = vadd.f32 %v4066_v6, %v4018_v37  ;;  %4166 = vmatmul.bf16.gmra.mxu3 %v4856_v27  ;;  %4303 = vmatmul.bf16.gmra.mxu2 %v4796_v34  ;;  %v6465_v27 = vld [vmem:[%s6547_s6] ss:$0 sm:$0xff] }
 0x358   : > { %v3971_v39 = vpop.f32.mrf.mxu3  ;;  %v4108_v45 = vpop.f32.mrf.mxu2 }
 0x359   : > { %v3972_v48 = vadd.f32 %v3971_v39, %v6227_v63  ;;  %v6447_v13 = vadd.f32 %v4108_v45, %v4060_v40  ;;  %v4230_v8 = vpop.f32.mrf.mxu0  ;;  %v4183_v19 = vpop.f32.mrf.mxu1 }
 0x35b   : > { %v4021_v41 = vadd.f32 %v4020_v23, %v3972_v48 }
 0x35d   : > { %v4070_v36 = vadd.f32 %v4069_v11, %v4021_v41 }
 0x360   : > { %v3973_v57 = vpop.f32.mrf.mxu3  ;;  %v4110_v58 = vpop.f32.mrf.mxu2 }
 0x361   : > { %v3974_v35 = vadd.f32 %v3973_v57, %v6243_v43  ;;  %v6450_v0 = vadd.f32 %v4110_v58, %v4062_v33  ;;  %v4232_v5 = vpop.f32.mrf.mxu0  ;;  %v4868_v43 = vor.u32 %v5241_v52, %v4867_v42  ;;  %v4186_v33 = vpop.f32.mrf.mxu1 }
 0x363   : > { %v4023_v38 = vadd.f32 %v4022_v59, %v3974_v35 }
 0x365   : > { %v4072_v2 = vadd.f32 %v4071_v54, %v4023_v38  ;;  %4308 = vmatmul.bf16.gmra.mxu2 %v4832_v1 }
 0x368   : > { %v4113_v63 = vpop.f32.mrf.mxu2  ;;  %v4132_v40 = vpop.f32.mrf.mxu3 }
 0x369   : > { %v6452_v21 = vadd.f32 %v4113_v63, %v4065_v50  ;;  %v4235_v24 = vpop.f32.mrf.mxu0  ;;  %v4188_v55 = vpop.f32.mrf.mxu1  ;;  %v4133_v26 = vadd.f32 %v4132_v40, %v6321_v16 }
 0x36b   : > { %v4182_v56 = vadd.f32 %v4181_v3, %v4133_v26 }
 0x36d   : > { %v4231_v49 = vadd.f32 %v4230_v8, %v4182_v56 }
 0x370   : > { %v4115_v6 = vpop.f32.mrf.mxu2  ;;  %v4134_v61 = vpop.f32.mrf.mxu3 }
 0x371   : > { %v6454_v9 = vadd.f32 %v4115_v6, %v4067_v46  ;;  %v4237_v50 = vpop.f32.mrf.mxu0  ;;  %v4135_v23 = vadd.f32 %v4134_v61, %v6339_v7  ;;  %v4191_v60 = vpop.f32.mrf.mxu1  ;;  %v6471_v7 = vld [vmem:[%s6548_s7] ss:$0 sm:$0xff] }
 0x373   : > { %v4184_v53 = vadd.f32 %v4183_v19, %v4135_v23 }
 0x375   : > { %4313 = vmatmul.bf16.gmra.mxu2 %v4868_v43  ;;  %v4233_v11 = vadd.f32 %v4232_v5, %v4184_v53 }
 0x378   : > { %v4118_v12 = vpop.f32.mrf.mxu2  ;;  %v4137_v22 = vpop.f32.mrf.mxu3 }
 0x379   : > { %v6456_v18 = vadd.f32 %v4118_v12, %v4070_v36  ;;  %v4240_v34 = vpop.f32.mrf.mxu0  ;;  %v4138_v39 = vadd.f32 %v4137_v22, %v6355_v51  ;;  %v4193_v48 = vpop.f32.mrf.mxu1 }
 0x37b   : > { %v4187_v36 = vadd.f32 %v4186_v33, %v4138_v39 }
 0x37d   : > { %v4236_v1 = vadd.f32 %v4235_v24, %v4187_v36 }
 0x380   : > { %v4120_v17 = vpop.f32.mrf.mxu2  ;;  %v4139_v29 = vpop.f32.mrf.mxu3 }
 0x381   : > { %v6458_v20 = vadd.f32 %v4120_v17, %v4072_v2  ;;  %v4140_v14 = vadd.f32 %v4139_v29, %v6375_v44  ;;  %v4242_v57 = vpop.f32.mrf.mxu0  ;;  %v4196_v2 = vpop.f32.mrf.mxu1 }
 0x383   : > { %v4189_v3 = vadd.f32 %v4188_v55, %v4140_v14 }
 0x385   : > { %v4238_v51 = vadd.f32 %v4237_v50, %v4189_v3 }
 0x388   : > { %v4142_v28 = vpop.f32.mrf.mxu3  ;;  %v4279_v62 = vpop.f32.mrf.mxu2 }
 0x389   : > { %v4280_v10 = vadd.f32 %v4279_v62, %v4231_v49  ;;  %v4245_v19 = vpop.f32.mrf.mxu0  ;;  %v4143_v42 = vadd.f32 %v4142_v28, %v6389_v15  ;;  %v4198_v12 = vpop.f32.mrf.mxu1 }
 0x38b   : > { %v4323_v46 = vmul.f32 %v6465_v27, %v4280_v10  ;;  %v4192_v61 = vadd.f32 %v4191_v60, %v4143_v42 }
 0x38d   : > { %v4343_v41 = vadd.f32 %v6471_v7, %v4323_v46  ;;  %v4241_v24 = vadd.f32 %v4240_v34, %v4192_v61 }
 0x390   : > { %v4144_v37 = vpop.f32.mrf.mxu3  ;;  %v4281_v16 = vpop.f32.mrf.mxu2 }
 0x391   : > { %v4282_v59 = vadd.f32 %v4281_v16, %v4233_v11  ;;  %v4145_v43 = vadd.f32 %v4144_v37, %v6409_v4  ;;  %v4247_v17 = vpop.f32.mrf.mxu0  ;;  %v4201_v28 = vpop.f32.mrf.mxu1 }
 0x393   : > { %v4324_v45 = vmul.f32 %v6465_v27, %v4282_v59  ;;  %v4194_v55 = vadd.f32 %v4193_v48, %v4145_v43 }
 0x395   : > { %v4344_v54 = vadd.f32 %v6471_v7, %v4324_v45  ;;  %v4243_v15 = vadd.f32 %v4242_v57, %v4194_v55 }
 0x397   : > { %v5342_v25 = vpack.c.bf16 %v4344_v54, %v4343_v41 }
 0x398   : > { %v4284_v58 = vpop.f32.mrf.mxu2  ;;  %v4147_v35 = vpop.f32.mrf.mxu3 }
 0x399   : > { %5343 = vst [vmem:[%s5605_s21] sm:$0xff] %v5342_v25   ;;  %v4285_v38 = vadd.f32 %v4284_v58, %v4236_v1  ;;  %v4148_v62 = vadd.f32 %v4147_v35, %v6421_v32  ;;  %v4250_v53 = vpop.f32.mrf.mxu0  ;;  %v4203_v39 = vpop.f32.mrf.mxu1 }
 0x39b   : > { %v4325_v63 = vmul.f32 %v6465_v27, %v4285_v38  ;;  %v4197_v10 = vadd.f32 %v4196_v2, %v4148_v62 }
 0x39d   : > { %v4345_v5 = vadd.f32 %v6471_v7, %v4325_v63  ;;  %v4246_v46 = vadd.f32 %v4245_v19, %v4197_v10 }
 0x3a0   : > { %v4286_v8 = vpop.f32.mrf.mxu2  ;;  %v4149_v52 = vpop.f32.mrf.mxu3 }
 0x3a1   : > { %v4287_v40 = vadd.f32 %v4286_v8, %v4238_v51  ;;  %v4150_v34 = vadd.f32 %v4149_v52, %v6431_v30  ;;  %v4252_v48 = vpop.f32.mrf.mxu0  ;;  %v4206_v35 = vpop.f32.mrf.mxu1 }
 0x3a3   : > { %v4326_v44 = vmul.f32 %v6465_v27, %v4287_v40  ;;  %v4199_v59 = vadd.f32 %v4198_v12, %v4150_v34 }
 0x3a5   : > { %v4346_v6 = vadd.f32 %v6471_v7, %v4326_v44  ;;  %v4248_v32 = vadd.f32 %v4247_v17, %v4199_v59 }
 0x3a7   : > { %v5347_v33 = vpack.c.bf16 %v4346_v6, %v4345_v5 }
 0x3a8   : > { %v4289_v22 = vpop.f32.mrf.mxu2  ;;  %v4152_v26 = vpop.f32.mrf.mxu3 }
 0x3a9   : > { %5384 = vst [vmem:[%s5605_s21 + $0x8] sm:$0xff] %v5347_v33   ;;  %v4290_v29 = vadd.f32 %v4289_v22, %v4241_v24  ;;  %v4153_v25 = vadd.f32 %v4152_v26, %v6436_v31  ;;  %v4255_v51 = vpop.f32.mrf.mxu0  ;;  %v4208_v42 = vpop.f32.mrf.mxu1 }
 0x3ab   : > { %v4327_v56 = vmul.f32 %v6465_v27, %v4290_v29  ;;  %v4202_v1 = vadd.f32 %v4201_v28, %v4153_v25 }
 0x3ad   : > { %v4347_v60 = vadd.f32 %v6471_v7, %v4327_v56  ;;  %v4251_v8 = vadd.f32 %v4250_v53, %v4202_v1 }
 0x3b0   : > { %v4291_v50 = vpop.f32.mrf.mxu2  ;;  %v4154_v37 = vpop.f32.mrf.mxu3 }
 0x3b1   : > { %v4292_v23 = vadd.f32 %v4291_v50, %v4243_v15  ;;  %v4155_v3 = vadd.f32 %v4154_v37, %v6444_v47  ;;  %v4257_v47 = vpop.f32.mrf.mxu0  ;;  %v4211_v29 = vpop.f32.mrf.mxu1 }
 0x3b3   : > { %v4328_v4 = vmul.f32 %v6465_v27, %v4292_v23  ;;  %v4204_v63 = vadd.f32 %v4203_v39, %v4155_v3 }
 0x3b5   : > { %v4348_v49 = vadd.f32 %v6471_v7, %v4328_v4  ;;  %v4253_v31 = vadd.f32 %v4252_v48, %v4204_v63 }
 0x3b7   : > { %v5352_v11 = vpack.c.bf16 %v4348_v49, %v4347_v60 }
 0x3b8   : > { %v4294_v16 = vpop.f32.mrf.mxu2  ;;  %v4157_v14 = vpop.f32.mrf.mxu3 }
 0x3b9   : > { %5385 = vst [vmem:[%s5605_s21 + $0x10] sm:$0xff] %v5352_v11   ;;  %v4295_v45 = vadd.f32 %v4294_v16, %v4246_v46  ;;  %v4158_v6 = vadd.f32 %v4157_v14, %v6447_v13  ;;  %v4260_v56 = vpop.f32.mrf.mxu0 }
 0x3bb   : > { %v4329_v54 = vmul.f32 %v6465_v27, %v4295_v45  ;;  %v4207_v22 = vadd.f32 %v4206_v35, %v4158_v6 }
 0x3bd   : > { %v4349_v57 = vadd.f32 %v6471_v7, %v4329_v54  ;;  %v4256_v26 = vadd.f32 %v4255_v51, %v4207_v22 }
 0x3c0   : > { %v4296_v41 = vpop.f32.mrf.mxu2  ;;  %v4159_v40 = vpop.f32.mrf.mxu3 }
 0x3c1   : > { %v4297_v36 = vadd.f32 %v4296_v41, %v4248_v32  ;;  %v4160_v24 = vadd.f32 %v4159_v40, %v6450_v0  ;;  %v4213_v0 = vpop.f32.mrf.mxu1  ;;  %v4262_v16 = vpop.f32.mrf.mxu0 }
 0x3c3   : > { %v4330_v30 = vmul.f32 %v6465_v27, %v4297_v36  ;;  %v4209_v15 = vadd.f32 %v4208_v42, %v4160_v24 }
 0x3c5   : > { %v4350_v58 = vadd.f32 %v6471_v7, %v4330_v30  ;;  %v4258_v13 = vadd.f32 %v4257_v47, %v4209_v15 }
 0x3c7   : > { %v5357_v38 = vpack.c.bf16 %v4350_v58, %v4349_v57 }
 0x3c8   : > { %v4299_v2 = vpop.f32.mrf.mxu2  ;;  %v4162_v12 = vpop.f32.mrf.mxu3 }
 0x3c9   : > { %5386 = vst [vmem:[%s5605_s21 + $0x18] sm:$0xff] %v5357_v38   ;;  %v4300_v19 = vadd.f32 %v4299_v2, %v4251_v8  ;;  %v4163_v60 = vadd.f32 %v4162_v12, %v6452_v21  ;;  %v4216_v48 = vpop.f32.mrf.mxu1  ;;  %v4265_v14 = vpop.f32.mrf.mxu0 }
 0x3cb   : > { %v4331_v52 = vmul.f32 %v6465_v27, %v4300_v19  ;;  %v4212_v34 = vadd.f32 %v4211_v29, %v4163_v60 }
 0x3cd   : > { %v4351_v43 = vadd.f32 %v6471_v7, %v4331_v52  ;;  %v4261_v39 = vadd.f32 %v4260_v56, %v4212_v34 }
 0x3d0   : > { %v4301_v44 = vpop.f32.mrf.mxu2  ;;  %v4164_v23 = vpop.f32.mrf.mxu3 }
 0x3d1   : > { %v4302_v5 = vadd.f32 %v4301_v44, %v4253_v31  ;;  %v4165_v11 = vadd.f32 %v4164_v23, %v6454_v9  ;;  %v4218_v38 = vpop.f32.mrf.mxu1  ;;  %v4267_v63 = vpop.f32.mrf.mxu0 }
 0x3d3   : > { %v4332_v61 = vmul.f32 %v6465_v27, %v4302_v5  ;;  %v4214_v45 = vadd.f32 %v4213_v0, %v4165_v11 }
 0x3d5   : > { %v4352_v33 = vadd.f32 %v6471_v7, %v4332_v61  ;;  %v4263_v21 = vadd.f32 %v4262_v16, %v4214_v45 }
 0x3d7   : > { %v5362_v55 = vpack.c.bf16 %v4352_v33, %v4351_v43 }
 0x3d8   : > { %v4304_v17 = vpop.f32.mrf.mxu2  ;;  %v4167_v59 = vpop.f32.mrf.mxu3 }
 0x3d9   : > { %5387 = vst [vmem:[%s5605_s21 + $0x20] sm:$0xff] %v5362_v55   ;;  %v4305_v50 = vadd.f32 %v4304_v17, %v4256_v26  ;;  %v4168_v25 = vadd.f32 %v4167_v59, %v6456_v18 }
 0x3db   : > { %v4333_v62 = vmul.f32 %v6465_v27, %v4305_v50  ;;  %v4217_v35 = vadd.f32 %v4216_v48, %v4168_v25 }
 0x3dd   : > { %v4353_v53 = vadd.f32 %v6471_v7, %v4333_v62  ;;  %v4266_v51 = vadd.f32 %v4265_v14, %v4217_v35 }
 0x3e0   : > { %v4306_v28 = vpop.f32.mrf.mxu2  ;;  %v4169_v30 = vpop.f32.mrf.mxu3 }
 0x3e1   : > { %v4307_v4 = vadd.f32 %v4306_v28, %v4258_v13  ;;  %v4170_v1 = vadd.f32 %v4169_v30, %v6458_v20 }
 0x3e3   : > { %v4334_v49 = vmul.f32 %v6465_v27, %v4307_v4  ;;  %v4219_v8 = vadd.f32 %v4218_v38, %v4170_v1 }
 0x3e5   : > { %v4354_v10 = vadd.f32 %v6471_v7, %v4334_v49  ;;  %v4268_v18 = vadd.f32 %v4267_v63, %v4219_v8 }
 0x3e7   : > { %v5367_v37 = vpack.c.bf16 %v4354_v10, %v4353_v53 }
 0x3e8   : > { %v4309_v46 = vpop.f32.mrf.mxu2 }
 0x3e9   : > { %5388 = vst [vmem:[%s5605_s21 + $0x28] sm:$0xff] %v5367_v37   ;;  %v4310_v32 = vadd.f32 %v4309_v46, %v4261_v39 }
 0x3eb   : > { %v4335_v54 = vmul.f32 %v6465_v27, %v4310_v32 }
 0x3ed   : > { %v4355_v57 = vadd.f32 %v6471_v7, %v4335_v54 }
 0x3f0   : > { %v4311_v41 = vpop.f32.mrf.mxu2 }
 0x3f1   : > { %v4312_v36 = vadd.f32 %v4311_v41, %v4263_v21 }
 0x3f3   : > { %v4336_v9 = vmul.f32 %v6465_v27, %v4312_v36 }
 0x3f5   : > { %v4356_v58 = vadd.f32 %v6471_v7, %v4336_v9 }
 0x3f7   : > { %v5372_v3 = vpack.c.bf16 %v4356_v58, %v4355_v57 }
 0x3f8   : > { %v4314_v2 = vpop.f32.mrf.mxu2 }
 0x3f9   : > { %5389 = vst [vmem:[%s5605_s21 + $0x30] sm:$0xff] %v5372_v3   ;;  %v4315_v40 = vadd.f32 %v4314_v2, %v4266_v51 }
 0x3fb   : > { %v4337_v31 = vmul.f32 %v6465_v27, %v4315_v40 }
 0x3fd   : > { %v4357_v52 = vadd.f32 %v6471_v7, %v4337_v31 }
 0x400   : > { %v4316_v19 = vpop.f32.mrf.mxu2 }
 0x401   : > { %v4317_v42 = vadd.f32 %v4316_v19, %v4268_v18 }
 0x403   : > { %v4338_v44 = vmul.f32 %v6465_v27, %v4317_v42 }
 0x405   : > { %v4358_v20 = vadd.f32 %v6471_v7, %v4338_v44 }
 0x407   : > { %v5377_v5 = vpack.c.bf16 %v4358_v20, %v4357_v52 }
 0x409   : > { %5390 = vst [vmem:[%s5605_s21 + $0x38] sm:$0xff] %v5377_v5  }
 0x40a PF: > { %s18_s9 = sadd.s32 1, %s5491_s9   ;;  %s6560_s20 = sld [smem:[#allocation4_spill]] }
 0x40b   : > { %p15_p11 = scmp.ge.s32.totalorder %s18_s9, 6   ;;  %s6561_s27 = smov %s5483_s29 }
 0x40c   : > { %s6562_s28 = smov %s5487_s30  ;;  %s6563_s29 = smov %s6566_s10 }
 0x40d   :  { %17 = sbr.rel (!%p15_p11) target bundleno = 3 (0x3), region = 125 }
 0x410   : > { %s6564_s30 = smov %s6560_s20 }

</bundles_post_ra>
